<compile_context>
chip_gen: v6e
topology: v6e:2x2x1
jax: 0.10.0
libtpu: 0.0.40
codegen_flags: <defaults>
</compile_context>

<pallas_src>
import numpy as np
import jax
import jax.numpy as jnp
from jax.experimental import pallas as pl
from jax.experimental.pallas import tpu as pltpu

# ---------------- small config consistent with MaskedAutoencoderViT ----------------
IMG_SIZE = 16
PATCH = 4
IN_CHANS = 3
EMBED_DIM = 32
DEPTH = 2
NUM_HEADS = 4
DEC_EMBED_DIM = 16
DEC_DEPTH = 1
DEC_NUM_HEADS = 4
MLP_RATIO = 4.0
GRID_SIZE = IMG_SIZE // PATCH
NUM_PATCHES = GRID_SIZE * GRID_SIZE
PATCH_DIM = IN_CHANS * PATCH * PATCH
MASK_RATIO = 0.75
LEN_KEEP = int(NUM_PATCHES * (1 - MASK_RATIO))
LN_EPS = 1e-5  # nn.LayerNorm default

# Matmul operand dtype: f32 = exact parity with the PyTorch reference.
# On v6e / v7x set to jnp.bfloat16 for MXU-native operands (accumulation
# stays f32 via preferred_element_type); small numeric drift expected.
MXU_DTYPE = jnp.float32


# ---------------- 2D sin-cos positional embedding (same math as reference) ----------
def get_2d_sincos_pos_embed(embed_dim, grid_size):
    assert embed_dim % 4 == 0, "Embed dim must be divisible by 4"
    dim_each = embed_dim // 4
    grid_h = np.arange(grid_size, dtype=np.float32)
    grid_w = np.arange(grid_size, dtype=np.float32)
    grid = np.meshgrid(grid_w, grid_h)
    grid = np.stack(grid, axis=-1).reshape(-1, 2)
    outs = []
    for i in range(2):
        pos_i = grid[:, i:i + 1]
        omega = 1.0 / 10000 ** (np.arange(dim_each, dtype=np.float32) / dim_each)
        pos_i = pos_i * omega[None, :]
        outs.append(np.concatenate([np.sin(pos_i), np.cos(pos_i)], axis=1))
    return np.concatenate(outs, axis=1).astype(np.float32)


# ============================ in-kernel math helpers ============================
def _mm(a, b):
    return jnp.dot(a.astype(MXU_DTYPE), b.astype(MXU_DTYPE),
                   preferred_element_type=jnp.float32)


def _mm_nt(a, b):  # a @ b.T
    return jax.lax.dot_general(a.astype(MXU_DTYPE), b.astype(MXU_DTYPE),
                               (((1,), (1,)), ((), ())),
                               preferred_element_type=jnp.float32)


def _layernorm(x, g, b):
    mean = jnp.mean(x, axis=-1, keepdims=True)
    var = jnp.mean((x - mean) ** 2, axis=-1, keepdims=True)
    return (x - mean) * jax.lax.rsqrt(var + LN_EPS) * g + b


# Eigen/XLA float32 erf rational approximation (same polynomial XLA uses for f32
# erf), so the exact-erf GELU stays fully inside the fused kernel.
_ERF_ALPHA = (-2.72614225801306e-10, 2.77068142495902e-08, -2.10102402082508e-06,
              -5.69250639462346e-05, -7.34990630326855e-04, -2.95459980854025e-03,
              -1.60960333262415e-02)
_ERF_BETA = (-1.45660718464996e-05, -2.13374055278905e-04, -1.68282697438203e-03,
             -7.37332916720468e-03, -1.42647390514189e-02)


def _erf(x):
    x = jnp.maximum(jnp.minimum(x, 4.0), -4.0)
    x2 = x * x
    p = jnp.full_like(x2, _ERF_ALPHA[0])
    for c in _ERF_ALPHA[1:]:
        p = p * x2 + c
    p = p * x
    q = jnp.full_like(x2, _ERF_BETA[0])
    for c in _ERF_BETA[1:]:
        q = q * x2 + c
    return p / q


def _gelu(x):
    # exact (erf) GELU, matching nn.GELU default
    return 0.5 * x * (1.0 + _erf(x * 0.7071067811865476))


def _image_block_bias(b_img, l_tok):
    """Block-diagonal additive bias so tokens only attend within their own image."""
    if b_img == 1:
        return None
    m = b_img * l_tok
    row = jax.lax.broadcasted_iota(jnp.int32, (m, m), 0) // l_tok
    col = jax.lax.broadcasted_iota(jnp.int32, (m, m), 1) // l_tok
    return jnp.where(row == col, 0.0, -1e30).astype(jnp.float32)


def _block_fwd(x, layer, num_heads, head_dim, blk, attn_bias):
    """timm-style Block: x + attn(norm1(x)); x + mlp(norm2(x)).
    Fused QKV matmul + per-head score/PV + single output projection."""
    (n1w, n1b, qkvw, qkvb, pw, pb, n2w, n2b, f1w, f1b, f2w, f2b) = blk
    D = x.shape[-1]
    scale = head_dim ** -0.5

    h = _layernorm(x, n1w[layer], n1b[layer])
    qkv = _mm(h, qkvw[layer]) + qkvb[layer]                       # (M, 3D)
    heads = []
    for hd in range(num_heads):
        a0 = hd * head_dim
        q = qkv[:, a0:a0 + head_dim]
        k = qkv[:, D + a0:D + a0 + head_dim]
        v = qkv[:, 2 * D + a0:2 * D + a0 + head_dim]
        s = _mm_nt(q, k) * scale                                  # (M, M)
        if attn_bias is not None:
            s = s + attn_bias
        s = s - jnp.max(s, axis=-1, keepdims=True)
        p = jnp.exp(s)
        p = p / jnp.sum(p, axis=-1, keepdims=True)                # exact softmax
        heads.append(_mm(p, v))                                   # (M, head_dim)
    o = jnp.concatenate(heads, axis=-1)                           # (M, D)
    x = x + _mm(o, pw[layer]) + pb[layer]

    h = _layernorm(x, n2w[layer], n2b[layer])
    h = _gelu(_mm(h, f1w[layer]) + f1b[layer])
    return x + _mm(h, f2w[layer]) + f2b[layer]


# ============================ single fused MAE kernel ============================
def _mae_kernel(ids_ref, patches_ref, target_ref, pos_ref, pew_ref, peb_ref, *rest):
    enc_blk = rest[:12]
    nw_ref, nb_ref, dew_ref, deb_ref, mtok_ref, dpos_ref = rest[12:18]
    dec_blk = rest[18:30]
    dnw_ref, dnb_ref, prw_ref, prb_ref = rest[30:34]
    pred_ref, loss_ref = rest[34:36]
    xall_sc, xkeep_sc, xdec_sc, xfull_sc = rest[36:40]

    B = patches_ref.shape[0]                       # images per grid block
    L = NUM_PATCHES
    blk0 = pl.program_id(0) * B

    # kept-token indices for this block (scalar-prefetched, SMEM)
    kept = [[ids_ref[blk0 + b, k] for k in range(LEN_KEEP)] for b in range(B)]

    # ---- patch embed on ALL patches of the block (one big matmul) + pos embed ----
    patches = patches_ref[...].reshape(B * L, PATCH_DIM)
    x_all = _mm(patches, pew_ref[...]) + peb_ref[...] + pos_ref[...]
    xall_sc[...] = x_all

    # ---- in-kernel random-masking gather (row indexing on VMEM scratch) ----
    for b in range(B):
        for k in range(LEN_KEEP):
            r = b * LEN_KEEP + k
            xkeep_sc[r:r + 1, :] = xall_sc[pl.ds(b * L + kept[b][k], 1), :]
    x = xkeep_sc[...]                              # (B*LEN_KEEP, EMBED_DIM)

    # ---- encoder blocks -> norm -> decoder_embed ----
    enc_bias = _image_block_bias(B, LEN_KEEP)
    for layer in range(DEPTH):
        x = _block_fwd(x, layer, NUM_HEADS, EMBED_DIM // NUM_HEADS, enc_blk, enc_bias)
    x = _layernorm(x, nw_ref[...], nb_ref[...])
    xdec_sc[...] = _mm(x, dew_ref[...]) + deb_ref[...]   # (B*LEN_KEEP, DEC_EMBED_DIM)

    # ---- un-shuffle: mask token everywhere, scatter kept tokens back in place ----
    xfull_sc[...] = jnp.broadcast_to(mtok_ref[...], (B * L, DEC_EMBED_DIM))
    for b in range(B):
        for k in range(LEN_KEEP):
            r = b * LEN_KEEP + k
            xfull_sc[pl.ds(b * L + kept[b][k], 1), :] = xdec_sc[r:r + 1, :]
    xd = xfull_sc[...] + dpos_ref[...]             # (B*L, DEC_EMBED_DIM)

    # ---- decoder blocks -> norm -> pred ----
    dec_bias = _image_block_bias(B, L)
    for layer in range(DEC_DEPTH):
        xd = _block_fwd(xd, layer, DEC_NUM_HEADS, DEC_EMBED_DIM // DEC_NUM_HEADS,
                        dec_blk, dec_bias)
    xd = _layernorm(xd, dnw_ref[...], dnb_ref[...])
    pred = _mm(xd, prw_ref[...]) + prb_ref[...]    # (B*L, PATCH_DIM)
    pred_ref[...] = pred.reshape(B, L, PATCH_DIM)

    # ---- fused per-patch MSE, reduced to a single partial per grid block ----
    tgt = target_ref[...].reshape(B * L, PATCH_DIM)
    d = pred - tgt
    per_tok = jnp.mean(d * d, axis=-1, keepdims=True)      # (B*L, 1)
    loss_ref[0] = jnp.sum(per_tok, keepdims=True)          # (1, 1)


# ============================ wrapper / BlockSpec plumbing ============================
def _pick_images_per_block(n):
    """Stack images per block to fill MXU rows, but keep >=2 grid steps so both
    v7x TensorCores get work (grid axis is marked "parallel")."""
    cap = max(1, min(8, n // 2))
    for b in range(cap, 0, -1):
        if n % b == 0:
            return b
    return 1


def _stack_w(blocks, name):
    return jnp.stack([b[name] for b in blocks])                    # (depth, in, out)


def _stack_b(blocks, name):
    return jnp.stack([b[name][None, :] for b in blocks])           # (depth, 1, dim)


def _block_weight_stack(blocks):
    return [
        _stack_b(blocks, 'norm1_w'), _stack_b(blocks, 'norm1_b'),
        _stack_w(blocks, 'qkv_w'), _stack_b(blocks, 'qkv_b'),
        _stack_w(blocks, 'proj_w'), _stack_b(blocks, 'proj_b'),
        _stack_b(blocks, 'norm2_w'), _stack_b(blocks, 'norm2_b'),
        _stack_w(blocks, 'fc1_w'), _stack_b(blocks, 'fc1_b'),
        _stack_w(blocks, 'fc2_w'), _stack_b(blocks, 'fc2_b'),
    ]


def extract_patches_conv_order(imgs, p):
    """Conv2d(k=p, s=p) im2col: per-patch flatten order is (c, ph, pw)."""
    N, C, H, W = imgs.shape
    h, w = H // p, W // p
    x = imgs.reshape(N, C, h, p, w, p)
    x = x.transpose(0, 2, 4, 1, 3, 5)  # N, h, w, C, p, p
    return x.reshape(N, h * w, C * p * p)


def patchify(imgs, p):
    """Same as MaskedAutoencoderViT.patchify: per-patch order (ph, pw, c)."""
    N, C, H, W = imgs.shape
    h, w = H // p, W // p
    x = imgs.reshape(N, C, h, p, w, p)
    x = jnp.einsum('nchpwq->nhwpqc', x)
    return x.reshape(N, h * w, p * p * C)


def mae_forward(params, imgs, key):
    N = imgs.shape[0]
    L = NUM_PATCHES
    b_img = _pick_images_per_block(N)
    nblk = N // b_img

    # ---- random masking ids (glue) ----
    # TODO(synk): torch.rand/argsort-based random masking (data-dependent sort) has no
    # clean Pallas equivalent; it stays in JAX, only ids_keep enters the kernel (SMEM).
    noise = jax.random.uniform(key, (N, L), jnp.float32)
    ids_shuffle = jnp.argsort(noise, axis=1)
    ids_keep = ids_shuffle[:, :LEN_KEEP].astype(jnp.int32)
    mask = jnp.ones((N, L), jnp.float32)
    mask = mask.at[jnp.arange(N)[:, None], ids_keep].set(0.0)   # == gather(mask, ids_restore)

    patches_conv = extract_patches_conv_order(imgs, PATCH)       # (N, L, 48) for patch_embed
    target = patchify(imgs, PATCH)                               # (N, L, 48) for the loss

    pos_tiled = jnp.tile(params['pos_embed'], (b_img, 1))        # (b_img*L, EMBED_DIM)
    dec_pos_tiled = jnp.tile(params['dec_pos_embed'], (b_img, 1))  # (b_img*L, DEC_EMBED_DIM)

    weights = ([pos_tiled, params['patch_w'], params['patch_b'][None, :]]
               + _block_weight_stack(params['enc_blocks'])
               + [params['norm_w'][None, :], params['norm_b'][None, :],
                  params['dec_embed_w'], params['dec_embed_b'][None, :],
                  params['mask_token'].reshape(1, DEC_EMBED_DIM), dec_pos_tiled]
               + _block_weight_stack(params['dec_blocks'])
               + [params['dec_norm_w'][None, :], params['dec_norm_b'][None, :],
                  params['dec_pred_w'], params['dec_pred_b'][None, :]])

    def per_block(arr):
        return pl.BlockSpec((b_img,) + tuple(arr.shape[1:]), lambda n, ids: (n, 0, 0))

    def full(arr):
        zeros = (0,) * arr.ndim
        return pl.BlockSpec(tuple(arr.shape), lambda n, ids: zeros)

    in_specs = ([per_block(patches_conv), per_block(target)]
                + [full(w) for w in weights])

    pred, loss_parts = pl.pallas_call(
        _mae_kernel,
        grid_spec=pltpu.PrefetchScalarGridSpec(
            num_scalar_prefetch=1,
            grid=(nblk,),
            in_specs=in_specs,
            out_specs=(pl.BlockSpec((b_img, L, PATCH_DIM), lambda n, ids: (n, 0, 0)),
                       pl.BlockSpec((1, 1, 1), lambda n, ids: (n, 0, 0))),
            scratch_shapes=[pltpu.VMEM((b_img * L, EMBED_DIM), jnp.float32),
                            pltpu.VMEM((b_img * LEN_KEEP, EMBED_DIM), jnp.float32),
                            pltpu.VMEM((b_img * LEN_KEEP, DEC_EMBED_DIM), jnp.float32),
                            pltpu.VMEM((b_img * L, DEC_EMBED_DIM), jnp.float32)]),
        out_shape=(jax.ShapeDtypeStruct((N, L, PATCH_DIM), jnp.float32),
                   jax.ShapeDtypeStruct((nblk, 1, 1), jnp.float32)),
        compiler_params=pltpu.CompilerParams(dimension_semantics=("parallel",)),
    )(ids_keep, patches_conv, target, *weights)

    # Matches the provided forward_loss: loss.mean(-1).sum() / (N * L)
    loss = jnp.sum(loss_parts) / (N * L)
    return loss, pred, mask


# ================================ deterministic init ================================
def xavier_uniform(key, fan_in, fan_out):
    bound = float(np.sqrt(6.0 / (fan_in + fan_out)))
    return jax.random.uniform(key, (fan_in, fan_out), jnp.float32, -bound, bound)


def init_block_params(key, dim, mlp_ratio):
    hidden = int(dim * mlp_ratio)
    ks = jax.random.split(key, 4)
    return dict(
        norm1_w=jnp.ones((dim,), jnp.float32), norm1_b=jnp.zeros((dim,), jnp.float32),
        qkv_w=xavier_uniform(ks[0], dim, 3 * dim), qkv_b=jnp.zeros((3 * dim,), jnp.float32),
        proj_w=xavier_uniform(ks[1], dim, dim), proj_b=jnp.zeros((dim,), jnp.float32),
        norm2_w=jnp.ones((dim,), jnp.float32), norm2_b=jnp.zeros((dim,), jnp.float32),
        fc1_w=xavier_uniform(ks[2], dim, hidden), fc1_b=jnp.zeros((hidden,), jnp.float32),
        fc2_w=xavier_uniform(ks[3], hidden, dim), fc2_b=jnp.zeros((dim,), jnp.float32),
    )


def init_params(key):
    keys = jax.random.split(key, 4)
    patch_in = IN_CHANS * PATCH * PATCH
    grid = IMG_SIZE // PATCH
    return dict(
        patch_w=xavier_uniform(keys[0], patch_in, EMBED_DIM),
        patch_b=jnp.zeros((EMBED_DIM,), jnp.float32),
        pos_embed=jnp.asarray(get_2d_sincos_pos_embed(EMBED_DIM, grid)),
        norm_w=jnp.ones((EMBED_DIM,), jnp.float32),
        norm_b=jnp.zeros((EMBED_DIM,), jnp.float32),
        dec_embed_w=xavier_uniform(keys[1], EMBED_DIM, DEC_EMBED_DIM),
        dec_embed_b=jnp.zeros((DEC_EMBED_DIM,), jnp.float32),
        mask_token=0.02 * jax.random.normal(keys[2], (1, 1, DEC_EMBED_DIM), jnp.float32),
        dec_pos_embed=jnp.asarray(get_2d_sincos_pos_embed(DEC_EMBED_DIM, grid)),
        dec_norm_w=jnp.ones((DEC_EMBED_DIM,), jnp.float32),
        dec_norm_b=jnp.zeros((DEC_EMBED_DIM,), jnp.float32),
        dec_pred_w=xavier_uniform(keys[3], DEC_EMBED_DIM, PATCH * PATCH * IN_CHANS),
        dec_pred_b=jnp.zeros((PATCH * PATCH * IN_CHANS,), jnp.float32),
        enc_blocks=[init_block_params(jax.random.fold_in(key, 100 + i), EMBED_DIM, MLP_RATIO)
                    for i in range(DEPTH)],
        dec_blocks=[init_block_params(jax.random.fold_in(key, 200 + i), DEC_EMBED_DIM, MLP_RATIO)
                    for i in range(DEC_DEPTH)],
    )


if __name__ == "__main__":
    root = jax.random.PRNGKey(0)
    pkey, ikey, mkey = jax.random.split(root, 3)
    params = init_params(pkey)
    imgs = jax.random.normal(ikey, (2, IN_CHANS, IMG_SIZE, IMG_SIZE), jnp.float32)

    fwd = jax.jit(mae_forward)
    loss, pred, mask = fwd(params, imgs, mkey)
    jax.block_until_ready((loss, pred, mask))

    assert pred.shape == (2, NUM_PATCHES, PATCH * PATCH * IN_CHANS)
    assert mask.shape == (2, NUM_PATCHES)
    assert np.isfinite(float(loss))
    print("KERNEL_OK")
</pallas_src>

<mosaic_0001>
module attributes {stable_mosaic.version = 11 : i64} {
  func.func @_mae_kernel(%arg0: i32, %arg1: memref<2x4xi32, #tpu.memory_space<smem>>, %arg2: memref<1x16x48xf32, #tpu.memory_space<vmem>>, %arg3: memref<1x16x48xf32, #tpu.memory_space<vmem>>, %arg4: memref<16x32xf32, #tpu.memory_space<vmem>>, %arg5: memref<48x32xf32, #tpu.memory_space<vmem>>, %arg6: memref<1x32xf32, #tpu.memory_space<vmem>>, %arg7: memref<2x1x32xf32, #tpu.memory_space<vmem>>, %arg8: memref<2x1x32xf32, #tpu.memory_space<vmem>>, %arg9: memref<2x32x96xf32, #tpu.memory_space<vmem>>, %arg10: memref<2x1x96xf32, #tpu.memory_space<vmem>>, %arg11: memref<2x32x32xf32, #tpu.memory_space<vmem>>, %arg12: memref<2x1x32xf32, #tpu.memory_space<vmem>>, %arg13: memref<2x1x32xf32, #tpu.memory_space<vmem>>, %arg14: memref<2x1x32xf32, #tpu.memory_space<vmem>>, %arg15: memref<2x32x128xf32, #tpu.memory_space<vmem>>, %arg16: memref<2x1x128xf32, #tpu.memory_space<vmem>>, %arg17: memref<2x128x32xf32, #tpu.memory_space<vmem>>, %arg18: memref<2x1x32xf32, #tpu.memory_space<vmem>>, %arg19: memref<1x32xf32, #tpu.memory_space<vmem>>, %arg20: memref<1x32xf32, #tpu.memory_space<vmem>>, %arg21: memref<32x16xf32, #tpu.memory_space<vmem>>, %arg22: memref<1x16xf32, #tpu.memory_space<vmem>>, %arg23: memref<1x16xf32, #tpu.memory_space<vmem>>, %arg24: memref<16x16xf32, #tpu.memory_space<vmem>>, %arg25: memref<1x1x16xf32, #tpu.memory_space<vmem>>, %arg26: memref<1x1x16xf32, #tpu.memory_space<vmem>>, %arg27: memref<1x16x48xf32, #tpu.memory_space<vmem>>, %arg28: memref<1x1x48xf32, #tpu.memory_space<vmem>>, %arg29: memref<1x16x16xf32, #tpu.memory_space<vmem>>, %arg30: memref<1x1x16xf32, #tpu.memory_space<vmem>>, %arg31: memref<1x1x16xf32, #tpu.memory_space<vmem>>, %arg32: memref<1x1x16xf32, #tpu.memory_space<vmem>>, %arg33: memref<1x16x64xf32, #tpu.memory_space<vmem>>, %arg34: memref<1x1x64xf32, #tpu.memory_space<vmem>>, %arg35: memref<1x64x16xf32, #tpu.memory_space<vmem>>, %arg36: memref<1x1x16xf32, #tpu.memory_space<vmem>>, %arg37: memref<1x16xf32, #tpu.memory_space<vmem>>, %arg38: memref<1x16xf32, #tpu.memory_space<vmem>>, %arg39: memref<16x48xf32, #tpu.memory_space<vmem>>, %arg40: memref<1x48xf32, #tpu.memory_space<vmem>>, %arg41: memref<1x16x48xf32, #tpu.memory_space<vmem>>, %arg42: memref<1x1x1xf32, #tpu.memory_space<vmem>>, %arg43: memref<16x32xf32, #tpu.memory_space<vmem>>, %arg44: memref<4x32xf32, #tpu.memory_space<vmem>>, %arg45: memref<4x16xf32, #tpu.memory_space<vmem>>, %arg46: memref<16x16xf32, #tpu.memory_space<vmem>>) attributes {dimension_semantics = [#tpu.dimension_semantics<parallel>], iteration_bounds = array<i64: 2>, scalar_prefetch = 1 : i64, scratch_operands = 4 : i64, tpu.core_type = #tpu.core_type<tc>, window_params = [{transform_indices = @transform_0, window_bounds = array<i64: 1, 16, 48>}, {transform_indices = @transform_1, window_bounds = array<i64: 1, 16, 48>}, {pipeline_mode = #tpu.pipeline_mode<synchronous>, transform_indices = @transform_2, window_bounds = array<i64: 16, 32>}, {pipeline_mode = #tpu.pipeline_mode<synchronous>, transform_indices = @transform_3, window_bounds = array<i64: 48, 32>}, {pipeline_mode = #tpu.pipeline_mode<synchronous>, transform_indices = @transform_4, window_bounds = array<i64: 1, 32>}, {pipeline_mode = #tpu.pipeline_mode<synchronous>, transform_indices = @transform_5, window_bounds = array<i64: 2, 1, 32>}, {pipeline_mode = #tpu.pipeline_mode<synchronous>, transform_indices = @transform_6, window_bounds = array<i64: 2, 1, 32>}, {pipeline_mode = #tpu.pipeline_mode<synchronous>, transform_indices = @transform_7, window_bounds = array<i64: 2, 32, 96>}, {pipeline_mode = #tpu.pipeline_mode<synchronous>, transform_indices = @transform_8, window_bounds = array<i64: 2, 1, 96>}, {pipeline_mode = #tpu.pipeline_mode<synchronous>, transform_indices = @transform_9, window_bounds = array<i64: 2, 32, 32>}, {pipeline_mode = #tpu.pipeline_mode<synchronous>, transform_indices = @transform_10, window_bounds = array<i64: 2, 1, 32>}, {pipeline_mode = #tpu.pipeline_mode<synchronous>, transform_indices = @transform_11, window_bounds = array<i64: 2, 1, 32>}, {pipeline_mode = #tpu.pipeline_mode<synchronous>, transform_indices = @transform_12, window_bounds = array<i64: 2, 1, 32>}, {pipeline_mode = #tpu.pipeline_mode<synchronous>, transform_indices = @transform_13, window_bounds = array<i64: 2, 32, 128>}, {pipeline_mode = #tpu.pipeline_mode<synchronous>, transform_indices = @transform_14, window_bounds = array<i64: 2, 1, 128>}, {pipeline_mode = #tpu.pipeline_mode<synchronous>, transform_indices = @transform_15, window_bounds = array<i64: 2, 128, 32>}, {pipeline_mode = #tpu.pipeline_mode<synchronous>, transform_indices = @transform_16, window_bounds = array<i64: 2, 1, 32>}, {pipeline_mode = #tpu.pipeline_mode<synchronous>, transform_indices = @transform_17, window_bounds = array<i64: 1, 32>}, {pipeline_mode = #tpu.pipeline_mode<synchronous>, transform_indices = @transform_18, window_bounds = array<i64: 1, 32>}, {pipeline_mode = #tpu.pipeline_mode<synchronous>, transform_indices = @transform_19, window_bounds = array<i64: 32, 16>}, {pipeline_mode = #tpu.pipeline_mode<synchronous>, transform_indices = @transform_20, window_bounds = array<i64: 1, 16>}, {pipeline_mode = #tpu.pipeline_mode<synchronous>, transform_indices = @transform_21, window_bounds = array<i64: 1, 16>}, {pipeline_mode = #tpu.pipeline_mode<synchronous>, transform_indices = @transform_22, window_bounds = array<i64: 16, 16>}, {pipeline_mode = #tpu.pipeline_mode<synchronous>, transform_indices = @transform_23, window_bounds = array<i64: 1, 1, 16>}, {pipeline_mode = #tpu.pipeline_mode<synchronous>, transform_indices = @transform_24, window_bounds = array<i64: 1, 1, 16>}, {pipeline_mode = #tpu.pipeline_mode<synchronous>, transform_indices = @transform_25, window_bounds = array<i64: 1, 16, 48>}, {pipeline_mode = #tpu.pipeline_mode<synchronous>, transform_indices = @transform_26, window_bounds = array<i64: 1, 1, 48>}, {pipeline_mode = #tpu.pipeline_mode<synchronous>, transform_indices = @transform_27, window_bounds = array<i64: 1, 16, 16>}, {pipeline_mode = #tpu.pipeline_mode<synchronous>, transform_indices = @transform_28, window_bounds = array<i64: 1, 1, 16>}, {pipeline_mode = #tpu.pipeline_mode<synchronous>, transform_indices = @transform_29, window_bounds = array<i64: 1, 1, 16>}, {pipeline_mode = #tpu.pipeline_mode<synchronous>, transform_indices = @transform_30, window_bounds = array<i64: 1, 1, 16>}, {pipeline_mode = #tpu.pipeline_mode<synchronous>, transform_indices = @transform_31, window_bounds = array<i64: 1, 16, 64>}, {pipeline_mode = #tpu.pipeline_mode<synchronous>, transform_indices = @transform_32, window_bounds = array<i64: 1, 1, 64>}, {pipeline_mode = #tpu.pipeline_mode<synchronous>, transform_indices = @transform_33, window_bounds = array<i64: 1, 64, 16>}, {pipeline_mode = #tpu.pipeline_mode<synchronous>, transform_indices = @transform_34, window_bounds = array<i64: 1, 1, 16>}, {pipeline_mode = #tpu.pipeline_mode<synchronous>, transform_indices = @transform_35, window_bounds = array<i64: 1, 16>}, {pipeline_mode = #tpu.pipeline_mode<synchronous>, transform_indices = @transform_36, window_bounds = array<i64: 1, 16>}, {pipeline_mode = #tpu.pipeline_mode<synchronous>, transform_indices = @transform_37, window_bounds = array<i64: 16, 48>}, {pipeline_mode = #tpu.pipeline_mode<synchronous>, transform_indices = @transform_38, window_bounds = array<i64: 1, 48>}, {transform_indices = @transform_39, window_bounds = array<i64: 1, 16, 48>}, {transform_indices = @transform_40, window_bounds = array<i64: 1, 1, 1>}]} {
    %c1_i32 = arith.constant 1 : i32
    %0 = arith.muli %arg0, %c1_i32 : i32
    %c0_i32 = arith.constant 0 : i32
    %1 = arith.addi %0, %c0_i32 : i32
    %2 = arith.index_cast %1 : i32 to index
    %c0 = arith.constant 0 : index
    %3 = memref.load %arg1[%2, %c0] : memref<2x4xi32, #tpu.memory_space<smem>>
    %c0_i32_0 = arith.constant 0 : i32
    %4 = arith.addi %0, %c0_i32_0 : i32
    %5 = arith.index_cast %4 : i32 to index
    %c1 = arith.constant 1 : index
    %6 = memref.load %arg1[%5, %c1] : memref<2x4xi32, #tpu.memory_space<smem>>
    %c0_i32_1 = arith.constant 0 : i32
    %7 = arith.addi %0, %c0_i32_1 : i32
    %8 = arith.index_cast %7 : i32 to index
    %c2 = arith.constant 2 : index
    %9 = memref.load %arg1[%8, %c2] : memref<2x4xi32, #tpu.memory_space<smem>>
    %c0_i32_2 = arith.constant 0 : i32
    %10 = arith.addi %0, %c0_i32_2 : i32
    %11 = arith.index_cast %10 : i32 to index
    %c3 = arith.constant 3 : index
    %12 = memref.load %arg1[%11, %c3] : memref<2x4xi32, #tpu.memory_space<smem>>
    %c0_3 = arith.constant 0 : index
    %c0_4 = arith.constant 0 : index
    %c0_5 = arith.constant 0 : index
    %13 = vector.load %arg2[%c0_3, %c0_4, %c0_5] : memref<1x16x48xf32, #tpu.memory_space<vmem>>, vector<1x16x48xf32>
    %14 = vector.shape_cast %13 : vector<1x16x48xf32> to vector<16x48xf32>
    %c0_6 = arith.constant 0 : index
    %c0_7 = arith.constant 0 : index
    %15 = vector.load %arg5[%c0_6, %c0_7] : memref<48x32xf32, #tpu.memory_space<vmem>>, vector<48x32xf32>
    %cst = arith.constant dense<0.000000e+00> : vector<16x32xf32>
    %16 = tpu.matmul %14, %15, %cst {dimension_numbers = #tpu.dot_dimension_numbers<[1], [0], [0], [1], [0, 0, 1, 1], [], []>} : vector<16x48xf32>, vector<48x32xf32>, vector<16x32xf32> -> vector<16x32xf32>
    %c0_8 = arith.constant 0 : index
    %c0_9 = arith.constant 0 : index
    %17 = vector.load %arg6[%c0_8, %c0_9] : memref<1x32xf32, #tpu.memory_space<vmem>>, vector<1x32xf32>
    %18 = vector.broadcast %17 : vector<1x32xf32> to vector<16x32xf32>
    %19 = arith.addf %16, %18 : vector<16x32xf32>
    %c0_10 = arith.constant 0 : index
    %c0_11 = arith.constant 0 : index
    %20 = vector.load %arg4[%c0_10, %c0_11] : memref<16x32xf32, #tpu.memory_space<vmem>>, vector<16x32xf32>
    %21 = arith.addf %19, %20 : vector<16x32xf32>
    %c0_12 = arith.constant 0 : index
    %c0_13 = arith.constant 0 : index
    %22 = vector.load %arg43[%c0_12, %c0_13] : memref<16x32xf32, #tpu.memory_space<vmem>>, vector<16x32xf32>
    tpu.vector_store %arg43[%c0_12, %c0_13], %21 {strides = array<i32>} : memref<16x32xf32, #tpu.memory_space<vmem>>, vector<16x32xf32>,
    %c0_i32_14 = arith.constant 0 : i32
    %23 = arith.addi %c0_i32_14, %3 : i32
    %24 = arith.index_cast %23 : i32 to index
    %c0_15 = arith.constant 0 : index
    %25 = vector.load %arg43[%24, %c0_15] : memref<16x32xf32, #tpu.memory_space<vmem>>, vector<1x32xf32>
    %c0_16 = arith.constant 0 : index
    %c0_17 = arith.constant 0 : index
    %26 = vector.load %arg44[%c0_16, %c0_17] : memref<4x32xf32, #tpu.memory_space<vmem>>, vector<1x32xf32>
    tpu.vector_store %arg44[%c0_16, %c0_17], %25 {strides = array<i32>} : memref<4x32xf32, #tpu.memory_space<vmem>>, vector<1x32xf32>,
    %c0_i32_18 = arith.constant 0 : i32
    %27 = arith.addi %c0_i32_18, %6 : i32
    %28 = arith.index_cast %27 : i32 to index
    %c0_19 = arith.constant 0 : index
    %29 = vector.load %arg43[%28, %c0_19] : memref<16x32xf32, #tpu.memory_space<vmem>>, vector<1x32xf32>
    %c1_20 = arith.constant 1 : index
    %c0_21 = arith.constant 0 : index
    %30 = vector.load %arg44[%c1_20, %c0_21] : memref<4x32xf32, #tpu.memory_space<vmem>>, vector<1x32xf32>
    tpu.vector_store %arg44[%c1_20, %c0_21], %29 {strides = array<i32>} : memref<4x32xf32, #tpu.memory_space<vmem>>, vector<1x32xf32>,
    %c0_i32_22 = arith.constant 0 : i32
    %31 = arith.addi %c0_i32_22, %9 : i32
    %32 = arith.index_cast %31 : i32 to index
    %c0_23 = arith.constant 0 : index
    %33 = vector.load %arg43[%32, %c0_23] : memref<16x32xf32, #tpu.memory_space<vmem>>, vector<1x32xf32>
    %c2_24 = arith.constant 2 : index
    %c0_25 = arith.constant 0 : index
    %34 = vector.load %arg44[%c2_24, %c0_25] : memref<4x32xf32, #tpu.memory_space<vmem>>, vector<1x32xf32>
    tpu.vector_store %arg44[%c2_24, %c0_25], %33 {strides = array<i32>} : memref<4x32xf32, #tpu.memory_space<vmem>>, vector<1x32xf32>,
    %c0_i32_26 = arith.constant 0 : i32
    %35 = arith.addi %c0_i32_26, %12 : i32
    %36 = arith.index_cast %35 : i32 to index
    %c0_27 = arith.constant 0 : index
    %37 = vector.load %arg43[%36, %c0_27] : memref<16x32xf32, #tpu.memory_space<vmem>>, vector<1x32xf32>
    %c3_28 = arith.constant 3 : index
    %c0_29 = arith.constant 0 : index
    %38 = vector.load %arg44[%c3_28, %c0_29] : memref<4x32xf32, #tpu.memory_space<vmem>>, vector<1x32xf32>
    tpu.vector_store %arg44[%c3_28, %c0_29], %37 {strides = array<i32>} : memref<4x32xf32, #tpu.memory_space<vmem>>, vector<1x32xf32>,
    %c0_30 = arith.constant 0 : index
    %c0_31 = arith.constant 0 : index
    %39 = vector.load %arg44[%c0_30, %c0_31] : memref<4x32xf32, #tpu.memory_space<vmem>>, vector<4x32xf32>
    %c0_32 = arith.constant 0 : index
    %c0_33 = arith.constant 0 : index
    %c0_34 = arith.constant 0 : index
    %40 = vector.load %arg7[%c0_32, %c0_33, %c0_34] : memref<2x1x32xf32, #tpu.memory_space<vmem>>, vector<1x1x32xf32>
    %41 = vector.shape_cast %40 : vector<1x1x32xf32> to vector<1x32xf32>
    %c0_35 = arith.constant 0 : index
    %c0_36 = arith.constant 0 : index
    %c0_37 = arith.constant 0 : index
    %42 = vector.load %arg8[%c0_35, %c0_36, %c0_37] : memref<2x1x32xf32, #tpu.memory_space<vmem>>, vector<1x1x32xf32>
    %43 = vector.shape_cast %42 : vector<1x1x32xf32> to vector<1x32xf32>
    %cst_38 = arith.constant dense<0.000000e+00> : vector<4xf32>
    %44 = vector.multi_reduction <add>, %39, %cst_38 [1] : vector<4x32xf32> to vector<4xf32>
    %45 = vector.shape_cast %44 : vector<4xf32> to vector<4x1xf32>
    %cst_39 = arith.constant 3.200000e+01 : f32
    %46 = vector.broadcast %cst_39 : f32 to vector<4x1xf32>
    %47 = arith.divf %45, %46 : vector<4x1xf32>
    %48 = vector.broadcast %47 : vector<4x1xf32> to vector<4x32xf32>
    %49 = arith.subf %39, %48 : vector<4x32xf32>
    %50 = arith.mulf %49, %49 : vector<4x32xf32>
    %cst_40 = arith.constant dense<0.000000e+00> : vector<4xf32>
    %51 = vector.multi_reduction <add>, %50, %cst_40 [1] : vector<4x32xf32> to vector<4xf32>
    %52 = vector.shape_cast %51 : vector<4xf32> to vector<4x1xf32>
    %cst_41 = arith.constant 3.200000e+01 : f32
    %53 = vector.broadcast %cst_41 : f32 to vector<4x1xf32>
    %54 = arith.divf %52, %53 : vector<4x1xf32>
    %55 = vector.broadcast %47 : vector<4x1xf32> to vector<4x32xf32>
    %56 = arith.subf %39, %55 : vector<4x32xf32>
    %cst_42 = arith.constant 9.99999974E-6 : f32
    %57 = vector.broadcast %cst_42 : f32 to vector<4x1xf32>
    %58 = arith.addf %54, %57 : vector<4x1xf32>
    %59 = math.rsqrt %58 : vector<4x1xf32>
    %60 = vector.broadcast %59 : vector<4x1xf32> to vector<4x32xf32>
    %61 = arith.mulf %56, %60 : vector<4x32xf32>
    %62 = vector.broadcast %41 : vector<1x32xf32> to vector<4x32xf32>
    %63 = arith.mulf %61, %62 : vector<4x32xf32>
    %64 = vector.broadcast %43 : vector<1x32xf32> to vector<4x32xf32>
    %65 = arith.addf %63, %64 : vector<4x32xf32>
    %c0_43 = arith.constant 0 : index
    %c0_44 = arith.constant 0 : index
    %c0_45 = arith.constant 0 : index
    %66 = vector.load %arg9[%c0_43, %c0_44, %c0_45] : memref<2x32x96xf32, #tpu.memory_space<vmem>>, vector<1x32x96xf32>
    %67 = vector.shape_cast %66 : vector<1x32x96xf32> to vector<32x96xf32>
    %cst_46 = arith.constant dense<0.000000e+00> : vector<4x96xf32>
    %68 = tpu.matmul %65, %67, %cst_46 {dimension_numbers = #tpu.dot_dimension_numbers<[1], [0], [0], [1], [0, 0, 1, 1], [], []>} : vector<4x32xf32>, vector<32x96xf32>, vector<4x96xf32> -> vector<4x96xf32>
    %c0_47 = arith.constant 0 : index
    %c0_48 = arith.constant 0 : index
    %c0_49 = arith.constant 0 : index
    %69 = vector.load %arg10[%c0_47, %c0_48, %c0_49] : memref<2x1x96xf32, #tpu.memory_space<vmem>>, vector<1x1x96xf32>
    %70 = vector.shape_cast %69 : vector<1x1x96xf32> to vector<1x96xf32>
    %71 = vector.broadcast %70 : vector<1x96xf32> to vector<4x96xf32>
    %72 = arith.addf %68, %71 : vector<4x96xf32>
    %73 = vector.extract_strided_slice %72 {offsets = [0, 0], sizes = [4, 8], strides = [1, 1]} : vector<4x96xf32> to vector<4x8xf32>
    %74 = vector.extract_strided_slice %72 {offsets = [0, 32], sizes = [4, 8], strides = [1, 1]} : vector<4x96xf32> to vector<4x8xf32>
    %75 = vector.extract_strided_slice %72 {offsets = [0, 64], sizes = [4, 8], strides = [1, 1]} : vector<4x96xf32> to vector<4x8xf32>
    %cst_50 = arith.constant dense<0.000000e+00> : vector<4x4xf32>
    %76 = tpu.matmul %73, %74, %cst_50 {dimension_numbers = #tpu.dot_dimension_numbers<[1], [1], [0], [0], [0, 0, 1, 0], [], []>} : vector<4x8xf32>, vector<4x8xf32>, vector<4x4xf32> -> vector<4x4xf32>
    %cst_51 = arith.constant 0.353553385 : f32
    %77 = vector.broadcast %cst_51 : f32 to vector<4x4xf32>
    %78 = arith.mulf %76, %77 : vector<4x4xf32>
    %cst_52 = arith.constant dense<0xFF800000> : vector<4xf32>
    %79 = vector.multi_reduction <maximumf>, %78, %cst_52 [1] : vector<4x4xf32> to vector<4xf32>
    %80 = vector.shape_cast %79 : vector<4xf32> to vector<4x1xf32>
    %81 = vector.broadcast %80 : vector<4x1xf32> to vector<4x4xf32>
    %82 = arith.subf %78, %81 : vector<4x4xf32>
    %83 = math.exp %82 : vector<4x4xf32>
    %cst_53 = arith.constant dense<0.000000e+00> : vector<4xf32>
    %84 = vector.multi_reduction <add>, %83, %cst_53 [1] : vector<4x4xf32> to vector<4xf32>
    %85 = vector.shape_cast %84 : vector<4xf32> to vector<4x1xf32>
    %86 = vector.broadcast %85 : vector<4x1xf32> to vector<4x4xf32>
    %87 = arith.divf %83, %86 : vector<4x4xf32>
    %cst_54 = arith.constant dense<0.000000e+00> : vector<4x8xf32>
    %88 = tpu.matmul %87, %75, %cst_54 {dimension_numbers = #tpu.dot_dimension_numbers<[1], [0], [0], [1], [0, 0, 1, 1], [], []>} : vector<4x4xf32>, vector<4x8xf32>, vector<4x8xf32> -> vector<4x8xf32>
    %89 = vector.extract_strided_slice %72 {offsets = [0, 8], sizes = [4, 8], strides = [1, 1]} : vector<4x96xf32> to vector<4x8xf32>
    %90 = vector.extract_strided_slice %72 {offsets = [0, 40], sizes = [4, 8], strides = [1, 1]} : vector<4x96xf32> to vector<4x8xf32>
    %91 = vector.extract_strided_slice %72 {offsets = [0, 72], sizes = [4, 8], strides = [1, 1]} : vector<4x96xf32> to vector<4x8xf32>
    %cst_55 = arith.constant dense<0.000000e+00> : vector<4x4xf32>
    %92 = tpu.matmul %89, %90, %cst_55 {dimension_numbers = #tpu.dot_dimension_numbers<[1], [1], [0], [0], [0, 0, 1, 0], [], []>} : vector<4x8xf32>, vector<4x8xf32>, vector<4x4xf32> -> vector<4x4xf32>
    %cst_56 = arith.constant 0.353553385 : f32
    %93 = vector.broadcast %cst_56 : f32 to vector<4x4xf32>
    %94 = arith.mulf %92, %93 : vector<4x4xf32>
    %cst_57 = arith.constant dense<0xFF800000> : vector<4xf32>
    %95 = vector.multi_reduction <maximumf>, %94, %cst_57 [1] : vector<4x4xf32> to vector<4xf32>
    %96 = vector.shape_cast %95 : vector<4xf32> to vector<4x1xf32>
    %97 = vector.broadcast %96 : vector<4x1xf32> to vector<4x4xf32>
    %98 = arith.subf %94, %97 : vector<4x4xf32>
    %99 = math.exp %98 : vector<4x4xf32>
    %cst_58 = arith.constant dense<0.000000e+00> : vector<4xf32>
    %100 = vector.multi_reduction <add>, %99, %cst_58 [1] : vector<4x4xf32> to vector<4xf32>
    %101 = vector.shape_cast %100 : vector<4xf32> to vector<4x1xf32>
    %102 = vector.broadcast %101 : vector<4x1xf32> to vector<4x4xf32>
    %103 = arith.divf %99, %102 : vector<4x4xf32>
    %cst_59 = arith.constant dense<0.000000e+00> : vector<4x8xf32>
    %104 = tpu.matmul %103, %91, %cst_59 {dimension_numbers = #tpu.dot_dimension_numbers<[1], [0], [0], [1], [0, 0, 1, 1], [], []>} : vector<4x4xf32>, vector<4x8xf32>, vector<4x8xf32> -> vector<4x8xf32>
    %105 = vector.extract_strided_slice %72 {offsets = [0, 16], sizes = [4, 8], strides = [1, 1]} : vector<4x96xf32> to vector<4x8xf32>
    %106 = vector.extract_strided_slice %72 {offsets = [0, 48], sizes = [4, 8], strides = [1, 1]} : vector<4x96xf32> to vector<4x8xf32>
    %107 = vector.extract_strided_slice %72 {offsets = [0, 80], sizes = [4, 8], strides = [1, 1]} : vector<4x96xf32> to vector<4x8xf32>
    %cst_60 = arith.constant dense<0.000000e+00> : vector<4x4xf32>
    %108 = tpu.matmul %105, %106, %cst_60 {dimension_numbers = #tpu.dot_dimension_numbers<[1], [1], [0], [0], [0, 0, 1, 0], [], []>} : vector<4x8xf32>, vector<4x8xf32>, vector<4x4xf32> -> vector<4x4xf32>
    %cst_61 = arith.constant 0.353553385 : f32
    %109 = vector.broadcast %cst_61 : f32 to vector<4x4xf32>
    %110 = arith.mulf %108, %109 : vector<4x4xf32>
    %cst_62 = arith.constant dense<0xFF800000> : vector<4xf32>
    %111 = vector.multi_reduction <maximumf>, %110, %cst_62 [1] : vector<4x4xf32> to vector<4xf32>
    %112 = vector.shape_cast %111 : vector<4xf32> to vector<4x1xf32>
    %113 = vector.broadcast %112 : vector<4x1xf32> to vector<4x4xf32>
    %114 = arith.subf %110, %113 : vector<4x4xf32>
    %115 = math.exp %114 : vector<4x4xf32>
    %cst_63 = arith.constant dense<0.000000e+00> : vector<4xf32>
    %116 = vector.multi_reduction <add>, %115, %cst_63 [1] : vector<4x4xf32> to vector<4xf32>
    %117 = vector.shape_cast %116 : vector<4xf32> to vector<4x1xf32>
    %118 = vector.broadcast %117 : vector<4x1xf32> to vector<4x4xf32>
    %119 = arith.divf %115, %118 : vector<4x4xf32>
    %cst_64 = arith.constant dense<0.000000e+00> : vector<4x8xf32>
    %120 = tpu.matmul %119, %107, %cst_64 {dimension_numbers = #tpu.dot_dimension_numbers<[1], [0], [0], [1], [0, 0, 1, 1], [], []>} : vector<4x4xf32>, vector<4x8xf32>, vector<4x8xf32> -> vector<4x8xf32>
    %121 = vector.extract_strided_slice %72 {offsets = [0, 24], sizes = [4, 8], strides = [1, 1]} : vector<4x96xf32> to vector<4x8xf32>
    %122 = vector.extract_strided_slice %72 {offsets = [0, 56], sizes = [4, 8], strides = [1, 1]} : vector<4x96xf32> to vector<4x8xf32>
    %123 = vector.extract_strided_slice %72 {offsets = [0, 88], sizes = [4, 8], strides = [1, 1]} : vector<4x96xf32> to vector<4x8xf32>
    %cst_65 = arith.constant dense<0.000000e+00> : vector<4x4xf32>
    %124 = tpu.matmul %121, %122, %cst_65 {dimension_numbers = #tpu.dot_dimension_numbers<[1], [1], [0], [0], [0, 0, 1, 0], [], []>} : vector<4x8xf32>, vector<4x8xf32>, vector<4x4xf32> -> vector<4x4xf32>
    %cst_66 = arith.constant 0.353553385 : f32
    %125 = vector.broadcast %cst_66 : f32 to vector<4x4xf32>
    %126 = arith.mulf %124, %125 : vector<4x4xf32>
    %cst_67 = arith.constant dense<0xFF800000> : vector<4xf32>
    %127 = vector.multi_reduction <maximumf>, %126, %cst_67 [1] : vector<4x4xf32> to vector<4xf32>
    %128 = vector.shape_cast %127 : vector<4xf32> to vector<4x1xf32>
    %129 = vector.broadcast %128 : vector<4x1xf32> to vector<4x4xf32>
    %130 = arith.subf %126, %129 : vector<4x4xf32>
    %131 = math.exp %130 : vector<4x4xf32>
    %cst_68 = arith.constant dense<0.000000e+00> : vector<4xf32>
    %132 = vector.multi_reduction <add>, %131, %cst_68 [1] : vector<4x4xf32> to vector<4xf32>
    %133 = vector.shape_cast %132 : vector<4xf32> to vector<4x1xf32>
    %134 = vector.broadcast %133 : vector<4x1xf32> to vector<4x4xf32>
    %135 = arith.divf %131, %134 : vector<4x4xf32>
    %cst_69 = arith.constant dense<0.000000e+00> : vector<4x8xf32>
    %136 = tpu.matmul %135, %123, %cst_69 {dimension_numbers = #tpu.dot_dimension_numbers<[1], [0], [0], [1], [0, 0, 1, 1], [], []>} : vector<4x4xf32>, vector<4x8xf32>, vector<4x8xf32> -> vector<4x8xf32>
    %137 = tpu.concatenate %88, %104, %120, %136 in 1 : vector<4x8xf32>, vector<4x8xf32>, vector<4x8xf32>, vector<4x8xf32> -> vector<4x32xf32>
    %c0_70 = arith.constant 0 : index
    %c0_71 = arith.constant 0 : index
    %c0_72 = arith.constant 0 : index
    %138 = vector.load %arg11[%c0_70, %c0_71, %c0_72] : memref<2x32x32xf32, #tpu.memory_space<vmem>>, vector<1x32x32xf32>
    %139 = vector.shape_cast %138 : vector<1x32x32xf32> to vector<32x32xf32>
    %cst_73 = arith.constant dense<0.000000e+00> : vector<4x32xf32>
    %140 = tpu.matmul %137, %139, %cst_73 {dimension_numbers = #tpu.dot_dimension_numbers<[1], [0], [0], [1], [0, 0, 1, 1], [], []>} : vector<4x32xf32>, vector<32x32xf32>, vector<4x32xf32> -> vector<4x32xf32>
    %141 = arith.addf %39, %140 : vector<4x32xf32>
    %c0_74 = arith.constant 0 : index
    %c0_75 = arith.constant 0 : index
    %c0_76 = arith.constant 0 : index
    %142 = vector.load %arg12[%c0_74, %c0_75, %c0_76] : memref<2x1x32xf32, #tpu.memory_space<vmem>>, vector<1x1x32xf32>
    %143 = vector.shape_cast %142 : vector<1x1x32xf32> to vector<1x32xf32>
    %144 = vector.broadcast %143 : vector<1x32xf32> to vector<4x32xf32>
    %145 = arith.addf %141, %144 : vector<4x32xf32>
    %c0_77 = arith.constant 0 : index
    %c0_78 = arith.constant 0 : index
    %c0_79 = arith.constant 0 : index
    %146 = vector.load %arg13[%c0_77, %c0_78, %c0_79] : memref<2x1x32xf32, #tpu.memory_space<vmem>>, vector<1x1x32xf32>
    %147 = vector.shape_cast %146 : vector<1x1x32xf32> to vector<1x32xf32>
    %c0_80 = arith.constant 0 : index
    %c0_81 = arith.constant 0 : index
    %c0_82 = arith.constant 0 : index
    %148 = vector.load %arg14[%c0_80, %c0_81, %c0_82] : memref<2x1x32xf32, #tpu.memory_space<vmem>>, vector<1x1x32xf32>
    %149 = vector.shape_cast %148 : vector<1x1x32xf32> to vector<1x32xf32>
    %cst_83 = arith.constant dense<0.000000e+00> : vector<4xf32>
    %150 = vector.multi_reduction <add>, %145, %cst_83 [1] : vector<4x32xf32> to vector<4xf32>
    %151 = vector.shape_cast %150 : vector<4xf32> to vector<4x1xf32>
    %cst_84 = arith.constant 3.200000e+01 : f32
    %152 = vector.broadcast %cst_84 : f32 to vector<4x1xf32>
    %153 = arith.divf %151, %152 : vector<4x1xf32>
    %154 = vector.broadcast %153 : vector<4x1xf32> to vector<4x32xf32>
    %155 = arith.subf %145, %154 : vector<4x32xf32>
    %156 = arith.mulf %155, %155 : vector<4x32xf32>
    %cst_85 = arith.constant dense<0.000000e+00> : vector<4xf32>
    %157 = vector.multi_reduction <add>, %156, %cst_85 [1] : vector<4x32xf32> to vector<4xf32>
    %158 = vector.shape_cast %157 : vector<4xf32> to vector<4x1xf32>
    %cst_86 = arith.constant 3.200000e+01 : f32
    %159 = vector.broadcast %cst_86 : f32 to vector<4x1xf32>
    %160 = arith.divf %158, %159 : vector<4x1xf32>
    %161 = vector.broadcast %153 : vector<4x1xf32> to vector<4x32xf32>
    %162 = arith.subf %145, %161 : vector<4x32xf32>
    %cst_87 = arith.constant 9.99999974E-6 : f32
    %163 = vector.broadcast %cst_87 : f32 to vector<4x1xf32>
    %164 = arith.addf %160, %163 : vector<4x1xf32>
    %165 = math.rsqrt %164 : vector<4x1xf32>
    %166 = vector.broadcast %165 : vector<4x1xf32> to vector<4x32xf32>
    %167 = arith.mulf %162, %166 : vector<4x32xf32>
    %168 = vector.broadcast %147 : vector<1x32xf32> to vector<4x32xf32>
    %169 = arith.mulf %167, %168 : vector<4x32xf32>
    %170 = vector.broadcast %149 : vector<1x32xf32> to vector<4x32xf32>
    %171 = arith.addf %169, %170 : vector<4x32xf32>
    %c0_88 = arith.constant 0 : index
    %c0_89 = arith.constant 0 : index
    %c0_90 = arith.constant 0 : index
    %172 = vector.load %arg15[%c0_88, %c0_89, %c0_90] : memref<2x32x128xf32, #tpu.memory_space<vmem>>, vector<1x32x128xf32>
    %173 = vector.shape_cast %172 : vector<1x32x128xf32> to vector<32x128xf32>
    %cst_91 = arith.constant dense<0.000000e+00> : vector<4x128xf32>
    %174 = tpu.matmul %171, %173, %cst_91 {dimension_numbers = #tpu.dot_dimension_numbers<[1], [0], [0], [1], [0, 0, 1, 1], [], []>} : vector<4x32xf32>, vector<32x128xf32>, vector<4x128xf32> -> vector<4x128xf32>
    %c0_92 = arith.constant 0 : index
    %c0_93 = arith.constant 0 : index
    %c0_94 = arith.constant 0 : index
    %175 = vector.load %arg16[%c0_92, %c0_93, %c0_94] : memref<2x1x128xf32, #tpu.memory_space<vmem>>, vector<1x1x128xf32>
    %176 = vector.shape_cast %175 : vector<1x1x128xf32> to vector<1x128xf32>
    %177 = vector.broadcast %176 : vector<1x128xf32> to vector<4x128xf32>
    %178 = arith.addf %174, %177 : vector<4x128xf32>
    %cst_95 = arith.constant 5.000000e-01 : f32
    %179 = vector.broadcast %cst_95 : f32 to vector<4x128xf32>
    %180 = arith.mulf %179, %178 : vector<4x128xf32>
    %cst_96 = arith.constant 0.707106769 : f32
    %181 = vector.broadcast %cst_96 : f32 to vector<4x128xf32>
    %182 = arith.mulf %178, %181 : vector<4x128xf32>
    %cst_97 = arith.constant 4.000000e+00 : f32
    %183 = vector.broadcast %cst_97 : f32 to vector<4x128xf32>
    %184 = arith.minimumf %182, %183 : vector<4x128xf32>
    %cst_98 = arith.constant -4.000000e+00 : f32
    %185 = vector.broadcast %cst_98 : f32 to vector<4x128xf32>
    %186 = arith.maximumf %184, %185 : vector<4x128xf32>
    %187 = arith.mulf %186, %186 : vector<4x128xf32>
    %cst_99 = arith.constant -2.72614237E-10 : f32
    %188 = vector.broadcast %cst_99 : f32 to vector<4x128xf32>
    %189 = arith.mulf %188, %187 : vector<4x128xf32>
    %cst_100 = arith.constant 2.77068146E-8 : f32
    %190 = vector.broadcast %cst_100 : f32 to vector<4x128xf32>
    %191 = arith.addf %189, %190 : vector<4x128xf32>
    %192 = arith.mulf %191, %187 : vector<4x128xf32>
    %cst_101 = arith.constant -2.10102394E-6 : f32
    %193 = vector.broadcast %cst_101 : f32 to vector<4x128xf32>
    %194 = arith.addf %192, %193 : vector<4x128xf32>
    %195 = arith.mulf %194, %187 : vector<4x128xf32>
    %cst_102 = arith.constant -5.69250624E-5 : f32
    %196 = vector.broadcast %cst_102 : f32 to vector<4x128xf32>
    %197 = arith.addf %195, %196 : vector<4x128xf32>
    %198 = arith.mulf %197, %187 : vector<4x128xf32>
    %cst_103 = arith.constant -7.34990637E-4 : f32
    %199 = vector.broadcast %cst_103 : f32 to vector<4x128xf32>
    %200 = arith.addf %198, %199 : vector<4x128xf32>
    %201 = arith.mulf %200, %187 : vector<4x128xf32>
    %cst_104 = arith.constant -2.954600e-03 : f32
    %202 = vector.broadcast %cst_104 : f32 to vector<4x128xf32>
    %203 = arith.addf %201, %202 : vector<4x128xf32>
    %204 = arith.mulf %203, %187 : vector<4x128xf32>
    %cst_105 = arith.constant -0.0160960332 : f32
    %205 = vector.broadcast %cst_105 : f32 to vector<4x128xf32>
    %206 = arith.addf %204, %205 : vector<4x128xf32>
    %207 = arith.mulf %206, %186 : vector<4x128xf32>
    %cst_106 = arith.constant -1.45660715E-5 : f32
    %208 = vector.broadcast %cst_106 : f32 to vector<4x128xf32>
    %209 = arith.mulf %208, %187 : vector<4x128xf32>
    %cst_107 = arith.constant -2.13374049E-4 : f32
    %210 = vector.broadcast %cst_107 : f32 to vector<4x128xf32>
    %211 = arith.addf %209, %210 : vector<4x128xf32>
    %212 = arith.mulf %211, %187 : vector<4x128xf32>
    %cst_108 = arith.constant -0.00168282702 : f32
    %213 = vector.broadcast %cst_108 : f32 to vector<4x128xf32>
    %214 = arith.addf %212, %213 : vector<4x128xf32>
    %215 = arith.mulf %214, %187 : vector<4x128xf32>
    %cst_109 = arith.constant -0.00737332925 : f32
    %216 = vector.broadcast %cst_109 : f32 to vector<4x128xf32>
    %217 = arith.addf %215, %216 : vector<4x128xf32>
    %218 = arith.mulf %217, %187 : vector<4x128xf32>
    %cst_110 = arith.constant -0.0142647391 : f32
    %219 = vector.broadcast %cst_110 : f32 to vector<4x128xf32>
    %220 = arith.addf %218, %219 : vector<4x128xf32>
    %221 = arith.divf %207, %220 : vector<4x128xf32>
    %cst_111 = arith.constant 1.000000e+00 : f32
    %222 = vector.broadcast %cst_111 : f32 to vector<4x128xf32>
    %223 = arith.addf %222, %221 : vector<4x128xf32>
    %224 = arith.mulf %180, %223 : vector<4x128xf32>
    %c0_112 = arith.constant 0 : index
    %c0_113 = arith.constant 0 : index
    %c0_114 = arith.constant 0 : index
    %225 = vector.load %arg17[%c0_112, %c0_113, %c0_114] : memref<2x128x32xf32, #tpu.memory_space<vmem>>, vector<1x128x32xf32>
    %226 = vector.shape_cast %225 : vector<1x128x32xf32> to vector<128x32xf32>
    %cst_115 = arith.constant dense<0.000000e+00> : vector<4x32xf32>
    %227 = tpu.matmul %224, %226, %cst_115 {dimension_numbers = #tpu.dot_dimension_numbers<[1], [0], [0], [1], [0, 0, 1, 1], [], []>} : vector<4x128xf32>, vector<128x32xf32>, vector<4x32xf32> -> vector<4x32xf32>
    %228 = arith.addf %145, %227 : vector<4x32xf32>
    %c0_116 = arith.constant 0 : index
    %c0_117 = arith.constant 0 : index
    %c0_118 = arith.constant 0 : index
    %229 = vector.load %arg18[%c0_116, %c0_117, %c0_118] : memref<2x1x32xf32, #tpu.memory_space<vmem>>, vector<1x1x32xf32>
    %230 = vector.shape_cast %229 : vector<1x1x32xf32> to vector<1x32xf32>
    %231 = vector.broadcast %230 : vector<1x32xf32> to vector<4x32xf32>
    %232 = arith.addf %228, %231 : vector<4x32xf32>
    %c1_119 = arith.constant 1 : index
    %c0_120 = arith.constant 0 : index
    %c0_121 = arith.constant 0 : index
    %233 = vector.load %arg7[%c1_119, %c0_120, %c0_121] : memref<2x1x32xf32, #tpu.memory_space<vmem>>, vector<1x1x32xf32>
    %234 = vector.shape_cast %233 : vector<1x1x32xf32> to vector<1x32xf32>
    %c1_122 = arith.constant 1 : index
    %c0_123 = arith.constant 0 : index
    %c0_124 = arith.constant 0 : index
    %235 = vector.load %arg8[%c1_122, %c0_123, %c0_124] : memref<2x1x32xf32, #tpu.memory_space<vmem>>, vector<1x1x32xf32>
    %236 = vector.shape_cast %235 : vector<1x1x32xf32> to vector<1x32xf32>
    %cst_125 = arith.constant dense<0.000000e+00> : vector<4xf32>
    %237 = vector.multi_reduction <add>, %232, %cst_125 [1] : vector<4x32xf32> to vector<4xf32>
    %238 = vector.shape_cast %237 : vector<4xf32> to vector<4x1xf32>
    %cst_126 = arith.constant 3.200000e+01 : f32
    %239 = vector.broadcast %cst_126 : f32 to vector<4x1xf32>
    %240 = arith.divf %238, %239 : vector<4x1xf32>
    %241 = vector.broadcast %240 : vector<4x1xf32> to vector<4x32xf32>
    %242 = arith.subf %232, %241 : vector<4x32xf32>
    %243 = arith.mulf %242, %242 : vector<4x32xf32>
    %cst_127 = arith.constant dense<0.000000e+00> : vector<4xf32>
    %244 = vector.multi_reduction <add>, %243, %cst_127 [1] : vector<4x32xf32> to vector<4xf32>
    %245 = vector.shape_cast %244 : vector<4xf32> to vector<4x1xf32>
    %cst_128 = arith.constant 3.200000e+01 : f32
    %246 = vector.broadcast %cst_128 : f32 to vector<4x1xf32>
    %247 = arith.divf %245, %246 : vector<4x1xf32>
    %248 = vector.broadcast %240 : vector<4x1xf32> to vector<4x32xf32>
    %249 = arith.subf %232, %248 : vector<4x32xf32>
    %cst_129 = arith.constant 9.99999974E-6 : f32
    %250 = vector.broadcast %cst_129 : f32 to vector<4x1xf32>
    %251 = arith.addf %247, %250 : vector<4x1xf32>
    %252 = math.rsqrt %251 : vector<4x1xf32>
    %253 = vector.broadcast %252 : vector<4x1xf32> to vector<4x32xf32>
    %254 = arith.mulf %249, %253 : vector<4x32xf32>
    %255 = vector.broadcast %234 : vector<1x32xf32> to vector<4x32xf32>
    %256 = arith.mulf %254, %255 : vector<4x32xf32>
    %257 = vector.broadcast %236 : vector<1x32xf32> to vector<4x32xf32>
    %258 = arith.addf %256, %257 : vector<4x32xf32>
    %c1_130 = arith.constant 1 : index
    %c0_131 = arith.constant 0 : index
    %c0_132 = arith.constant 0 : index
    %259 = vector.load %arg9[%c1_130, %c0_131, %c0_132] : memref<2x32x96xf32, #tpu.memory_space<vmem>>, vector<1x32x96xf32>
    %260 = vector.shape_cast %259 : vector<1x32x96xf32> to vector<32x96xf32>
    %cst_133 = arith.constant dense<0.000000e+00> : vector<4x96xf32>
    %261 = tpu.matmul %258, %260, %cst_133 {dimension_numbers = #tpu.dot_dimension_numbers<[1], [0], [0], [1], [0, 0, 1, 1], [], []>} : vector<4x32xf32>, vector<32x96xf32>, vector<4x96xf32> -> vector<4x96xf32>
    %c1_134 = arith.constant 1 : index
    %c0_135 = arith.constant 0 : index
    %c0_136 = arith.constant 0 : index
    %262 = vector.load %arg10[%c1_134, %c0_135, %c0_136] : memref<2x1x96xf32, #tpu.memory_space<vmem>>, vector<1x1x96xf32>
    %263 = vector.shape_cast %262 : vector<1x1x96xf32> to vector<1x96xf32>
    %264 = vector.broadcast %263 : vector<1x96xf32> to vector<4x96xf32>
    %265 = arith.addf %261, %264 : vector<4x96xf32>
    %266 = vector.extract_strided_slice %265 {offsets = [0, 0], sizes = [4, 8], strides = [1, 1]} : vector<4x96xf32> to vector<4x8xf32>
    %267 = vector.extract_strided_slice %265 {offsets = [0, 32], sizes = [4, 8], strides = [1, 1]} : vector<4x96xf32> to vector<4x8xf32>
    %268 = vector.extract_strided_slice %265 {offsets = [0, 64], sizes = [4, 8], strides = [1, 1]} : vector<4x96xf32> to vector<4x8xf32>
    %cst_137 = arith.constant dense<0.000000e+00> : vector<4x4xf32>
    %269 = tpu.matmul %266, %267, %cst_137 {dimension_numbers = #tpu.dot_dimension_numbers<[1], [1], [0], [0], [0, 0, 1, 0], [], []>} : vector<4x8xf32>, vector<4x8xf32>, vector<4x4xf32> -> vector<4x4xf32>
    %cst_138 = arith.constant 0.353553385 : f32
    %270 = vector.broadcast %cst_138 : f32 to vector<4x4xf32>
    %271 = arith.mulf %269, %270 : vector<4x4xf32>
    %cst_139 = arith.constant dense<0xFF800000> : vector<4xf32>
    %272 = vector.multi_reduction <maximumf>, %271, %cst_139 [1] : vector<4x4xf32> to vector<4xf32>
    %273 = vector.shape_cast %272 : vector<4xf32> to vector<4x1xf32>
    %274 = vector.broadcast %273 : vector<4x1xf32> to vector<4x4xf32>
    %275 = arith.subf %271, %274 : vector<4x4xf32>
    %276 = math.exp %275 : vector<4x4xf32>
    %cst_140 = arith.constant dense<0.000000e+00> : vector<4xf32>
    %277 = vector.multi_reduction <add>, %276, %cst_140 [1] : vector<4x4xf32> to vector<4xf32>
    %278 = vector.shape_cast %277 : vector<4xf32> to vector<4x1xf32>
    %279 = vector.broadcast %278 : vector<4x1xf32> to vector<4x4xf32>
    %280 = arith.divf %276, %279 : vector<4x4xf32>
    %cst_141 = arith.constant dense<0.000000e+00> : vector<4x8xf32>
    %281 = tpu.matmul %280, %268, %cst_141 {dimension_numbers = #tpu.dot_dimension_numbers<[1], [0], [0], [1], [0, 0, 1, 1], [], []>} : vector<4x4xf32>, vector<4x8xf32>, vector<4x8xf32> -> vector<4x8xf32>
    %282 = vector.extract_strided_slice %265 {offsets = [0, 8], sizes = [4, 8], strides = [1, 1]} : vector<4x96xf32> to vector<4x8xf32>
    %283 = vector.extract_strided_slice %265 {offsets = [0, 40], sizes = [4, 8], strides = [1, 1]} : vector<4x96xf32> to vector<4x8xf32>
    %284 = vector.extract_strided_slice %265 {offsets = [0, 72], sizes = [4, 8], strides = [1, 1]} : vector<4x96xf32> to vector<4x8xf32>
    %cst_142 = arith.constant dense<0.000000e+00> : vector<4x4xf32>
    %285 = tpu.matmul %282, %283, %cst_142 {dimension_numbers = #tpu.dot_dimension_numbers<[1], [1], [0], [0], [0, 0, 1, 0], [], []>} : vector<4x8xf32>, vector<4x8xf32>, vector<4x4xf32> -> vector<4x4xf32>
    %cst_143 = arith.constant 0.353553385 : f32
    %286 = vector.broadcast %cst_143 : f32 to vector<4x4xf32>
    %287 = arith.mulf %285, %286 : vector<4x4xf32>
    %cst_144 = arith.constant dense<0xFF800000> : vector<4xf32>
    %288 = vector.multi_reduction <maximumf>, %287, %cst_144 [1] : vector<4x4xf32> to vector<4xf32>
    %289 = vector.shape_cast %288 : vector<4xf32> to vector<4x1xf32>
    %290 = vector.broadcast %289 : vector<4x1xf32> to vector<4x4xf32>
    %291 = arith.subf %287, %290 : vector<4x4xf32>
    %292 = math.exp %291 : vector<4x4xf32>
    %cst_145 = arith.constant dense<0.000000e+00> : vector<4xf32>
    %293 = vector.multi_reduction <add>, %292, %cst_145 [1] : vector<4x4xf32> to vector<4xf32>
    %294 = vector.shape_cast %293 : vector<4xf32> to vector<4x1xf32>
    %295 = vector.broadcast %294 : vector<4x1xf32> to vector<4x4xf32>
    %296 = arith.divf %292, %295 : vector<4x4xf32>
    %cst_146 = arith.constant dense<0.000000e+00> : vector<4x8xf32>
    %297 = tpu.matmul %296, %284, %cst_146 {dimension_numbers = #tpu.dot_dimension_numbers<[1], [0], [0], [1], [0, 0, 1, 1], [], []>} : vector<4x4xf32>, vector<4x8xf32>, vector<4x8xf32> -> vector<4x8xf32>
    %298 = vector.extract_strided_slice %265 {offsets = [0, 16], sizes = [4, 8], strides = [1, 1]} : vector<4x96xf32> to vector<4x8xf32>
    %299 = vector.extract_strided_slice %265 {offsets = [0, 48], sizes = [4, 8], strides = [1, 1]} : vector<4x96xf32> to vector<4x8xf32>
    %300 = vector.extract_strided_slice %265 {offsets = [0, 80], sizes = [4, 8], strides = [1, 1]} : vector<4x96xf32> to vector<4x8xf32>
    %cst_147 = arith.constant dense<0.000000e+00> : vector<4x4xf32>
    %301 = tpu.matmul %298, %299, %cst_147 {dimension_numbers = #tpu.dot_dimension_numbers<[1], [1], [0], [0], [0, 0, 1, 0], [], []>} : vector<4x8xf32>, vector<4x8xf32>, vector<4x4xf32> -> vector<4x4xf32>
    %cst_148 = arith.constant 0.353553385 : f32
    %302 = vector.broadcast %cst_148 : f32 to vector<4x4xf32>
    %303 = arith.mulf %301, %302 : vector<4x4xf32>
    %cst_149 = arith.constant dense<0xFF800000> : vector<4xf32>
    %304 = vector.multi_reduction <maximumf>, %303, %cst_149 [1] : vector<4x4xf32> to vector<4xf32>
    %305 = vector.shape_cast %304 : vector<4xf32> to vector<4x1xf32>
    %306 = vector.broadcast %305 : vector<4x1xf32> to vector<4x4xf32>
    %307 = arith.subf %303, %306 : vector<4x4xf32>
    %308 = math.exp %307 : vector<4x4xf32>
    %cst_150 = arith.constant dense<0.000000e+00> : vector<4xf32>
    %309 = vector.multi_reduction <add>, %308, %cst_150 [1] : vector<4x4xf32> to vector<4xf32>
    %310 = vector.shape_cast %309 : vector<4xf32> to vector<4x1xf32>
    %311 = vector.broadcast %310 : vector<4x1xf32> to vector<4x4xf32>
    %312 = arith.divf %308, %311 : vector<4x4xf32>
    %cst_151 = arith.constant dense<0.000000e+00> : vector<4x8xf32>
    %313 = tpu.matmul %312, %300, %cst_151 {dimension_numbers = #tpu.dot_dimension_numbers<[1], [0], [0], [1], [0, 0, 1, 1], [], []>} : vector<4x4xf32>, vector<4x8xf32>, vector<4x8xf32> -> vector<4x8xf32>
    %314 = vector.extract_strided_slice %265 {offsets = [0, 24], sizes = [4, 8], strides = [1, 1]} : vector<4x96xf32> to vector<4x8xf32>
    %315 = vector.extract_strided_slice %265 {offsets = [0, 56], sizes = [4, 8], strides = [1, 1]} : vector<4x96xf32> to vector<4x8xf32>
    %316 = vector.extract_strided_slice %265 {offsets = [0, 88], sizes = [4, 8], strides = [1, 1]} : vector<4x96xf32> to vector<4x8xf32>
    %cst_152 = arith.constant dense<0.000000e+00> : vector<4x4xf32>
    %317 = tpu.matmul %314, %315, %cst_152 {dimension_numbers = #tpu.dot_dimension_numbers<[1], [1], [0], [0], [0, 0, 1, 0], [], []>} : vector<4x8xf32>, vector<4x8xf32>, vector<4x4xf32> -> vector<4x4xf32>
    %cst_153 = arith.constant 0.353553385 : f32
    %318 = vector.broadcast %cst_153 : f32 to vector<4x4xf32>
    %319 = arith.mulf %317, %318 : vector<4x4xf32>
    %cst_154 = arith.constant dense<0xFF800000> : vector<4xf32>
    %320 = vector.multi_reduction <maximumf>, %319, %cst_154 [1] : vector<4x4xf32> to vector<4xf32>
    %321 = vector.shape_cast %320 : vector<4xf32> to vector<4x1xf32>
    %322 = vector.broadcast %321 : vector<4x1xf32> to vector<4x4xf32>
    %323 = arith.subf %319, %322 : vector<4x4xf32>
    %324 = math.exp %323 : vector<4x4xf32>
    %cst_155 = arith.constant dense<0.000000e+00> : vector<4xf32>
    %325 = vector.multi_reduction <add>, %324, %cst_155 [1] : vector<4x4xf32> to vector<4xf32>
    %326 = vector.shape_cast %325 : vector<4xf32> to vector<4x1xf32>
    %327 = vector.broadcast %326 : vector<4x1xf32> to vector<4x4xf32>
    %328 = arith.divf %324, %327 : vector<4x4xf32>
    %cst_156 = arith.constant dense<0.000000e+00> : vector<4x8xf32>
    %329 = tpu.matmul %328, %316, %cst_156 {dimension_numbers = #tpu.dot_dimension_numbers<[1], [0], [0], [1], [0, 0, 1, 1], [], []>} : vector<4x4xf32>, vector<4x8xf32>, vector<4x8xf32> -> vector<4x8xf32>
    %330 = tpu.concatenate %281, %297, %313, %329 in 1 : vector<4x8xf32>, vector<4x8xf32>, vector<4x8xf32>, vector<4x8xf32> -> vector<4x32xf32>
    %c1_157 = arith.constant 1 : index
    %c0_158 = arith.constant 0 : index
    %c0_159 = arith.constant 0 : index
    %331 = vector.load %arg11[%c1_157, %c0_158, %c0_159] : memref<2x32x32xf32, #tpu.memory_space<vmem>>, vector<1x32x32xf32>
    %332 = vector.shape_cast %331 : vector<1x32x32xf32> to vector<32x32xf32>
    %cst_160 = arith.constant dense<0.000000e+00> : vector<4x32xf32>
    %333 = tpu.matmul %330, %332, %cst_160 {dimension_numbers = #tpu.dot_dimension_numbers<[1], [0], [0], [1], [0, 0, 1, 1], [], []>} : vector<4x32xf32>, vector<32x32xf32>, vector<4x32xf32> -> vector<4x32xf32>
    %334 = arith.addf %232, %333 : vector<4x32xf32>
    %c1_161 = arith.constant 1 : index
    %c0_162 = arith.constant 0 : index
    %c0_163 = arith.constant 0 : index
    %335 = vector.load %arg12[%c1_161, %c0_162, %c0_163] : memref<2x1x32xf32, #tpu.memory_space<vmem>>, vector<1x1x32xf32>
    %336 = vector.shape_cast %335 : vector<1x1x32xf32> to vector<1x32xf32>
    %337 = vector.broadcast %336 : vector<1x32xf32> to vector<4x32xf32>
    %338 = arith.addf %334, %337 : vector<4x32xf32>
    %c1_164 = arith.constant 1 : index
    %c0_165 = arith.constant 0 : index
    %c0_166 = arith.constant 0 : index
    %339 = vector.load %arg13[%c1_164, %c0_165, %c0_166] : memref<2x1x32xf32, #tpu.memory_space<vmem>>, vector<1x1x32xf32>
    %340 = vector.shape_cast %339 : vector<1x1x32xf32> to vector<1x32xf32>
    %c1_167 = arith.constant 1 : index
    %c0_168 = arith.constant 0 : index
    %c0_169 = arith.constant 0 : index
    %341 = vector.load %arg14[%c1_167, %c0_168, %c0_169] : memref<2x1x32xf32, #tpu.memory_space<vmem>>, vector<1x1x32xf32>
    %342 = vector.shape_cast %341 : vector<1x1x32xf32> to vector<1x32xf32>
    %cst_170 = arith.constant dense<0.000000e+00> : vector<4xf32>
    %343 = vector.multi_reduction <add>, %338, %cst_170 [1] : vector<4x32xf32> to vector<4xf32>
    %344 = vector.shape_cast %343 : vector<4xf32> to vector<4x1xf32>
    %cst_171 = arith.constant 3.200000e+01 : f32
    %345 = vector.broadcast %cst_171 : f32 to vector<4x1xf32>
    %346 = arith.divf %344, %345 : vector<4x1xf32>
    %347 = vector.broadcast %346 : vector<4x1xf32> to vector<4x32xf32>
    %348 = arith.subf %338, %347 : vector<4x32xf32>
    %349 = arith.mulf %348, %348 : vector<4x32xf32>
    %cst_172 = arith.constant dense<0.000000e+00> : vector<4xf32>
    %350 = vector.multi_reduction <add>, %349, %cst_172 [1] : vector<4x32xf32> to vector<4xf32>
    %351 = vector.shape_cast %350 : vector<4xf32> to vector<4x1xf32>
    %cst_173 = arith.constant 3.200000e+01 : f32
    %352 = vector.broadcast %cst_173 : f32 to vector<4x1xf32>
    %353 = arith.divf %351, %352 : vector<4x1xf32>
    %354 = vector.broadcast %346 : vector<4x1xf32> to vector<4x32xf32>
    %355 = arith.subf %338, %354 : vector<4x32xf32>
    %cst_174 = arith.constant 9.99999974E-6 : f32
    %356 = vector.broadcast %cst_174 : f32 to vector<4x1xf32>
    %357 = arith.addf %353, %356 : vector<4x1xf32>
    %358 = math.rsqrt %357 : vector<4x1xf32>
    %359 = vector.broadcast %358 : vector<4x1xf32> to vector<4x32xf32>
    %360 = arith.mulf %355, %359 : vector<4x32xf32>
    %361 = vector.broadcast %340 : vector<1x32xf32> to vector<4x32xf32>
    %362 = arith.mulf %360, %361 : vector<4x32xf32>
    %363 = vector.broadcast %342 : vector<1x32xf32> to vector<4x32xf32>
    %364 = arith.addf %362, %363 : vector<4x32xf32>
    %c1_175 = arith.constant 1 : index
    %c0_176 = arith.constant 0 : index
    %c0_177 = arith.constant 0 : index
    %365 = vector.load %arg15[%c1_175, %c0_176, %c0_177] : memref<2x32x128xf32, #tpu.memory_space<vmem>>, vector<1x32x128xf32>
    %366 = vector.shape_cast %365 : vector<1x32x128xf32> to vector<32x128xf32>
    %cst_178 = arith.constant dense<0.000000e+00> : vector<4x128xf32>
    %367 = tpu.matmul %364, %366, %cst_178 {dimension_numbers = #tpu.dot_dimension_numbers<[1], [0], [0], [1], [0, 0, 1, 1], [], []>} : vector<4x32xf32>, vector<32x128xf32>, vector<4x128xf32> -> vector<4x128xf32>
    %c1_179 = arith.constant 1 : index
    %c0_180 = arith.constant 0 : index
    %c0_181 = arith.constant 0 : index
    %368 = vector.load %arg16[%c1_179, %c0_180, %c0_181] : memref<2x1x128xf32, #tpu.memory_space<vmem>>, vector<1x1x128xf32>
    %369 = vector.shape_cast %368 : vector<1x1x128xf32> to vector<1x128xf32>
    %370 = vector.broadcast %369 : vector<1x128xf32> to vector<4x128xf32>
    %371 = arith.addf %367, %370 : vector<4x128xf32>
    %cst_182 = arith.constant 5.000000e-01 : f32
    %372 = vector.broadcast %cst_182 : f32 to vector<4x128xf32>
    %373 = arith.mulf %372, %371 : vector<4x128xf32>
    %cst_183 = arith.constant 0.707106769 : f32
    %374 = vector.broadcast %cst_183 : f32 to vector<4x128xf32>
    %375 = arith.mulf %371, %374 : vector<4x128xf32>
    %cst_184 = arith.constant 4.000000e+00 : f32
    %376 = vector.broadcast %cst_184 : f32 to vector<4x128xf32>
    %377 = arith.minimumf %375, %376 : vector<4x128xf32>
    %cst_185 = arith.constant -4.000000e+00 : f32
    %378 = vector.broadcast %cst_185 : f32 to vector<4x128xf32>
    %379 = arith.maximumf %377, %378 : vector<4x128xf32>
    %380 = arith.mulf %379, %379 : vector<4x128xf32>
    %cst_186 = arith.constant -2.72614237E-10 : f32
    %381 = vector.broadcast %cst_186 : f32 to vector<4x128xf32>
    %382 = arith.mulf %381, %380 : vector<4x128xf32>
    %cst_187 = arith.constant 2.77068146E-8 : f32
    %383 = vector.broadcast %cst_187 : f32 to vector<4x128xf32>
    %384 = arith.addf %382, %383 : vector<4x128xf32>
    %385 = arith.mulf %384, %380 : vector<4x128xf32>
    %cst_188 = arith.constant -2.10102394E-6 : f32
    %386 = vector.broadcast %cst_188 : f32 to vector<4x128xf32>
    %387 = arith.addf %385, %386 : vector<4x128xf32>
    %388 = arith.mulf %387, %380 : vector<4x128xf32>
    %cst_189 = arith.constant -5.69250624E-5 : f32
    %389 = vector.broadcast %cst_189 : f32 to vector<4x128xf32>
    %390 = arith.addf %388, %389 : vector<4x128xf32>
    %391 = arith.mulf %390, %380 : vector<4x128xf32>
    %cst_190 = arith.constant -7.34990637E-4 : f32
    %392 = vector.broadcast %cst_190 : f32 to vector<4x128xf32>
    %393 = arith.addf %391, %392 : vector<4x128xf32>
    %394 = arith.mulf %393, %380 : vector<4x128xf32>
    %cst_191 = arith.constant -2.954600e-03 : f32
    %395 = vector.broadcast %cst_191 : f32 to vector<4x128xf32>
    %396 = arith.addf %394, %395 : vector<4x128xf32>
    %397 = arith.mulf %396, %380 : vector<4x128xf32>
    %cst_192 = arith.constant -0.0160960332 : f32
    %398 = vector.broadcast %cst_192 : f32 to vector<4x128xf32>
    %399 = arith.addf %397, %398 : vector<4x128xf32>
    %400 = arith.mulf %399, %379 : vector<4x128xf32>
    %cst_193 = arith.constant -1.45660715E-5 : f32
    %401 = vector.broadcast %cst_193 : f32 to vector<4x128xf32>
    %402 = arith.mulf %401, %380 : vector<4x128xf32>
    %cst_194 = arith.constant -2.13374049E-4 : f32
    %403 = vector.broadcast %cst_194 : f32 to vector<4x128xf32>
    %404 = arith.addf %402, %403 : vector<4x128xf32>
    %405 = arith.mulf %404, %380 : vector<4x128xf32>
    %cst_195 = arith.constant -0.00168282702 : f32
    %406 = vector.broadcast %cst_195 : f32 to vector<4x128xf32>
    %407 = arith.addf %405, %406 : vector<4x128xf32>
    %408 = arith.mulf %407, %380 : vector<4x128xf32>
    %cst_196 = arith.constant -0.00737332925 : f32
    %409 = vector.broadcast %cst_196 : f32 to vector<4x128xf32>
    %410 = arith.addf %408, %409 : vector<4x128xf32>
    %411 = arith.mulf %410, %380 : vector<4x128xf32>
    %cst_197 = arith.constant -0.0142647391 : f32
    %412 = vector.broadcast %cst_197 : f32 to vector<4x128xf32>
    %413 = arith.addf %411, %412 : vector<4x128xf32>
    %414 = arith.divf %400, %413 : vector<4x128xf32>
    %cst_198 = arith.constant 1.000000e+00 : f32
    %415 = vector.broadcast %cst_198 : f32 to vector<4x128xf32>
    %416 = arith.addf %415, %414 : vector<4x128xf32>
    %417 = arith.mulf %373, %416 : vector<4x128xf32>
    %c1_199 = arith.constant 1 : index
    %c0_200 = arith.constant 0 : index
    %c0_201 = arith.constant 0 : index
    %418 = vector.load %arg17[%c1_199, %c0_200, %c0_201] : memref<2x128x32xf32, #tpu.memory_space<vmem>>, vector<1x128x32xf32>
    %419 = vector.shape_cast %418 : vector<1x128x32xf32> to vector<128x32xf32>
    %cst_202 = arith.constant dense<0.000000e+00> : vector<4x32xf32>
    %420 = tpu.matmul %417, %419, %cst_202 {dimension_numbers = #tpu.dot_dimension_numbers<[1], [0], [0], [1], [0, 0, 1, 1], [], []>} : vector<4x128xf32>, vector<128x32xf32>, vector<4x32xf32> -> vector<4x32xf32>
    %421 = arith.addf %338, %420 : vector<4x32xf32>
    %c1_203 = arith.constant 1 : index
    %c0_204 = arith.constant 0 : index
    %c0_205 = arith.constant 0 : index
    %422 = vector.load %arg18[%c1_203, %c0_204, %c0_205] : memref<2x1x32xf32, #tpu.memory_space<vmem>>, vector<1x1x32xf32>
    %423 = vector.shape_cast %422 : vector<1x1x32xf32> to vector<1x32xf32>
    %424 = vector.broadcast %423 : vector<1x32xf32> to vector<4x32xf32>
    %425 = arith.addf %421, %424 : vector<4x32xf32>
    %c0_206 = arith.constant 0 : index
    %c0_207 = arith.constant 0 : index
    %426 = vector.load %arg19[%c0_206, %c0_207] : memref<1x32xf32, #tpu.memory_space<vmem>>, vector<1x32xf32>
    %c0_208 = arith.constant 0 : index
    %c0_209 = arith.constant 0 : index
    %427 = vector.load %arg20[%c0_208, %c0_209] : memref<1x32xf32, #tpu.memory_space<vmem>>, vector<1x32xf32>
    %cst_210 = arith.constant dense<0.000000e+00> : vector<4xf32>
    %428 = vector.multi_reduction <add>, %425, %cst_210 [1] : vector<4x32xf32> to vector<4xf32>
    %429 = vector.shape_cast %428 : vector<4xf32> to vector<4x1xf32>
    %cst_211 = arith.constant 3.200000e+01 : f32
    %430 = vector.broadcast %cst_211 : f32 to vector<4x1xf32>
    %431 = arith.divf %429, %430 : vector<4x1xf32>
    %432 = vector.broadcast %431 : vector<4x1xf32> to vector<4x32xf32>
    %433 = arith.subf %425, %432 : vector<4x32xf32>
    %434 = arith.mulf %433, %433 : vector<4x32xf32>
    %cst_212 = arith.constant dense<0.000000e+00> : vector<4xf32>
    %435 = vector.multi_reduction <add>, %434, %cst_212 [1] : vector<4x32xf32> to vector<4xf32>
    %436 = vector.shape_cast %435 : vector<4xf32> to vector<4x1xf32>
    %cst_213 = arith.constant 3.200000e+01 : f32
    %437 = vector.broadcast %cst_213 : f32 to vector<4x1xf32>
    %438 = arith.divf %436, %437 : vector<4x1xf32>
    %439 = vector.broadcast %431 : vector<4x1xf32> to vector<4x32xf32>
    %440 = arith.subf %425, %439 : vector<4x32xf32>
    %cst_214 = arith.constant 9.99999974E-6 : f32
    %441 = vector.broadcast %cst_214 : f32 to vector<4x1xf32>
    %442 = arith.addf %438, %441 : vector<4x1xf32>
    %443 = math.rsqrt %442 : vector<4x1xf32>
    %444 = vector.broadcast %443 : vector<4x1xf32> to vector<4x32xf32>
    %445 = arith.mulf %440, %444 : vector<4x32xf32>
    %446 = vector.broadcast %426 : vector<1x32xf32> to vector<4x32xf32>
    %447 = arith.mulf %445, %446 : vector<4x32xf32>
    %448 = vector.broadcast %427 : vector<1x32xf32> to vector<4x32xf32>
    %449 = arith.addf %447, %448 : vector<4x32xf32>
    %c0_215 = arith.constant 0 : index
    %c0_216 = arith.constant 0 : index
    %450 = vector.load %arg21[%c0_215, %c0_216] : memref<32x16xf32, #tpu.memory_space<vmem>>, vector<32x16xf32>
    %cst_217 = arith.constant dense<0.000000e+00> : vector<4x16xf32>
    %451 = tpu.matmul %449, %450, %cst_217 {dimension_numbers = #tpu.dot_dimension_numbers<[1], [0], [0], [1], [0, 0, 1, 1], [], []>} : vector<4x32xf32>, vector<32x16xf32>, vector<4x16xf32> -> vector<4x16xf32>
    %c0_218 = arith.constant 0 : index
    %c0_219 = arith.constant 0 : index
    %452 = vector.load %arg22[%c0_218, %c0_219] : memref<1x16xf32, #tpu.memory_space<vmem>>, vector<1x16xf32>
    %453 = vector.broadcast %452 : vector<1x16xf32> to vector<4x16xf32>
    %454 = arith.addf %451, %453 : vector<4x16xf32>
    %c0_220 = arith.constant 0 : index
    %c0_221 = arith.constant 0 : index
    %455 = vector.load %arg45[%c0_220, %c0_221] : memref<4x16xf32, #tpu.memory_space<vmem>>, vector<4x16xf32>
    tpu.vector_store %arg45[%c0_220, %c0_221], %454 {strides = array<i32>} : memref<4x16xf32, #tpu.memory_space<vmem>>, vector<4x16xf32>,
    %c0_222 = arith.constant 0 : index
    %c0_223 = arith.constant 0 : index
    %456 = vector.load %arg23[%c0_222, %c0_223] : memref<1x16xf32, #tpu.memory_space<vmem>>, vector<1x16xf32>
    %457 = vector.shape_cast %456 : vector<1x16xf32> to vector<1x16xf32>
    %458 = vector.broadcast %457 : vector<1x16xf32> to vector<16x16xf32>
    %c0_224 = arith.constant 0 : index
    %c0_225 = arith.constant 0 : index
    %459 = vector.load %arg46[%c0_224, %c0_225] : memref<16x16xf32, #tpu.memory_space<vmem>>, vector<16x16xf32>
    tpu.vector_store %arg46[%c0_224, %c0_225], %458 {strides = array<i32>} : memref<16x16xf32, #tpu.memory_space<vmem>>, vector<16x16xf32>,
    %c0_226 = arith.constant 0 : index
    %c0_227 = arith.constant 0 : index
    %460 = vector.load %arg45[%c0_226, %c0_227] : memref<4x16xf32, #tpu.memory_space<vmem>>, vector<1x16xf32>
    %c0_i32_228 = arith.constant 0 : i32
    %461 = arith.addi %c0_i32_228, %3 : i32
    %462 = arith.index_cast %461 : i32 to index
    %c0_229 = arith.constant 0 : index
    %463 = vector.load %arg46[%462, %c0_229] : memref<16x16xf32, #tpu.memory_space<vmem>>, vector<1x16xf32>
    tpu.vector_store %arg46[%462, %c0_229], %460 {strides = array<i32>} : memref<16x16xf32, #tpu.memory_space<vmem>>, vector<1x16xf32>,
    %c1_230 = arith.constant 1 : index
    %c0_231 = arith.constant 0 : index
    %464 = vector.load %arg45[%c1_230, %c0_231] : memref<4x16xf32, #tpu.memory_space<vmem>>, vector<1x16xf32>
    %c0_i32_232 = arith.constant 0 : i32
    %465 = arith.addi %c0_i32_232, %6 : i32
    %466 = arith.index_cast %465 : i32 to index
    %c0_233 = arith.constant 0 : index
    %467 = vector.load %arg46[%466, %c0_233] : memref<16x16xf32, #tpu.memory_space<vmem>>, vector<1x16xf32>
    tpu.vector_store %arg46[%466, %c0_233], %464 {strides = array<i32>} : memref<16x16xf32, #tpu.memory_space<vmem>>, vector<1x16xf32>,
    %c2_234 = arith.constant 2 : index
    %c0_235 = arith.constant 0 : index
    %468 = vector.load %arg45[%c2_234, %c0_235] : memref<4x16xf32, #tpu.memory_space<vmem>>, vector<1x16xf32>
    %c0_i32_236 = arith.constant 0 : i32
    %469 = arith.addi %c0_i32_236, %9 : i32
    %470 = arith.index_cast %469 : i32 to index
    %c0_237 = arith.constant 0 : index
    %471 = vector.load %arg46[%470, %c0_237] : memref<16x16xf32, #tpu.memory_space<vmem>>, vector<1x16xf32>
    tpu.vector_store %arg46[%470, %c0_237], %468 {strides = array<i32>} : memref<16x16xf32, #tpu.memory_space<vmem>>, vector<1x16xf32>,
    %c3_238 = arith.constant 3 : index
    %c0_239 = arith.constant 0 : index
    %472 = vector.load %arg45[%c3_238, %c0_239] : memref<4x16xf32, #tpu.memory_space<vmem>>, vector<1x16xf32>
    %c0_i32_240 = arith.constant 0 : i32
    %473 = arith.addi %c0_i32_240, %12 : i32
    %474 = arith.index_cast %473 : i32 to index
    %c0_241 = arith.constant 0 : index
    %475 = vector.load %arg46[%474, %c0_241] : memref<16x16xf32, #tpu.memory_space<vmem>>, vector<1x16xf32>
    tpu.vector_store %arg46[%474, %c0_241], %472 {strides = array<i32>} : memref<16x16xf32, #tpu.memory_space<vmem>>, vector<1x16xf32>,
    %c0_242 = arith.constant 0 : index
    %c0_243 = arith.constant 0 : index
    %476 = vector.load %arg46[%c0_242, %c0_243] : memref<16x16xf32, #tpu.memory_space<vmem>>, vector<16x16xf32>
    %c0_244 = arith.constant 0 : index
    %c0_245 = arith.constant 0 : index
    %477 = vector.load %arg24[%c0_244, %c0_245] : memref<16x16xf32, #tpu.memory_space<vmem>>, vector<16x16xf32>
    %478 = arith.addf %476, %477 : vector<16x16xf32>
    %c0_246 = arith.constant 0 : index
    %c0_247 = arith.constant 0 : index
    %c0_248 = arith.constant 0 : index
    %479 = vector.load %arg25[%c0_246, %c0_247, %c0_248] : memref<1x1x16xf32, #tpu.memory_space<vmem>>, vector<1x1x16xf32>
    %480 = vector.shape_cast %479 : vector<1x1x16xf32> to vector<1x16xf32>
    %c0_249 = arith.constant 0 : index
    %c0_250 = arith.constant 0 : index
    %c0_251 = arith.constant 0 : index
    %481 = vector.load %arg26[%c0_249, %c0_250, %c0_251] : memref<1x1x16xf32, #tpu.memory_space<vmem>>, vector<1x1x16xf32>
    %482 = vector.shape_cast %481 : vector<1x1x16xf32> to vector<1x16xf32>
    %cst_252 = arith.constant dense<0.000000e+00> : vector<16xf32>
    %483 = vector.multi_reduction <add>, %478, %cst_252 [1] : vector<16x16xf32> to vector<16xf32>
    %484 = vector.shape_cast %483 : vector<16xf32> to vector<16x1xf32>
    %cst_253 = arith.constant 1.600000e+01 : f32
    %485 = vector.broadcast %cst_253 : f32 to vector<16x1xf32>
    %486 = arith.divf %484, %485 : vector<16x1xf32>
    %487 = vector.broadcast %486 : vector<16x1xf32> to vector<16x16xf32>
    %488 = arith.subf %478, %487 : vector<16x16xf32>
    %489 = arith.mulf %488, %488 : vector<16x16xf32>
    %cst_254 = arith.constant dense<0.000000e+00> : vector<16xf32>
    %490 = vector.multi_reduction <add>, %489, %cst_254 [1] : vector<16x16xf32> to vector<16xf32>
    %491 = vector.shape_cast %490 : vector<16xf32> to vector<16x1xf32>
    %cst_255 = arith.constant 1.600000e+01 : f32
    %492 = vector.broadcast %cst_255 : f32 to vector<16x1xf32>
    %493 = arith.divf %491, %492 : vector<16x1xf32>
    %494 = vector.broadcast %486 : vector<16x1xf32> to vector<16x16xf32>
    %495 = arith.subf %478, %494 : vector<16x16xf32>
    %cst_256 = arith.constant 9.99999974E-6 : f32
    %496 = vector.broadcast %cst_256 : f32 to vector<16x1xf32>
    %497 = arith.addf %493, %496 : vector<16x1xf32>
    %498 = math.rsqrt %497 : vector<16x1xf32>
    %499 = vector.broadcast %498 : vector<16x1xf32> to vector<16x16xf32>
    %500 = arith.mulf %495, %499 : vector<16x16xf32>
    %501 = vector.broadcast %480 : vector<1x16xf32> to vector<16x16xf32>
    %502 = arith.mulf %500, %501 : vector<16x16xf32>
    %503 = vector.broadcast %482 : vector<1x16xf32> to vector<16x16xf32>
    %504 = arith.addf %502, %503 : vector<16x16xf32>
    %c0_257 = arith.constant 0 : index
    %c0_258 = arith.constant 0 : index
    %c0_259 = arith.constant 0 : index
    %505 = vector.load %arg27[%c0_257, %c0_258, %c0_259] : memref<1x16x48xf32, #tpu.memory_space<vmem>>, vector<1x16x48xf32>
    %506 = vector.shape_cast %505 : vector<1x16x48xf32> to vector<16x48xf32>
    %cst_260 = arith.constant dense<0.000000e+00> : vector<16x48xf32>
    %507 = tpu.matmul %504, %506, %cst_260 {dimension_numbers = #tpu.dot_dimension_numbers<[1], [0], [0], [1], [0, 0, 1, 1], [], []>} : vector<16x16xf32>, vector<16x48xf32>, vector<16x48xf32> -> vector<16x48xf32>
    %c0_261 = arith.constant 0 : index
    %c0_262 = arith.constant 0 : index
    %c0_263 = arith.constant 0 : index
    %508 = vector.load %arg28[%c0_261, %c0_262, %c0_263] : memref<1x1x48xf32, #tpu.memory_space<vmem>>, vector<1x1x48xf32>
    %509 = vector.shape_cast %508 : vector<1x1x48xf32> to vector<1x48xf32>
    %510 = vector.broadcast %509 : vector<1x48xf32> to vector<16x48xf32>
    %511 = arith.addf %507, %510 : vector<16x48xf32>
    %512 = vector.extract_strided_slice %511 {offsets = [0, 0], sizes = [16, 4], strides = [1, 1]} : vector<16x48xf32> to vector<16x4xf32>
    %513 = vector.extract_strided_slice %511 {offsets = [0, 16], sizes = [16, 4], strides = [1, 1]} : vector<16x48xf32> to vector<16x4xf32>
    %514 = vector.extract_strided_slice %511 {offsets = [0, 32], sizes = [16, 4], strides = [1, 1]} : vector<16x48xf32> to vector<16x4xf32>
    %cst_264 = arith.constant dense<0.000000e+00> : vector<16x16xf32>
    %515 = tpu.matmul %512, %513, %cst_264 {dimension_numbers = #tpu.dot_dimension_numbers<[1], [1], [0], [0], [0, 0, 1, 0], [], []>} : vector<16x4xf32>, vector<16x4xf32>, vector<16x16xf32> -> vector<16x16xf32>
    %cst_265 = arith.constant 5.000000e-01 : f32
    %516 = vector.broadcast %cst_265 : f32 to vector<16x16xf32>
    %517 = arith.mulf %515, %516 : vector<16x16xf32>
    %cst_266 = arith.constant dense<0xFF800000> : vector<16xf32>
    %518 = vector.multi_reduction <maximumf>, %517, %cst_266 [1] : vector<16x16xf32> to vector<16xf32>
    %519 = vector.shape_cast %518 : vector<16xf32> to vector<16x1xf32>
    %520 = vector.broadcast %519 : vector<16x1xf32> to vector<16x16xf32>
    %521 = arith.subf %517, %520 : vector<16x16xf32>
    %522 = math.exp %521 : vector<16x16xf32>
    %cst_267 = arith.constant dense<0.000000e+00> : vector<16xf32>
    %523 = vector.multi_reduction <add>, %522, %cst_267 [1] : vector<16x16xf32> to vector<16xf32>
    %524 = vector.shape_cast %523 : vector<16xf32> to vector<16x1xf32>
    %525 = vector.broadcast %524 : vector<16x1xf32> to vector<16x16xf32>
    %526 = arith.divf %522, %525 : vector<16x16xf32>
    %cst_268 = arith.constant dense<0.000000e+00> : vector<16x4xf32>
    %527 = tpu.matmul %526, %514, %cst_268 {dimension_numbers = #tpu.dot_dimension_numbers<[1], [0], [0], [1], [0, 0, 1, 1], [], []>} : vector<16x16xf32>, vector<16x4xf32>, vector<16x4xf32> -> vector<16x4xf32>
    %528 = vector.extract_strided_slice %511 {offsets = [0, 4], sizes = [16, 4], strides = [1, 1]} : vector<16x48xf32> to vector<16x4xf32>
    %529 = vector.extract_strided_slice %511 {offsets = [0, 20], sizes = [16, 4], strides = [1, 1]} : vector<16x48xf32> to vector<16x4xf32>
    %530 = vector.extract_strided_slice %511 {offsets = [0, 36], sizes = [16, 4], strides = [1, 1]} : vector<16x48xf32> to vector<16x4xf32>
    %cst_269 = arith.constant dense<0.000000e+00> : vector<16x16xf32>
    %531 = tpu.matmul %528, %529, %cst_269 {dimension_numbers = #tpu.dot_dimension_numbers<[1], [1], [0], [0], [0, 0, 1, 0], [], []>} : vector<16x4xf32>, vector<16x4xf32>, vector<16x16xf32> -> vector<16x16xf32>
    %cst_270 = arith.constant 5.000000e-01 : f32
    %532 = vector.broadcast %cst_270 : f32 to vector<16x16xf32>
    %533 = arith.mulf %531, %532 : vector<16x16xf32>
    %cst_271 = arith.constant dense<0xFF800000> : vector<16xf32>
    %534 = vector.multi_reduction <maximumf>, %533, %cst_271 [1] : vector<16x16xf32> to vector<16xf32>
    %535 = vector.shape_cast %534 : vector<16xf32> to vector<16x1xf32>
    %536 = vector.broadcast %535 : vector<16x1xf32> to vector<16x16xf32>
    %537 = arith.subf %533, %536 : vector<16x16xf32>
    %538 = math.exp %537 : vector<16x16xf32>
    %cst_272 = arith.constant dense<0.000000e+00> : vector<16xf32>
    %539 = vector.multi_reduction <add>, %538, %cst_272 [1] : vector<16x16xf32> to vector<16xf32>
    %540 = vector.shape_cast %539 : vector<16xf32> to vector<16x1xf32>
    %541 = vector.broadcast %540 : vector<16x1xf32> to vector<16x16xf32>
    %542 = arith.divf %538, %541 : vector<16x16xf32>
    %cst_273 = arith.constant dense<0.000000e+00> : vector<16x4xf32>
    %543 = tpu.matmul %542, %530, %cst_273 {dimension_numbers = #tpu.dot_dimension_numbers<[1], [0], [0], [1], [0, 0, 1, 1], [], []>} : vector<16x16xf32>, vector<16x4xf32>, vector<16x4xf32> -> vector<16x4xf32>
    %544 = vector.extract_strided_slice %511 {offsets = [0, 8], sizes = [16, 4], strides = [1, 1]} : vector<16x48xf32> to vector<16x4xf32>
    %545 = vector.extract_strided_slice %511 {offsets = [0, 24], sizes = [16, 4], strides = [1, 1]} : vector<16x48xf32> to vector<16x4xf32>
    %546 = vector.extract_strided_slice %511 {offsets = [0, 40], sizes = [16, 4], strides = [1, 1]} : vector<16x48xf32> to vector<16x4xf32>
    %cst_274 = arith.constant dense<0.000000e+00> : vector<16x16xf32>
    %547 = tpu.matmul %544, %545, %cst_274 {dimension_numbers = #tpu.dot_dimension_numbers<[1], [1], [0], [0], [0, 0, 1, 0], [], []>} : vector<16x4xf32>, vector<16x4xf32>, vector<16x16xf32> -> vector<16x16xf32>
    %cst_275 = arith.constant 5.000000e-01 : f32
    %548 = vector.broadcast %cst_275 : f32 to vector<16x16xf32>
    %549 = arith.mulf %547, %548 : vector<16x16xf32>
    %cst_276 = arith.constant dense<0xFF800000> : vector<16xf32>
    %550 = vector.multi_reduction <maximumf>, %549, %cst_276 [1] : vector<16x16xf32> to vector<16xf32>
    %551 = vector.shape_cast %550 : vector<16xf32> to vector<16x1xf32>
    %552 = vector.broadcast %551 : vector<16x1xf32> to vector<16x16xf32>
    %553 = arith.subf %549, %552 : vector<16x16xf32>
    %554 = math.exp %553 : vector<16x16xf32>
    %cst_277 = arith.constant dense<0.000000e+00> : vector<16xf32>
    %555 = vector.multi_reduction <add>, %554, %cst_277 [1] : vector<16x16xf32> to vector<16xf32>
    %556 = vector.shape_cast %555 : vector<16xf32> to vector<16x1xf32>
    %557 = vector.broadcast %556 : vector<16x1xf32> to vector<16x16xf32>
    %558 = arith.divf %554, %557 : vector<16x16xf32>
    %cst_278 = arith.constant dense<0.000000e+00> : vector<16x4xf32>
    %559 = tpu.matmul %558, %546, %cst_278 {dimension_numbers = #tpu.dot_dimension_numbers<[1], [0], [0], [1], [0, 0, 1, 1], [], []>} : vector<16x16xf32>, vector<16x4xf32>, vector<16x4xf32> -> vector<16x4xf32>
    %560 = vector.extract_strided_slice %511 {offsets = [0, 12], sizes = [16, 4], strides = [1, 1]} : vector<16x48xf32> to vector<16x4xf32>
    %561 = vector.extract_strided_slice %511 {offsets = [0, 28], sizes = [16, 4], strides = [1, 1]} : vector<16x48xf32> to vector<16x4xf32>
    %562 = vector.extract_strided_slice %511 {offsets = [0, 44], sizes = [16, 4], strides = [1, 1]} : vector<16x48xf32> to vector<16x4xf32>
    %cst_279 = arith.constant dense<0.000000e+00> : vector<16x16xf32>
    %563 = tpu.matmul %560, %561, %cst_279 {dimension_numbers = #tpu.dot_dimension_numbers<[1], [1], [0], [0], [0, 0, 1, 0], [], []>} : vector<16x4xf32>, vector<16x4xf32>, vector<16x16xf32> -> vector<16x16xf32>
    %cst_280 = arith.constant 5.000000e-01 : f32
    %564 = vector.broadcast %cst_280 : f32 to vector<16x16xf32>
    %565 = arith.mulf %563, %564 : vector<16x16xf32>
    %cst_281 = arith.constant dense<0xFF800000> : vector<16xf32>
    %566 = vector.multi_reduction <maximumf>, %565, %cst_281 [1] : vector<16x16xf32> to vector<16xf32>
    %567 = vector.shape_cast %566 : vector<16xf32> to vector<16x1xf32>
    %568 = vector.broadcast %567 : vector<16x1xf32> to vector<16x16xf32>
    %569 = arith.subf %565, %568 : vector<16x16xf32>
    %570 = math.exp %569 : vector<16x16xf32>
    %cst_282 = arith.constant dense<0.000000e+00> : vector<16xf32>
    %571 = vector.multi_reduction <add>, %570, %cst_282 [1] : vector<16x16xf32> to vector<16xf32>
    %572 = vector.shape_cast %571 : vector<16xf32> to vector<16x1xf32>
    %573 = vector.broadcast %572 : vector<16x1xf32> to vector<16x16xf32>
    %574 = arith.divf %570, %573 : vector<16x16xf32>
    %cst_283 = arith.constant dense<0.000000e+00> : vector<16x4xf32>
    %575 = tpu.matmul %574, %562, %cst_283 {dimension_numbers = #tpu.dot_dimension_numbers<[1], [0], [0], [1], [0, 0, 1, 1], [], []>} : vector<16x16xf32>, vector<16x4xf32>, vector<16x4xf32> -> vector<16x4xf32>
    %576 = tpu.concatenate %527, %543, %559, %575 in 1 : vector<16x4xf32>, vector<16x4xf32>, vector<16x4xf32>, vector<16x4xf32> -> vector<16x16xf32>
    %c0_284 = arith.constant 0 : index
    %c0_285 = arith.constant 0 : index
    %c0_286 = arith.constant 0 : index
    %577 = vector.load %arg29[%c0_284, %c0_285, %c0_286] : memref<1x16x16xf32, #tpu.memory_space<vmem>>, vector<1x16x16xf32>
    %578 = vector.shape_cast %577 : vector<1x16x16xf32> to vector<16x16xf32>
    %cst_287 = arith.constant dense<0.000000e+00> : vector<16x16xf32>
    %579 = tpu.matmul %576, %578, %cst_287 {dimension_numbers = #tpu.dot_dimension_numbers<[1], [0], [0], [1], [0, 0, 1, 1], [], []>} : vector<16x16xf32>, vector<16x16xf32>, vector<16x16xf32> -> vector<16x16xf32>
    %580 = arith.addf %478, %579 : vector<16x16xf32>
    %c0_288 = arith.constant 0 : index
    %c0_289 = arith.constant 0 : index
    %c0_290 = arith.constant 0 : index
    %581 = vector.load %arg30[%c0_288, %c0_289, %c0_290] : memref<1x1x16xf32, #tpu.memory_space<vmem>>, vector<1x1x16xf32>
    %582 = vector.shape_cast %581 : vector<1x1x16xf32> to vector<1x16xf32>
    %583 = vector.broadcast %582 : vector<1x16xf32> to vector<16x16xf32>
    %584 = arith.addf %580, %583 : vector<16x16xf32>
    %c0_291 = arith.constant 0 : index
    %c0_292 = arith.constant 0 : index
    %c0_293 = arith.constant 0 : index
    %585 = vector.load %arg31[%c0_291, %c0_292, %c0_293] : memref<1x1x16xf32, #tpu.memory_space<vmem>>, vector<1x1x16xf32>
    %586 = vector.shape_cast %585 : vector<1x1x16xf32> to vector<1x16xf32>
    %c0_294 = arith.constant 0 : index
    %c0_295 = arith.constant 0 : index
    %c0_296 = arith.constant 0 : index
    %587 = vector.load %arg32[%c0_294, %c0_295, %c0_296] : memref<1x1x16xf32, #tpu.memory_space<vmem>>, vector<1x1x16xf32>
    %588 = vector.shape_cast %587 : vector<1x1x16xf32> to vector<1x16xf32>
    %cst_297 = arith.constant dense<0.000000e+00> : vector<16xf32>
    %589 = vector.multi_reduction <add>, %584, %cst_297 [1] : vector<16x16xf32> to vector<16xf32>
    %590 = vector.shape_cast %589 : vector<16xf32> to vector<16x1xf32>
    %cst_298 = arith.constant 1.600000e+01 : f32
    %591 = vector.broadcast %cst_298 : f32 to vector<16x1xf32>
    %592 = arith.divf %590, %591 : vector<16x1xf32>
    %593 = vector.broadcast %592 : vector<16x1xf32> to vector<16x16xf32>
    %594 = arith.subf %584, %593 : vector<16x16xf32>
    %595 = arith.mulf %594, %594 : vector<16x16xf32>
    %cst_299 = arith.constant dense<0.000000e+00> : vector<16xf32>
    %596 = vector.multi_reduction <add>, %595, %cst_299 [1] : vector<16x16xf32> to vector<16xf32>
    %597 = vector.shape_cast %596 : vector<16xf32> to vector<16x1xf32>
    %cst_300 = arith.constant 1.600000e+01 : f32
    %598 = vector.broadcast %cst_300 : f32 to vector<16x1xf32>
    %599 = arith.divf %597, %598 : vector<16x1xf32>
    %600 = vector.broadcast %592 : vector<16x1xf32> to vector<16x16xf32>
    %601 = arith.subf %584, %600 : vector<16x16xf32>
    %cst_301 = arith.constant 9.99999974E-6 : f32
    %602 = vector.broadcast %cst_301 : f32 to vector<16x1xf32>
    %603 = arith.addf %599, %602 : vector<16x1xf32>
    %604 = math.rsqrt %603 : vector<16x1xf32>
    %605 = vector.broadcast %604 : vector<16x1xf32> to vector<16x16xf32>
    %606 = arith.mulf %601, %605 : vector<16x16xf32>
    %607 = vector.broadcast %586 : vector<1x16xf32> to vector<16x16xf32>
    %608 = arith.mulf %606, %607 : vector<16x16xf32>
    %609 = vector.broadcast %588 : vector<1x16xf32> to vector<16x16xf32>
    %610 = arith.addf %608, %609 : vector<16x16xf32>
    %c0_302 = arith.constant 0 : index
    %c0_303 = arith.constant 0 : index
    %c0_304 = arith.constant 0 : index
    %611 = vector.load %arg33[%c0_302, %c0_303, %c0_304] : memref<1x16x64xf32, #tpu.memory_space<vmem>>, vector<1x16x64xf32>
    %612 = vector.shape_cast %611 : vector<1x16x64xf32> to vector<16x64xf32>
    %cst_305 = arith.constant dense<0.000000e+00> : vector<16x64xf32>
    %613 = tpu.matmul %610, %612, %cst_305 {dimension_numbers = #tpu.dot_dimension_numbers<[1], [0], [0], [1], [0, 0, 1, 1], [], []>} : vector<16x16xf32>, vector<16x64xf32>, vector<16x64xf32> -> vector<16x64xf32>
    %c0_306 = arith.constant 0 : index
    %c0_307 = arith.constant 0 : index
    %c0_308 = arith.constant 0 : index
    %614 = vector.load %arg34[%c0_306, %c0_307, %c0_308] : memref<1x1x64xf32, #tpu.memory_space<vmem>>, vector<1x1x64xf32>
    %615 = vector.shape_cast %614 : vector<1x1x64xf32> to vector<1x64xf32>
    %616 = vector.broadcast %615 : vector<1x64xf32> to vector<16x64xf32>
    %617 = arith.addf %613, %616 : vector<16x64xf32>
    %cst_309 = arith.constant 5.000000e-01 : f32
    %618 = vector.broadcast %cst_309 : f32 to vector<16x64xf32>
    %619 = arith.mulf %618, %617 : vector<16x64xf32>
    %cst_310 = arith.constant 0.707106769 : f32
    %620 = vector.broadcast %cst_310 : f32 to vector<16x64xf32>
    %621 = arith.mulf %617, %620 : vector<16x64xf32>
    %cst_311 = arith.constant 4.000000e+00 : f32
    %622 = vector.broadcast %cst_311 : f32 to vector<16x64xf32>
    %623 = arith.minimumf %621, %622 : vector<16x64xf32>
    %cst_312 = arith.constant -4.000000e+00 : f32
    %624 = vector.broadcast %cst_312 : f32 to vector<16x64xf32>
    %625 = arith.maximumf %623, %624 : vector<16x64xf32>
    %626 = arith.mulf %625, %625 : vector<16x64xf32>
    %cst_313 = arith.constant -2.72614237E-10 : f32
    %627 = vector.broadcast %cst_313 : f32 to vector<16x64xf32>
    %628 = arith.mulf %627, %626 : vector<16x64xf32>
    %cst_314 = arith.constant 2.77068146E-8 : f32
    %629 = vector.broadcast %cst_314 : f32 to vector<16x64xf32>
    %630 = arith.addf %628, %629 : vector<16x64xf32>
    %631 = arith.mulf %630, %626 : vector<16x64xf32>
    %cst_315 = arith.constant -2.10102394E-6 : f32
    %632 = vector.broadcast %cst_315 : f32 to vector<16x64xf32>
    %633 = arith.addf %631, %632 : vector<16x64xf32>
    %634 = arith.mulf %633, %626 : vector<16x64xf32>
    %cst_316 = arith.constant -5.69250624E-5 : f32
    %635 = vector.broadcast %cst_316 : f32 to vector<16x64xf32>
    %636 = arith.addf %634, %635 : vector<16x64xf32>
    %637 = arith.mulf %636, %626 : vector<16x64xf32>
    %cst_317 = arith.constant -7.34990637E-4 : f32
    %638 = vector.broadcast %cst_317 : f32 to vector<16x64xf32>
    %639 = arith.addf %637, %638 : vector<16x64xf32>
    %640 = arith.mulf %639, %626 : vector<16x64xf32>
    %cst_318 = arith.constant -2.954600e-03 : f32
    %641 = vector.broadcast %cst_318 : f32 to vector<16x64xf32>
    %642 = arith.addf %640, %641 : vector<16x64xf32>
    %643 = arith.mulf %642, %626 : vector<16x64xf32>
    %cst_319 = arith.constant -0.0160960332 : f32
    %644 = vector.broadcast %cst_319 : f32 to vector<16x64xf32>
    %645 = arith.addf %643, %644 : vector<16x64xf32>
    %646 = arith.mulf %645, %625 : vector<16x64xf32>
    %cst_320 = arith.constant -1.45660715E-5 : f32
    %647 = vector.broadcast %cst_320 : f32 to vector<16x64xf32>
    %648 = arith.mulf %647, %626 : vector<16x64xf32>
    %cst_321 = arith.constant -2.13374049E-4 : f32
    %649 = vector.broadcast %cst_321 : f32 to vector<16x64xf32>
    %650 = arith.addf %648, %649 : vector<16x64xf32>
    %651 = arith.mulf %650, %626 : vector<16x64xf32>
    %cst_322 = arith.constant -0.00168282702 : f32
    %652 = vector.broadcast %cst_322 : f32 to vector<16x64xf32>
    %653 = arith.addf %651, %652 : vector<16x64xf32>
    %654 = arith.mulf %653, %626 : vector<16x64xf32>
    %cst_323 = arith.constant -0.00737332925 : f32
    %655 = vector.broadcast %cst_323 : f32 to vector<16x64xf32>
    %656 = arith.addf %654, %655 : vector<16x64xf32>
    %657 = arith.mulf %656, %626 : vector<16x64xf32>
    %cst_324 = arith.constant -0.0142647391 : f32
    %658 = vector.broadcast %cst_324 : f32 to vector<16x64xf32>
    %659 = arith.addf %657, %658 : vector<16x64xf32>
    %660 = arith.divf %646, %659 : vector<16x64xf32>
    %cst_325 = arith.constant 1.000000e+00 : f32
    %661 = vector.broadcast %cst_325 : f32 to vector<16x64xf32>
    %662 = arith.addf %661, %660 : vector<16x64xf32>
    %663 = arith.mulf %619, %662 : vector<16x64xf32>
    %c0_326 = arith.constant 0 : index
    %c0_327 = arith.constant 0 : index
    %c0_328 = arith.constant 0 : index
    %664 = vector.load %arg35[%c0_326, %c0_327, %c0_328] : memref<1x64x16xf32, #tpu.memory_space<vmem>>, vector<1x64x16xf32>
    %665 = vector.shape_cast %664 : vector<1x64x16xf32> to vector<64x16xf32>
    %cst_329 = arith.constant dense<0.000000e+00> : vector<16x16xf32>
    %666 = tpu.matmul %663, %665, %cst_329 {dimension_numbers = #tpu.dot_dimension_numbers<[1], [0], [0], [1], [0, 0, 1, 1], [], []>} : vector<16x64xf32>, vector<64x16xf32>, vector<16x16xf32> -> vector<16x16xf32>
    %667 = arith.addf %584, %666 : vector<16x16xf32>
    %c0_330 = arith.constant 0 : index
    %c0_331 = arith.constant 0 : index
    %c0_332 = arith.constant 0 : index
    %668 = vector.load %arg36[%c0_330, %c0_331, %c0_332] : memref<1x1x16xf32, #tpu.memory_space<vmem>>, vector<1x1x16xf32>
    %669 = vector.shape_cast %668 : vector<1x1x16xf32> to vector<1x16xf32>
    %670 = vector.broadcast %669 : vector<1x16xf32> to vector<16x16xf32>
    %671 = arith.addf %667, %670 : vector<16x16xf32>
    %c0_333 = arith.constant 0 : index
    %c0_334 = arith.constant 0 : index
    %672 = vector.load %arg37[%c0_333, %c0_334] : memref<1x16xf32, #tpu.memory_space<vmem>>, vector<1x16xf32>
    %c0_335 = arith.constant 0 : index
    %c0_336 = arith.constant 0 : index
    %673 = vector.load %arg38[%c0_335, %c0_336] : memref<1x16xf32, #tpu.memory_space<vmem>>, vector<1x16xf32>
    %cst_337 = arith.constant dense<0.000000e+00> : vector<16xf32>
    %674 = vector.multi_reduction <add>, %671, %cst_337 [1] : vector<16x16xf32> to vector<16xf32>
    %675 = vector.shape_cast %674 : vector<16xf32> to vector<16x1xf32>
    %cst_338 = arith.constant 1.600000e+01 : f32
    %676 = vector.broadcast %cst_338 : f32 to vector<16x1xf32>
    %677 = arith.divf %675, %676 : vector<16x1xf32>
    %678 = vector.broadcast %677 : vector<16x1xf32> to vector<16x16xf32>
    %679 = arith.subf %671, %678 : vector<16x16xf32>
    %680 = arith.mulf %679, %679 : vector<16x16xf32>
    %cst_339 = arith.constant dense<0.000000e+00> : vector<16xf32>
    %681 = vector.multi_reduction <add>, %680, %cst_339 [1] : vector<16x16xf32> to vector<16xf32>
    %682 = vector.shape_cast %681 : vector<16xf32> to vector<16x1xf32>
    %cst_340 = arith.constant 1.600000e+01 : f32
    %683 = vector.broadcast %cst_340 : f32 to vector<16x1xf32>
    %684 = arith.divf %682, %683 : vector<16x1xf32>
    %685 = vector.broadcast %677 : vector<16x1xf32> to vector<16x16xf32>
    %686 = arith.subf %671, %685 : vector<16x16xf32>
    %cst_341 = arith.constant 9.99999974E-6 : f32
    %687 = vector.broadcast %cst_341 : f32 to vector<16x1xf32>
    %688 = arith.addf %684, %687 : vector<16x1xf32>
    %689 = math.rsqrt %688 : vector<16x1xf32>
    %690 = vector.broadcast %689 : vector<16x1xf32> to vector<16x16xf32>
    %691 = arith.mulf %686, %690 : vector<16x16xf32>
    %692 = vector.broadcast %672 : vector<1x16xf32> to vector<16x16xf32>
    %693 = arith.mulf %691, %692 : vector<16x16xf32>
    %694 = vector.broadcast %673 : vector<1x16xf32> to vector<16x16xf32>
    %695 = arith.addf %693, %694 : vector<16x16xf32>
    %c0_342 = arith.constant 0 : index
    %c0_343 = arith.constant 0 : index
    %696 = vector.load %arg39[%c0_342, %c0_343] : memref<16x48xf32, #tpu.memory_space<vmem>>, vector<16x48xf32>
    %cst_344 = arith.constant dense<0.000000e+00> : vector<16x48xf32>
    %697 = tpu.matmul %695, %696, %cst_344 {dimension_numbers = #tpu.dot_dimension_numbers<[1], [0], [0], [1], [0, 0, 1, 1], [], []>} : vector<16x16xf32>, vector<16x48xf32>, vector<16x48xf32> -> vector<16x48xf32>
    %c0_345 = arith.constant 0 : index
    %c0_346 = arith.constant 0 : index
    %698 = vector.load %arg40[%c0_345, %c0_346] : memref<1x48xf32, #tpu.memory_space<vmem>>, vector<1x48xf32>
    %699 = vector.broadcast %698 : vector<1x48xf32> to vector<16x48xf32>
    %700 = arith.addf %697, %699 : vector<16x48xf32>
    %701 = vector.shape_cast %700 : vector<16x48xf32> to vector<1x16x48xf32>
    %c0_347 = arith.constant 0 : index
    %c0_348 = arith.constant 0 : index
    %c0_349 = arith.constant 0 : index
    %702 = vector.load %arg41[%c0_347, %c0_348, %c0_349] : memref<1x16x48xf32, #tpu.memory_space<vmem>>, vector<1x16x48xf32>
    tpu.vector_store %arg41[%c0_347, %c0_348, %c0_349], %701 {strides = array<i32>} : memref<1x16x48xf32, #tpu.memory_space<vmem>>, vector<1x16x48xf32>,
    %c0_350 = arith.constant 0 : index
    %c0_351 = arith.constant 0 : index
    %c0_352 = arith.constant 0 : index
    %703 = vector.load %arg3[%c0_350, %c0_351, %c0_352] : memref<1x16x48xf32, #tpu.memory_space<vmem>>, vector<1x16x48xf32>
    %704 = vector.shape_cast %703 : vector<1x16x48xf32> to vector<16x48xf32>
    %705 = arith.subf %700, %704 : vector<16x48xf32>
    %706 = arith.mulf %705, %705 : vector<16x48xf32>
    %cst_353 = arith.constant dense<0.000000e+00> : vector<16xf32>
    %707 = vector.multi_reduction <add>, %706, %cst_353 [1] : vector<16x48xf32> to vector<16xf32>
    %708 = vector.shape_cast %707 : vector<16xf32> to vector<16x1xf32>
    %cst_354 = arith.constant 4.800000e+01 : f32
    %709 = vector.broadcast %cst_354 : f32 to vector<16x1xf32>
    %710 = arith.divf %708, %709 : vector<16x1xf32>
    %711 = vector.shape_cast %710 : vector<16x1xf32> to vector<1x16x1xf32>
    %cst_355 = arith.constant dense<0.000000e+00> : vector<1xf32>
    %712 = vector.multi_reduction <add>, %711, %cst_355 [1, 2] : vector<1x16x1xf32> to vector<1xf32>
    %713 = vector.shape_cast %712 : vector<1xf32> to vector<1x1x1xf32>
    %714 = vector.extract %713[0, 0, 0] : f32 from vector<1x1x1xf32>
    %715 = vector.broadcast %714 : f32 to vector<1x1xf32>
    %c0_356 = arith.constant 0 : index
    %c0_357 = arith.constant 0 : index
    %c0_358 = arith.constant 0 : index
    %716 = vector.load %arg42[%c0_356, %c0_357, %c0_358] : memref<1x1x1xf32, #tpu.memory_space<vmem>>, vector<1x1x1xf32>
    %717 = vector.shape_cast %716 : vector<1x1x1xf32> to vector<1x1xf32>
    %718 = vector.shape_cast %715 : vector<1x1xf32> to vector<1x1x1xf32>
    tpu.vector_store %arg42[%c0_356, %c0_357, %c0_358], %718 {strides = array<i32>} : memref<1x1x1xf32, #tpu.memory_space<vmem>>, vector<1x1x1xf32>,
    return
  }
  func.func @transform_0(%arg0: i32, %arg1: memref<2x4xi32, #tpu.memory_space<smem>>) -> (i32, i32, i32) {
    %c0_i32 = arith.constant 0 : i32
    %c0_i32_0 = arith.constant 0 : i32
    %c0_i32_1 = arith.constant 0 : i32
    return %arg0, %c0_i32, %c0_i32_0 : i32, i32, i32
  }
  func.func @transform_1(%arg0: i32, %arg1: memref<2x4xi32, #tpu.memory_space<smem>>) -> (i32, i32, i32) {
    %c0_i32 = arith.constant 0 : i32
    %c0_i32_0 = arith.constant 0 : i32
    %c0_i32_1 = arith.constant 0 : i32
    return %arg0, %c0_i32, %c0_i32_0 : i32, i32, i32
  }
  func.func @transform_2(%arg0: i32, %arg1: memref<2x4xi32, #tpu.memory_space<smem>>) -> (i32, i32) {
    %c0_i32 = arith.constant 0 : i32
    %c0_i32_0 = arith.constant 0 : i32
    %c0_i32_1 = arith.constant 0 : i32
    return %c0_i32, %c0_i32_0 : i32, i32
  }
  func.func @transform_3(%arg0: i32, %arg1: memref<2x4xi32, #tpu.memory_space<smem>>) -> (i32, i32) {
    %c0_i32 = arith.constant 0 : i32
    %c0_i32_0 = arith.constant 0 : i32
    %c0_i32_1 = arith.constant 0 : i32
    return %c0_i32, %c0_i32_0 : i32, i32
  }
  func.func @transform_4(%arg0: i32, %arg1: memref<2x4xi32, #tpu.memory_space<smem>>) -> (i32, i32) {
    %c0_i32 = arith.constant 0 : i32
    %c0_i32_0 = arith.constant 0 : i32
    %c0_i32_1 = arith.constant 0 : i32
    return %c0_i32, %c0_i32_0 : i32, i32
  }
  func.func @transform_5(%arg0: i32, %arg1: memref<2x4xi32, #tpu.memory_space<smem>>) -> (i32, i32, i32) {
    %c0_i32 = arith.constant 0 : i32
    %c0_i32_0 = arith.constant 0 : i32
    %c0_i32_1 = arith.constant 0 : i32
    %c0_i32_2 = arith.constant 0 : i32
    return %c0_i32, %c0_i32_0, %c0_i32_1 : i32, i32, i32
  }
  func.func @transform_6(%arg0: i32, %arg1: memref<2x4xi32, #tpu.memory_space<smem>>) -> (i32, i32, i32) {
    %c0_i32 = arith.constant 0 : i32
    %c0_i32_0 = arith.constant 0 : i32
    %c0_i32_1 = arith.constant 0 : i32
    %c0_i32_2 = arith.constant 0 : i32
    return %c0_i32, %c0_i32_0, %c0_i32_1 : i32, i32, i32
  }
  func.func @transform_7(%arg0: i32, %arg1: memref<2x4xi32, #tpu.memory_space<smem>>) -> (i32, i32, i32) {
    %c0_i32 = arith.constant 0 : i32
    %c0_i32_0 = arith.constant 0 : i32
    %c0_i32_1 = arith.constant 0 : i32
    %c0_i32_2 = arith.constant 0 : i32
    return %c0_i32, %c0_i32_0, %c0_i32_1 : i32, i32, i32
  }
  func.func @transform_8(%arg0: i32, %arg1: memref<2x4xi32, #tpu.memory_space<smem>>) -> (i32, i32, i32) {
    %c0_i32 = arith.constant 0 : i32
    %c0_i32_0 = arith.constant 0 : i32
    %c0_i32_1 = arith.constant 0 : i32
    %c0_i32_2 = arith.constant 0 : i32
    return %c0_i32, %c0_i32_0, %c0_i32_1 : i32, i32, i32
  }
  func.func @transform_9(%arg0: i32, %arg1: memref<2x4xi32, #tpu.memory_space<smem>>) -> (i32, i32, i32) {
    %c0_i32 = arith.constant 0 : i32
    %c0_i32_0 = arith.constant 0 : i32
    %c0_i32_1 = arith.constant 0 : i32
    %c0_i32_2 = arith.constant 0 : i32
    return %c0_i32, %c0_i32_0, %c0_i32_1 : i32, i32, i32
  }
  func.func @transform_10(%arg0: i32, %arg1: memref<2x4xi32, #tpu.memory_space<smem>>) -> (i32, i32, i32) {
    %c0_i32 = arith.constant 0 : i32
    %c0_i32_0 = arith.constant 0 : i32
    %c0_i32_1 = arith.constant 0 : i32
    %c0_i32_2 = arith.constant 0 : i32
    return %c0_i32, %c0_i32_0, %c0_i32_1 : i32, i32, i32
  }
  func.func @transform_11(%arg0: i32, %arg1: memref<2x4xi32, #tpu.memory_space<smem>>) -> (i32, i32, i32) {
    %c0_i32 = arith.constant 0 : i32
    %c0_i32_0 = arith.constant 0 : i32
    %c0_i32_1 = arith.constant 0 : i32
    %c0_i32_2 = arith.constant 0 : i32
    return %c0_i32, %c0_i32_0, %c0_i32_1 : i32, i32, i32
  }
  func.func @transform_12(%arg0: i32, %arg1: memref<2x4xi32, #tpu.memory_space<smem>>) -> (i32, i32, i32) {
    %c0_i32 = arith.constant 0 : i32
    %c0_i32_0 = arith.constant 0 : i32
    %c0_i32_1 = arith.constant 0 : i32
    %c0_i32_2 = arith.constant 0 : i32
    return %c0_i32, %c0_i32_0, %c0_i32_1 : i32, i32, i32
  }
  func.func @transform_13(%arg0: i32, %arg1: memref<2x4xi32, #tpu.memory_space<smem>>) -> (i32, i32, i32) {
    %c0_i32 = arith.constant 0 : i32
    %c0_i32_0 = arith.constant 0 : i32
    %c0_i32_1 = arith.constant 0 : i32
    %c0_i32_2 = arith.constant 0 : i32
    return %c0_i32, %c0_i32_0, %c0_i32_1 : i32, i32, i32
  }
  func.func @transform_14(%arg0: i32, %arg1: memref<2x4xi32, #tpu.memory_space<smem>>) -> (i32, i32, i32) {
    %c0_i32 = arith.constant 0 : i32
    %c0_i32_0 = arith.constant 0 : i32
    %c0_i32_1 = arith.constant 0 : i32
    %c0_i32_2 = arith.constant 0 : i32
    return %c0_i32, %c0_i32_0, %c0_i32_1 : i32, i32, i32
  }
  func.func @transform_15(%arg0: i32, %arg1: memref<2x4xi32, #tpu.memory_space<smem>>) -> (i32, i32, i32) {
    %c0_i32 = arith.constant 0 : i32
    %c0_i32_0 = arith.constant 0 : i32
    %c0_i32_1 = arith.constant 0 : i32
    %c0_i32_2 = arith.constant 0 : i32
    return %c0_i32, %c0_i32_0, %c0_i32_1 : i32, i32, i32
  }
  func.func @transform_16(%arg0: i32, %arg1: memref<2x4xi32, #tpu.memory_space<smem>>) -> (i32, i32, i32) {
    %c0_i32 = arith.constant 0 : i32
    %c0_i32_0 = arith.constant 0 : i32
    %c0_i32_1 = arith.constant 0 : i32
    %c0_i32_2 = arith.constant 0 : i32
    return %c0_i32, %c0_i32_0, %c0_i32_1 : i32, i32, i32
  }
  func.func @transform_17(%arg0: i32, %arg1: memref<2x4xi32, #tpu.memory_space<smem>>) -> (i32, i32) {
    %c0_i32 = arith.constant 0 : i32
    %c0_i32_0 = arith.constant 0 : i32
    %c0_i32_1 = arith.constant 0 : i32
    return %c0_i32, %c0_i32_0 : i32, i32
  }
  func.func @transform_18(%arg0: i32, %arg1: memref<2x4xi32, #tpu.memory_space<smem>>) -> (i32, i32) {
    %c0_i32 = arith.constant 0 : i32
    %c0_i32_0 = arith.constant 0 : i32
    %c0_i32_1 = arith.constant 0 : i32
    return %c0_i32, %c0_i32_0 : i32, i32
  }
  func.func @transform_19(%arg0: i32, %arg1: memref<2x4xi32, #tpu.memory_space<smem>>) -> (i32, i32) {
    %c0_i32 = arith.constant 0 : i32
    %c0_i32_0 = arith.constant 0 : i32
    %c0_i32_1 = arith.constant 0 : i32
    return %c0_i32, %c0_i32_0 : i32, i32
  }
  func.func @transform_20(%arg0: i32, %arg1: memref<2x4xi32, #tpu.memory_space<smem>>) -> (i32, i32) {
    %c0_i32 = arith.constant 0 : i32
    %c0_i32_0 = arith.constant 0 : i32
    %c0_i32_1 = arith.constant 0 : i32
    return %c0_i32, %c0_i32_0 : i32, i32
  }
  func.func @transform_21(%arg0: i32, %arg1: memref<2x4xi32, #tpu.memory_space<smem>>) -> (i32, i32) {
    %c0_i32 = arith.constant 0 : i32
    %c0_i32_0 = arith.constant 0 : i32
    %c0_i32_1 = arith.constant 0 : i32
    return %c0_i32, %c0_i32_0 : i32, i32
  }
  func.func @transform_22(%arg0: i32, %arg1: memref<2x4xi32, #tpu.memory_space<smem>>) -> (i32, i32) {
    %c0_i32 = arith.constant 0 : i32
    %c0_i32_0 = arith.constant 0 : i32
    %c0_i32_1 = arith.constant 0 : i32
    return %c0_i32, %c0_i32_0 : i32, i32
  }
  func.func @transform_23(%arg0: i32, %arg1: memref<2x4xi32, #tpu.memory_space<smem>>) -> (i32, i32, i32) {
    %c0_i32 = arith.constant 0 : i32
    %c0_i32_0 = arith.constant 0 : i32
    %c0_i32_1 = arith.constant 0 : i32
    %c0_i32_2 = arith.constant 0 : i32
    return %c0_i32, %c0_i32_0, %c0_i32_1 : i32, i32, i32
  }
  func.func @transform_24(%arg0: i32, %arg1: memref<2x4xi32, #tpu.memory_space<smem>>) -> (i32, i32, i32) {
    %c0_i32 = arith.constant 0 : i32
    %c0_i32_0 = arith.constant 0 : i32
    %c0_i32_1 = arith.constant 0 : i32
    %c0_i32_2 = arith.constant 0 : i32
    return %c0_i32, %c0_i32_0, %c0_i32_1 : i32, i32, i32
  }
  func.func @transform_25(%arg0: i32, %arg1: memref<2x4xi32, #tpu.memory_space<smem>>) -> (i32, i32, i32) {
    %c0_i32 = arith.constant 0 : i32
    %c0_i32_0 = arith.constant 0 : i32
    %c0_i32_1 = arith.constant 0 : i32
    %c0_i32_2 = arith.constant 0 : i32
    return %c0_i32, %c0_i32_0, %c0_i32_1 : i32, i32, i32
  }
  func.func @transform_26(%arg0: i32, %arg1: memref<2x4xi32, #tpu.memory_space<smem>>) -> (i32, i32, i32) {
    %c0_i32 = arith.constant 0 : i32
    %c0_i32_0 = arith.constant 0 : i32
    %c0_i32_1 = arith.constant 0 : i32
    %c0_i32_2 = arith.constant 0 : i32
    return %c0_i32, %c0_i32_0, %c0_i32_1 : i32, i32, i32
  }
  func.func @transform_27(%arg0: i32, %arg1: memref<2x4xi32, #tpu.memory_space<smem>>) -> (i32, i32, i32) {
    %c0_i32 = arith.constant 0 : i32
    %c0_i32_0 = arith.constant 0 : i32
    %c0_i32_1 = arith.constant 0 : i32
    %c0_i32_2 = arith.constant 0 : i32
    return %c0_i32, %c0_i32_0, %c0_i32_1 : i32, i32, i32
  }
  func.func @transform_28(%arg0: i32, %arg1: memref<2x4xi32, #tpu.memory_space<smem>>) -> (i32, i32, i32) {
    %c0_i32 = arith.constant 0 : i32
    %c0_i32_0 = arith.constant 0 : i32
    %c0_i32_1 = arith.constant 0 : i32
    %c0_i32_2 = arith.constant 0 : i32
    return %c0_i32, %c0_i32_0, %c0_i32_1 : i32, i32, i32
  }
  func.func @transform_29(%arg0: i32, %arg1: memref<2x4xi32, #tpu.memory_space<smem>>) -> (i32, i32, i32) {
    %c0_i32 = arith.constant 0 : i32
    %c0_i32_0 = arith.constant 0 : i32
    %c0_i32_1 = arith.constant 0 : i32
    %c0_i32_2 = arith.constant 0 : i32
    return %c0_i32, %c0_i32_0, %c0_i32_1 : i32, i32, i32
  }
  func.func @transform_30(%arg0: i32, %arg1: memref<2x4xi32, #tpu.memory_space<smem>>) -> (i32, i32, i32) {
    %c0_i32 = arith.constant 0 : i32
    %c0_i32_0 = arith.constant 0 : i32
    %c0_i32_1 = arith.constant 0 : i32
    %c0_i32_2 = arith.constant 0 : i32
    return %c0_i32, %c0_i32_0, %c0_i32_1 : i32, i32, i32
  }
  func.func @transform_31(%arg0: i32, %arg1: memref<2x4xi32, #tpu.memory_space<smem>>) -> (i32, i32, i32) {
    %c0_i32 = arith.constant 0 : i32
    %c0_i32_0 = arith.constant 0 : i32
    %c0_i32_1 = arith.constant 0 : i32
    %c0_i32_2 = arith.constant 0 : i32
    return %c0_i32, %c0_i32_0, %c0_i32_1 : i32, i32, i32
  }
  func.func @transform_32(%arg0: i32, %arg1: memref<2x4xi32, #tpu.memory_space<smem>>) -> (i32, i32, i32) {
    %c0_i32 = arith.constant 0 : i32
    %c0_i32_0 = arith.constant 0 : i32
    %c0_i32_1 = arith.constant 0 : i32
    %c0_i32_2 = arith.constant 0 : i32
    return %c0_i32, %c0_i32_0, %c0_i32_1 : i32, i32, i32
  }
  func.func @transform_33(%arg0: i32, %arg1: memref<2x4xi32, #tpu.memory_space<smem>>) -> (i32, i32, i32) {
    %c0_i32 = arith.constant 0 : i32
    %c0_i32_0 = arith.constant 0 : i32
    %c0_i32_1 = arith.constant 0 : i32
    %c0_i32_2 = arith.constant 0 : i32
    return %c0_i32, %c0_i32_0, %c0_i32_1 : i32, i32, i32
  }
  func.func @transform_34(%arg0: i32, %arg1: memref<2x4xi32, #tpu.memory_space<smem>>) -> (i32, i32, i32) {
    %c0_i32 = arith.constant 0 : i32
    %c0_i32_0 = arith.constant 0 : i32
    %c0_i32_1 = arith.constant 0 : i32
    %c0_i32_2 = arith.constant 0 : i32
    return %c0_i32, %c0_i32_0, %c0_i32_1 : i32, i32, i32
  }
  func.func @transform_35(%arg0: i32, %arg1: memref<2x4xi32, #tpu.memory_space<smem>>) -> (i32, i32) {
    %c0_i32 = arith.constant 0 : i32
    %c0_i32_0 = arith.constant 0 : i32
    %c0_i32_1 = arith.constant 0 : i32
    return %c0_i32, %c0_i32_0 : i32, i32
  }
  func.func @transform_36(%arg0: i32, %arg1: memref<2x4xi32, #tpu.memory_space<smem>>) -> (i32, i32) {
    %c0_i32 = arith.constant 0 : i32
    %c0_i32_0 = arith.constant 0 : i32
    %c0_i32_1 = arith.constant 0 : i32
    return %c0_i32, %c0_i32_0 : i32, i32
  }
  func.func @transform_37(%arg0: i32, %arg1: memref<2x4xi32, #tpu.memory_space<smem>>) -> (i32, i32) {
    %c0_i32 = arith.constant 0 : i32
    %c0_i32_0 = arith.constant 0 : i32
    %c0_i32_1 = arith.constant 0 : i32
    return %c0_i32, %c0_i32_0 : i32, i32
  }
  func.func @transform_38(%arg0: i32, %arg1: memref<2x4xi32, #tpu.memory_space<smem>>) -> (i32, i32) {
    %c0_i32 = arith.constant 0 : i32
    %c0_i32_0 = arith.constant 0 : i32
    %c0_i32_1 = arith.constant 0 : i32
    return %c0_i32, %c0_i32_0 : i32, i32
  }
  func.func @transform_39(%arg0: i32, %arg1: memref<2x4xi32, #tpu.memory_space<smem>>) -> (i32, i32, i32) {
    %c0_i32 = arith.constant 0 : i32
    %c0_i32_0 = arith.constant 0 : i32
    %c0_i32_1 = arith.constant 0 : i32
    return %arg0, %c0_i32, %c0_i32_0 : i32, i32, i32
  }
  func.func @transform_40(%arg0: i32, %arg1: memref<2x4xi32, #tpu.memory_space<smem>>) -> (i32, i32, i32) {
    %c0_i32 = arith.constant 0 : i32
    %c0_i32_0 = arith.constant 0 : i32
    %c0_i32_1 = arith.constant 0 : i32
    return %arg0, %c0_i32, %c0_i32_0 : i32, i32, i32
  }
}

</mosaic_0001>

<bundles_post_ra>
// kernel: mul.2
= control target key start
LH: loop header
LB: loop body
LE: loop exit
PB: predicated region body
PF: predicated region fallthrough
CT: control target
= control target key end

     0   :  { %s20_s0 = inlined_call_operand.<no memory space> [shape: f32[], index: 0, kind: input, shape index: {}]   ;;  %s21_s1 = inlined_call_operand.vmem [shape: f32[2,16], index: 1, kind: output, shape index: {}]  }
   0x1   :  { %v2_v0 = vstv %s20_s0 }
   0x2   :  { %3 = vst [vmem:[%s21_s1] sm:$0x3] %v2_v0 }

// kernel: mae_forward.1
= control target key start
LH: loop header
LB: loop body
LE: loop exit
PB: predicated region body
PF: predicated region fallthrough
CT: control target
= control target key end

     0   :  { %s6418_s6 = smov 1   ;;  %s6419_s10 = smov 2   ;;  %s7373_s0 = inlined_call_operand.smem [shape: u32[42], index: -1, kind: input, shape index: {}] }
   0x1   :  { %s6494_s5 = sld [smem:[%s7373_s0]]   ;;  %s6420_s14 = smov 3  }
   0x2   :  { %s6499_s9 = sld [smem:[%s7373_s0 + %s6418_s6]]   ;;  %s6421_s18 = smov 4  }
   0x3   :  { %s6504_s13 = sld [smem:[%s7373_s0 + %s6419_s10]]   ;;  %s6422_s22 = smov 5  }
   0x4   :  { %s6509_s17 = sld [smem:[%s7373_s0 + %s6420_s14]]   ;;  %s6423_s26 = smov 6  }
   0x5   :  { %s6514_s21 = sld [smem:[%s7373_s0 + %s6421_s18]]   ;;  %s6424_s30 = smov 7  }
   0x6   :  { %s6519_s25 = sld [smem:[%s7373_s0 + %s6422_s22]]   ;;  %s6425_s4 = smov 8  }
   0x7   :  { %s6524_s29 = sld [smem:[%s7373_s0 + %s6423_s26]]   ;;  %s6426_s10 = smov 9  }
   0x8   :  { %7416 = sst [smem:[#allocation12_spill]] %s6499_s9  ;;  %s6427_s15 = smov 10  }
   0x9   :  { %7417 = sst [smem:[#allocation13_spill]] %s6504_s13  ;;  %s6428_s20 = smov 11  }
   0xa   :  { %7418 = sst [smem:[#allocation14_spill]] %s6509_s17  ;;  %s6429_s26 = smov 12  }
   0xb   :  { %7419 = sst [smem:[#allocation15_spill]] %s6514_s21  ;;  %s6430_s1 = smov 13  }
   0xc   :  { %7420 = sst [smem:[#allocation16_spill]] %s6519_s25  ;;  %s6431_s7 = smov 14  }
   0xd   :  { %7421 = sst [smem:[#allocation17_spill]] %s6524_s29  ;;  %s6433_s22 = smov 16  }
   0xe   :  { %s6529_s3 = sld [smem:[%s7373_s0 + %s6424_s30]]   ;;  %s6434_s28 = smov 17  }
   0xf   :  { %s6534_s8 = sld [smem:[%s7373_s0 + %s6425_s4]]  }
  0x10   :  { %s6539_s14 = sld [smem:[%s7373_s0 + %s6426_s10]]  }
  0x11   :  { %s6544_s19 = sld [smem:[%s7373_s0 + %s6427_s15]]   ;;  %s6432_s15 = smov 15  }
  0x12   :  { %s6549_s24 = sld [smem:[%s7373_s0 + %s6428_s20]]  }
  0x13   :  { %s6554_s30 = sld [smem:[%s7373_s0 + %s6429_s26]]  }
  0x14   :  { %7422 = sst [smem:[#allocation18_spill]] %s6529_s3 }
  0x15   :  { %7423 = sst [smem:[#allocation19_spill]] %s6534_s8 }
  0x16   :  { %7424 = sst [smem:[#allocation20_spill]] %s6539_s14 }
  0x17   :  { %s6559_s6 = sld [smem:[%s7373_s0 + %s6430_s1]]  }
  0x18   :  { %s6564_s12 = sld [smem:[%s7373_s0 + %s6431_s7]]   ;;  %s6435_s7 = smov 18  }
  0x19   :  { %s6569_s20 = sld [smem:[%s7373_s0 + %s6432_s15]]   ;;  %s6436_s15 = smov 19  }
  0x1a   :  { %s6574_s27 = sld [smem:[%s7373_s0 + %s6433_s22]]   ;;  %s6437_s22 = smov 20  }
  0x1b   :  { %s6579_s4 = sld [smem:[%s7373_s0 + %s6434_s28]]   ;;  %s6438_s28 = smov 21  }
  0x1c   :  { %s6584_s13 = sld [smem:[%s7373_s0 + %s6435_s7]]   ;;  %s6439_s7 = smov 22  }
  0x1d   :  { %7425 = sst [smem:[#allocation21_spill]] %s6559_s6 }
  0x1e   :  { %7426 = sst [smem:[#allocation22_spill]] %s6564_s12 }
  0x1f   :  { %7427 = sst [smem:[#allocation23_spill]] %s6569_s20 }
  0x20   :  { %7428 = sst [smem:[#allocation24_spill]] %s6574_s27 }
  0x21   :  { %7429 = sst [smem:[#allocation25_spill]] %s6579_s4 }
  0x22   :  { %7430 = sst [smem:[#allocation26_spill]] %s6584_s13 }
  0x23   :  { %s6589_s20 = sld [smem:[%s7373_s0 + %s6436_s15]]   ;;  %s6440_s15 = smov 23  }
  0x24   :  { %s6594_s27 = sld [smem:[%s7373_s0 + %s6437_s22]]   ;;  %s6441_s22 = smov 24  }
  0x25   :  { %s6599_s4 = sld [smem:[%s7373_s0 + %s6438_s28]]   ;;  %s6442_s28 = smov 25  }
  0x26   :  { %s6604_s13 = sld [smem:[%s7373_s0 + %s6439_s7]]   ;;  %s6443_s7 = smov 26  }
  0x29   :  { %7431 = sst [smem:[#allocation27_spill]] %s6589_s20 }
  0x2a   :  { %7432 = sst [smem:[#allocation28_spill]] %s6594_s27 }
  0x2b   :  { %7433 = sst [smem:[#allocation29_spill]] %s6599_s4 }
  0x2c   :  { %7434 = sst [smem:[#allocation30_spill]] %s6604_s13 }
  0x2d   :  { %s6609_s20 = sld [smem:[%s7373_s0 + %s6440_s15]]   ;;  %s6444_s15 = smov 27  }
  0x2e   :  { %s6614_s27 = sld [smem:[%s7373_s0 + %s6441_s22]]   ;;  %s6445_s22 = smov 28  }
  0x2f   :  { %s6619_s4 = sld [smem:[%s7373_s0 + %s6442_s28]]   ;;  %s6446_s28 = smov 29  }
  0x30   :  { %s6624_s13 = sld [smem:[%s7373_s0 + %s6443_s7]]   ;;  %s6447_s7 = smov 30  }
  0x33   :  { %7435 = sst [smem:[#allocation31_spill]] %s6609_s20 }
  0x34   :  { %7436 = sst [smem:[#allocation32_spill]] %s6614_s27 }
  0x35   :  { %7437 = sst [smem:[#allocation33_spill]] %s6619_s4 }
  0x36   :  { %7438 = sst [smem:[#allocation34_spill]] %s6624_s13 }
  0x37   :  { %s6629_s20 = sld [smem:[%s7373_s0 + %s6444_s15]]   ;;  %s6448_s15 = smov 31  }
  0x38   :  { %s6634_s27 = sld [smem:[%s7373_s0 + %s6445_s22]]   ;;  %s6449_s22 = smov 32  }
  0x39   :  { %s6639_s4 = sld [smem:[%s7373_s0 + %s6446_s28]]   ;;  %s6450_s28 = smov 33  }
  0x3a   :  { %s6644_s13 = sld [smem:[%s7373_s0 + %s6447_s7]]   ;;  %s6451_s7 = smov 34  }
  0x3b   :  { %s6654_s1 = sld [smem:[%s7373_s0 + %s6449_s22]]   ;;  %s6453_s22 = smov 36  }
  0x3c   :  { %s6659_s10 = sld [smem:[%s7373_s0 + %s6450_s28]]  }
  0x3d   :  { %7439 = sst [smem:[#allocation35_spill]] %s6629_s20 }
  0x3e   :  { %7440 = sst [smem:[#allocation36_spill]] %s6634_s27 }
  0x3f   :  { %7441 = sst [smem:[#allocation37_spill]] %s6639_s4  ;;  %s6454_s4 = smov 37  }
  0x40   :  { %7442 = sst [smem:[#allocation38_spill]] %s6644_s13  ;;  %s6455_s13 = smov 38  }
  0x41   :  { %s6649_s20 = sld [smem:[%s7373_s0 + %s6448_s15]]   ;;  %s6452_s15 = smov 35  }
  0x42   :  { %7444 = sst [smem:[#allocation40_spill]] %s6654_s1  ;;  %s89_s1 = sshll.u32 %s6494_s5, 4  ;;  %s90_s1 = int_to_ptr.vmem [resolvable:$true] %s89_s1 }
  0x43   :  { %7445 = sst [smem:[#allocation41_spill]] %s6659_s10  ;;  %p6347_p1 = scmp.lt.s32.totalorder %s90_s1, %s90_s1 }
  0x44   :  { %s6664_s16 = sld [smem:[%s7373_s0 + %s6451_s7]]   ;;  %s6342_s7 = scalar_lea.vmem %s90_s1, 32 }
  0x45   :  { %s6669_s23 = sld [smem:[%s7373_s0 + %s6452_s15]]   ;;  %p6343_p0 = scmp.ne.s32.totalorder %s90_s1, %s6342_s7 }
  0x46   :  { %s6674_s27 = sld [smem:[%s7373_s0 + %s6453_s22]]   ;;  %s6457_s22 = smov 40  }
  0x47   :  { %7443 = sst [smem:[#allocation39_spill]] %s6649_s20  ;;  %s6456_s20 = smov 39  }
  0x48   :  { %s6679_s10 = sld [smem:[%s7373_s0 + %s6454_s4]]   ;;  %s6458_s4 = smov 41  }
  0x49   :  { %s6695_s28 = sld [smem:[%s7373_s0 + %s6457_s22]]   ;;  %p6348_p2 = scmp.lt.s32.totalorder %s6342_s7, %s6342_s7 }
  0x4a   :  { %7446 = sst [smem:[#allocation42_spill]] %s6664_s16 }
  0x4b   :  { %7447 = sst [smem:[#allocation43_spill]] %s6669_s23  ;;  %p6349_p3 = por %p6348_p2, %p6347_p1 }
  0x4c   :  { %7448 = sst [smem:[#allocation44_spill]] %s6674_s27 }
  0x4d   :  { %s6684_s16 = sld [smem:[%s7373_s0 + %s6455_s13]]   ;;  %p6350_p4 = pnand %p6349_p3, %p6343_p0 }
  0x4e   :  { %7449 = sst [smem:[#allocation45_spill]] %s6679_s10 }
  0x4f   :  { %s6689_s23 = sld [smem:[%s7373_s0 + %s6456_s20]]  }
  0x50   :  { %s6700_s13 = sld [smem:[%s7373_s0 + %s6458_s4]]  }
  0x51   :  { %6353 = shalt.err (!%p6350_p4)  }
  0x52   :  { %s6459_s5 = smov [#allocation7]  }
  0x53   :  { %92 = dma.vmem_to_smem %s90_s1, 32, %s6459_s5, [#allocation6] }
  0x54   :  { %6396 = dma.done.wait [#allocation6], 32 }
  0x55   :  { %6397 = vsyncadd [#allocation6], 4294967264 }
  0x56   :  { %94 = sfence }
  0x57   :  { %95 = vsyncpa [#allocation9], 0 }
  0x58   :  { %97 = vsyncpa [#allocation9 + $0x1], 0  ;;  %s6702_s27 = smov 0   ;;  %s6704_s11 = smov 0  }
  0x59   :  { %s6706_s0 = smov 0   ;;  %s6708_s10 = smov 0  }
  0x5a LB: > { %s7450_s12 = sld [smem:[#allocation22_spill]]  ;;  %s6723_s20 = sadd.s32 4294967295, %s6416_s10   ;;  %s6416_s10 = sphi %s6708_s10, %s7509_s10   ;;  %s6412_s0 = sphi %s6706_s0, %s7508_s0   ;;  %s6408_s11 = sphi %s6704_s11, %s7507_s11   ;;  %s6404_s27 = sphi %s6702_s27, %s7506_s27  }
  0x5b   : > { %s7451_s6 = sld [smem:[#allocation21_spill]]  ;;  %s5463_s15 = sadd.s32 4294967294, %s6416_s10  }
  0x5c   : > { %s7452_s29 = sld [smem:[#allocation17_spill]]  ;;  %s6727_s18 = sadd.s32 1, %s6416_s10  }
  0x5d   : > { %s7453_s14 = sld [smem:[#allocation20_spill]]  ;;  %s939_s1 = sadd.s32 1, %s6412_s0 }
  0x5e   : > { %s7454_s8 = sld [smem:[#allocation19_spill]]  ;;  %s936_s22 = ssub.s32 %s6416_s10, %s6727_s18 }
  0x5f   : > { %s7455_s3 = sld [smem:[#allocation18_spill]]  ;;  %p949_p5 = scmp.ne.s32.totalorder %s6412_s0, %s6408_s11 }
  0x60   : > { %s7456_s17 = sld [smem:[#allocation14_spill]]  ;;  %p937_p6 = scmp.eq.s32.totalorder %s936_s22, 0 }
  0x61   : > { %s7457_s21 = sld [smem:[#allocation15_spill]]  ;;  %p950_p7 = scmp.eq.s32.totalorder %s6723_s20, 1 }
  0x62   : > { %7458 = sst [smem:[#allocation46_spill]] %s6412_s0  ;;  %p955_p8 = scmp.ne.s32.totalorder %s6408_s11, %s6404_s27 }
  0x63   : > { %p956_p9 = scmp.eq.s32.totalorder %s5463_s15, 1  ;;  %p6740_p10 = por %p950_p7, %p949_p5 }
  0x64   : > { %s6738_s26 = scalar_select %p937_p6, %s6412_s0, %s939_s1  }
  0x65   : > { %p6744_p11 = por %p956_p9, %p955_p8  ;;  %p5466_p12 = scmp.ge.s32.totalorder %s6416_s10, 1 }
  0x66   : > { %7459 = sst [smem:[#allocation47_spill]] %s6738_s26  ;;  %p1127_p13 = scmp.lt.s32.totalorder %s6416_s10, 3 }
  0x68   : > { %p1128_p0 = pnand %p5466_p12, %p1127_p13 }
  0x69   : > { %s7462_s9 = sld [smem:[#allocation12_spill]] (!%p1128_p0)  ;;  %p1233_p1 = scmp.lt.s32.totalorder (!%p1128_p0), %s6723_s20, 1 }
  0x6a   : > { %1131 = sbr.rel (%p1128_p0) target bundleno = 11469 (0x2ccd), region = 176  ;;  %s7463_s25 = sld [smem:[#allocation16_spill]] (!%p1128_p0) }
  0x6b   : > { %s5472_s1 = sshll.u32 (!%p1128_p0), %s6723_s20, 7  ;;  %s7479_s0 = smov (!%p1128_p0), 24  }
  0x6c   : > { %s1248_s22 = sadd.s32 (!%p1128_p0), 1, %s5472_s1  ;;  %s1252_s26 = sadd.s32 (!%p1128_p0), 3, %s5472_s1 }
  0x6f   : > { %v1261_v0 = vld [vmem:[%s7457_s21 + $0x28] sm:$0xff]  ;;  %v1260_v1 = vld [vmem:[%s7457_s21 + $0x20] sm:$0xff]  ;;  %v1259_v2 = vld [vmem:[%s7457_s21 + $0x18] sm:$0xff]  ;;  %s6755_s7 = scalar_select %p1233_p1, %s6723_s20, 1  ;;  %vm1269_vm0 = vcmask 392192   ;;  %vm1355_vm1 = vcmask 261120  }
  0x70   : > { %5795 = vmatprep.subr.mxu0 %v1261_v0  ;;  %v1258_v3 = vld [vmem:[%s7457_s21 + $0x10] sm:$0xff]  ;;  %v1257_v4 = vld [vmem:[%s7457_s21 + $0x8] sm:$0xff]  ;;  %v1256_v6 = vld [vmem:[%s7457_s21] sm:$0xff]  ;;  %s6772_s21 = sld [smem:[#allocation7 + %s1248_s22]]  ;;  %vm1360_vm2 = vcmask 253952   ;;  %vm1374_vm3 = vcmask 257024  }
  0x71   : > { %5796 = vmatpush3.msra.mxu0 %v1261_v0  ;;  %s7383_s5 = sshll.u32 %s6755_s7, 4  ;;  %v5473_v8 = vld [vmem:[%s7463_s25] ss:$0 sm:$0xff]  ;;  %v1352_v10 = vld [vmem:[%s7456_s17 + $0x8] sm:$0xff]  ;;  %s6776_s25 = sld [smem:[#allocation7 + %s1252_s26]]  ;;  %v1406_v28 = vld [vmem:[%s7454_s8 + $0x18] sm:$0xff] }
  0x72   : > { %5797 = vmatprep.subr.mxu0 %v1260_v1  ;;  %s1237_s15 = scalar_lea.vmem %s7462_s9, %s7383_s5  ;;  %s1250_s5 = sadd.s32 2, %s5472_s1  ;;  %v1351_v13 = vld [vmem:[%s7456_s17] sm:$0xff]  ;;  %v6460_v29 = vmov 0.0   ;;  %v1405_v30 = vld [vmem:[%s7454_s8 + $0x10] sm:$0xff]  ;;  %vm6461_vm4 = vmmov 0   ;;  %v1404_v31 = vld [vmem:[%s7454_s8 + $0x8] sm:$0xff] }
  0x73   : > { %5798 = vmatpush3.msra.mxu0 %v1260_v1  ;;  %v1254_v5 = vld [vmem:[%s1237_s15] sm:$0xff]  ;;  %v1255_v7 = vld [vmem:[%s1237_s15 + $0x8] sm:$0xff]  ;;  %s6769_s9 = sld [smem:[#allocation7 + %s5472_s1]]  ;;  %5810 = vmatprep.subr.mxu1 %v6460_v29  ;;  %s7404_s26 = smov 96   ;;  %vm1490_vm5 = vcmask 64512   ;;  %vm1584_vm6 = vcmask 1043456  }
  0x74   : > { %5799 = vmatprep.subr.mxu0 %v1259_v2  ;;  %5807 = vmatprep.mubr.msk.f32.mxu0 %vm1269_vm0, %v1254_v5  ;;  %s6774_s15 = sld [smem:[#allocation7 + %s1250_s5]]  ;;  %v1403_v32 = vld [vmem:[%s7454_s8] sm:$0xff]  ;;  %vm1566_vm7 = vcmask 27648   ;;  %vm1580_vm8 = vcmask 31744   ;;  %vm2171_vm9 = vcmask 130048   ;;  %vm2173_vm10 = vcmask 195584  }
  0x75   : > { %5800 = vmatpush3.msra.mxu0 %v1259_v2  ;;  %5818 = vmatprep.mubr.msk.f32.mxu1 %vm6461_vm4, %v6460_v29  ;;  %v5476_v37 = vld [vmem:[%s7452_s29] ss:$0 sm:$0xff]  ;;  %vm3743_vm11 = vcmask 125952   ;;  %vm3756_vm12 = vcmask 122880   ;;  %vm4742_vm13 = vcmask 97280   ;;  %vm5041_vm14 = vcmask 523264  }
  0x76   : > { %5801 = vmatprep.subr.mxu0 %v1258_v3  ;;  %s1362_s17 = scalar_lea.vmem [#allocation2], %s6772_s21  ;;  %5811 = vmatpush3.msra.mxu1 %v1406_v28  ;;  %v5477_v39 = vld [vmem:[%s7455_s3] ss:$0 sm:$0xff]  ;;  %vm5285_vm15 = vcmask 7168  }
  0x77   : > { %5802 = vmatpush3.msra.mxu0 %v1258_v3  ;;  %s1368_s5 = scalar_lea.vmem [#allocation2], %s6776_s25  ;;  %5812 = vmatprep.subr.mxu1 %v6460_v29  ;;  %v5478_v42 = vld [vmem:[%s7453_s14] ss:$0 sm:$0xff] }
  0x78   : > { %5803 = vmatprep.subr.mxu0 %v1257_v4  ;;  %5813 = vmatpush3.msra.mxu1 %v1405_v30 }
  0x79   : > { %5804 = vmatpush3.msra.mxu0 %v1257_v4  ;;  %s1358_s1 = scalar_lea.vmem [#allocation2], %s6769_s9  ;;  %5814 = vmatprep.subr.mxu1 %v6460_v29 }
  0x7a   : > { %5805 = vmatprep.subr.mxu0 %v1256_v6  ;;  %s1365_s22 = scalar_lea.vmem [#allocation2], %s6774_s15  ;;  %5815 = vmatpush3.msra.mxu1 %v1404_v31 }
  0x7b   : > { %5806 = vmatpush3.msra.mxu0 %v1256_v6  ;;  %5816 = vmatprep.subr.mxu1 %v6460_v29 }
  0x7c   : > { %5808 = vmatmul.mubr.msk.f32.vlgmr.msra.gmra.mxu0 %vm1269_vm0, %v1255_v7  ;;  %5836 = vmatprep.subr.mxu0 %v6460_v29 }
  0x7d   : > { %5838 = vmatprep.mubr.msk.f32.mxu0 %vm6461_vm4, %v6460_v29  ;;  %5817 = vmatpush3.msra.mxu1 %v1403_v32 }
  0x7e   : > { %5821 = vmatprep.subr.mxu1 %v6460_v29 }
 0x13c   : > { %v5809_v9 = vpop.f32.mrf.mxu0 }
 0x13d   : > { %v1348_v11 = vadd.f32 %v5809_v9, %v5473_v8 }
 0x13e   : > { %v1342_v12 = vpop.f32.mrf.mxu0 }
 0x13f   : > { %v1354_v14 = vadd.f32 %v1352_v10, %v1348_v11  ;;  %v1343_v15 = vadd.f32 %v5473_v8, %v1342_v12 }
 0x141   : > { %1357 = vst.msk [vmem:[#allocation2 + $0x8] sm:$0xff] %vm1355_vm1, %v1354_v14  ;;  %v1353_v16 = vadd.f32 %v1351_v13, %v1343_v15 }
 0x143   : > { %1356 = vst.msk [vmem:[#allocation2] sm:$0xff] %vm1355_vm1, %v1353_v16 }
 0x14a   : > { %v1359_v17 = vld [vmem:[%s1358_s1] sm:$0x1]  ;;  %s7387_s1 = smov 88  }
 0x14b   : > { %v1363_v18 = vld [vmem:[%s1362_s17] sm:$0x1]  ;;  %1361 = vst.msk [vmem:[#allocation3] sm:$0x1] %vm1360_vm2, %v1359_v17  ;;  %s7386_s17 = smov 64  }
 0x14c   : > { %v1366_v19 = vld [vmem:[%s1365_s22] sm:$0x1]  ;;  %1364 = vst.msk [vmem:[#allocation3 + $0x1] sm:$0x1] %vm1360_vm2, %v1363_v18  ;;  %s7389_s22 = smov 80  }
 0x14d   : > { %1367 = vst.msk [vmem:[#allocation3 + $0x2] sm:$0x1] %vm1360_vm2, %v1366_v19  ;;  %v1369_v20 = vld [vmem:[%s1368_s5] sm:$0x1]  ;;  %s7402_s5 = smov 120  }
 0x14e   : > { %1370 = vst.msk [vmem:[#allocation3 + $0x3] sm:$0x1] %vm1360_vm2, %v1369_v20 }
 0x155   : > { %v6784_v21 = vld [vmem:[#allocation3] sm:$0xf] }
 0x156   : > { %v1375_v22 = vsel %vm1374_vm3, %v6784_v21, 0.0 }
 0x157   : > { %1376 = vadd.xlane.f32.xlu0 %v1375_v22 }
 0x1e0   : > { %v1377_v23 = vpop.xlane.xlu0 %1376 }
 0x1e1   : > { %v1379_v24 = vmul.f32 0.03125, %v1377_v23 }
 0x1e3   : > { %v1380_v25 = vsub.f32 %v6784_v21, %v1379_v24 }
 0x1e5   : > { %v1381_v26 = vmul.f32 %v1380_v25, %v1380_v25 }
 0x1e7   : > { %v1382_v27 = vsel %vm1374_vm3, %v1381_v26, 0.0 }
 0x1e8   : > { %1383 = vadd.xlane.f32.xlu0 %v1382_v27 }
 0x271   : > { %v1384_v33 = vpop.xlane.xlu0 %1383 }
 0x272   : > { %v1385_v34 = vmul.f32 0.03125, %v1384_v33 }
 0x274   : > { %v1386_v35 = vadd.f32 1e-05, %v1385_v34 }
 0x276   : > { %6248 = vrsqrt.f32 %v1386_v35 }
 0x283   : > { %v6249_v36 = vpop.eup %6248 }
 0x284   : > { %v1388_v38 = vmul.f32 %v6249_v36, %v1380_v25 }
 0x286   : > { %v1395_v40 = vmul.f32 %v5476_v37, %v1388_v38 }
 0x288   : > { %v1402_v41 = vadd.f32 %v5477_v39, %v1395_v40 }
 0x28a   : > { %5819 = vmatmul.mubr.msk.f32.vlgmr.msra.gmra.mxu1 %vm1355_vm1, %v1402_v41 }
 0x28b   : > { %5823 = vmatprep.mubr.msk.f32.mxu1 %vm6461_vm4, %v6460_v29 }
 0x34a   : > { %v1483_v43 = vpop.f32.mrf.mxu1 }
 0x34b   : > { %v6810_v44 = vadd.f32 %v5478_v42, %v1483_v43 }
 0x34c   : > { %v5820_v45 = vpop.f32.mrf.mxu1 }
 0x34d   : > { %1578 = vrot.lane.b32.xlu0 %v6810_v44, %s7386_s17  ;;  %1488 = vrot.lane.b32.xlu1 %v6810_v44, %s7404_s26  ;;  %s7395_s17 = smov 112   ;;  %v2178_v45 = vld [vmem:[%s6544_s19 + $0x18] sm:$0xff] }
 0x351   : > { %1659 = vrot.lane.b32.xlu0 %v6810_v44, %s7387_s1  ;;  %s7390_s1 = smov 72  }
 0x3bf   : > { %v1489_v46 = vpop.permute.xlu1 %1488  ;;  %v1579_v47 = vpop.permute.xlu0 %1578 }
 0x3c0   : > { %5822 = vmatpush3.xpose.msk.msra.mxu1 %vm1490_vm5, %v1489_v46  ;;  %v2177_v46 = vld [vmem:[%s6544_s19 + $0x10] sm:$0xff] }
 0x3c1   : > { %5826 = vmatprep.subr.mxu1 %v6460_v29 }
 0x3c3   : > { %5824 = vmatmul.mubr.msk.f32.vlgmr.msra.gmra.mxu1 %vm1490_vm5, %v6810_v44  ;;  %v1660_v57 = vpop.permute.xlu0 %1659 }
 0x3c4   : > { %5827 = vmatpush3.msk.msra.mxu1 %vm1584_vm6, %v1579_v47  ;;  %5828 = vmatprep.mubr.msk.f32.mxu1 %vm6461_vm4, %v6460_v29  ;;  %v2176_v47 = vld [vmem:[%s6544_s19 + $0x8] sm:$0xff] }
 0x3c5   : > { %5831 = vmatprep.subr.mxu1 %v6460_v29 }
 0x483   : > { %v1561_v48 = vpop.f32.mrf.mxu1 }
 0x484   : > { %v1565_v49 = vmul.f32 0.35355338, %v1561_v48  ;;  %v2175_v48 = vld [vmem:[%s6544_s19] sm:$0xff] }
 0x485   : > { %v5825_v50 = vpop.f32.mrf.mxu1 }
 0x486   : > { %v1567_v51 = vsel %vm1566_vm7, %v1565_v49, -inf }
 0x487   : > { %1568 = vmax.xlane.f32.xlu1 %v1567_v51 }
 0x498   : > { %1826 = vrot.lane.b32.xlu1 %v6810_v44, %s7389_s22  ;;  %s7392_s22 = smov 104  }
 0x510   : > { %v1569_v52 = vpop.xlane.xlu1 %1568 }
 0x511   : > { %v1570_v53 = vsub.f32 %v1565_v49, %v1569_v52 }
 0x513   : > { %v1571_v54 = vmul.f32 1.442695, %v1570_v53 }
 0x514   : > { %v1827_v63 = vpop.permute.xlu1 %1826 }
 0x515   : > { %6250 = vpow2.f32 %v1571_v54 }
 0x522   : > { %v6251_v55 = vpop.eup %6250 }
 0x523   : > { %v1573_v56 = vsel %vm1566_vm7, %v6251_v55, 0.0 }
 0x524   : > { %1574 = vadd.xlane.f32.xlu0 %v1573_v56 }
 0x53a   : > { %1657 = vrot.lane.b32.xlu0 %v6810_v44, %s7402_s5  ;;  %s7467_s5 = smov 88  }
 0x53e   : > { %1824 = vrot.lane.b32.xlu0 %v6810_v44, %s7395_s17  ;;  %s7399_s17 = smov 16  }
 0x542   : > { %1993 = vrot.lane.b32.xlu0 %v6810_v44, %s7390_s1  ;;  %s7391_s1 = smov 48  }
 0x546   : > { %1991 = vrot.lane.b32.xlu0 %v6810_v44, %s7392_s22  ;;  %s7397_s22 = smov 56  }
 0x5ad   : > { %v1575_v58 = vpop.xlane.xlu0 %1574 }
 0x5ae   : > { %6252 = vrcp.f32 %v1575_v58 }
 0x5b1   : > { %v1658_v59 = vpop.permute.xlu0 %1657 }
 0x5b5   : > { %v1825_v62 = vpop.permute.xlu0 %1824 }
 0x5b9   : > { %v1994_v0 = vpop.permute.xlu0 %1993 }
 0x5bb   : > { %v6253_v60 = vpop.eup %6252 }
 0x5bc   : > { %v1577_v61 = vmul.f32 %v6253_v60, %v6251_v55 }
 0x5bd   : > { %v1992_v1 = vpop.permute.xlu0 %1991 }
 0x5be   : > { %5829 = vmatmul.mubr.msk.f32.vlgmr.msra.gmra.mxu1 %vm1580_vm8, %v1577_v61 }
 0x5bf   : > { %5832 = vmatpush3.xpose.msk.msra.mxu1 %vm1490_vm5, %v1660_v57  ;;  %5833 = vmatprep.mubr.msk.f32.mxu1 %vm6461_vm4, %v6460_v29 }
 0x5c0   : > { %5841 = vmatprep.subr.mxu1 %v6460_v29 }
 0x5c2   : > { %5834 = vmatmul.mubr.msk.f32.vlgmr.msra.gmra.mxu1 %vm1490_vm5, %v1658_v59 }
 0x5c3   : > { %5842 = vmatpush3.xpose.msk.msra.mxu1 %vm1490_vm5, %v1827_v63  ;;  %5843 = vmatprep.mubr.msk.f32.mxu1 %vm6461_vm4, %v6460_v29 }
 0x5c4   : > { %5851 = vmatprep.subr.mxu1 %v6460_v29 }
 0x5c6   : > { %5844 = vmatmul.mubr.msk.f32.vlgmr.msra.gmra.mxu1 %vm1490_vm5, %v1825_v62  ;;  %v5497_v62 = vld [vmem:[%s6549_s24] ss:$0 sm:$0xff] }
 0x5c7   : > { %5852 = vmatpush3.xpose.msk.msra.mxu1 %vm1490_vm5, %v1994_v0  ;;  %5853 = vmatprep.mubr.msk.f32.mxu1 %vm6461_vm4, %v6460_v29 }
 0x5c8   : > { %5861 = vmatprep.subr.mxu1 %v6460_v29 }
 0x5ca   : > { %5854 = vmatmul.mubr.msk.f32.vlgmr.msra.gmra.mxu1 %vm1490_vm5, %v1992_v1 }
 0x5cb   : > { %5869 = vmatprep.mubr.msk.f32.mxu1 %vm6461_vm4, %v6460_v29  ;;  %5862 = vmatpush3.msra.mxu1 %v2178_v45 }
 0x5cc   : > { %5863 = vmatprep.subr.mxu1 %v6460_v29 }
 0x5cd   : > { %5864 = vmatpush3.msra.mxu1 %v2177_v46 }
 0x5ce   : > { %5865 = vmatprep.subr.mxu1 %v6460_v29 }
 0x5cf   : > { %5866 = vmatpush3.msra.mxu1 %v2176_v47 }
 0x5d0   : > { %5867 = vmatprep.subr.mxu1 %v6460_v29 }
 0x5d1   : > { %5868 = vmatpush3.msra.mxu1 %v2175_v48 }
 0x5d2   : > { %5883 = vmatprep.subr.mxu1 %v6460_v29 }
 0x67e   : > { %v6856_v2 = vpop.f32.mrf.mxu1 }
 0x680   : > { %v5830_v3 = vpop.f32.mrf.mxu1 }
 0x682   : > { %v1731_v4 = vpop.f32.mrf.mxu1 }
 0x683   : > { %v1735_v5 = vmul.f32 0.35355338, %v1731_v4 }
 0x684   : > { %v5835_v6 = vpop.f32.mrf.mxu1 }
 0x685   : > { %v1736_v7 = vsel %vm1566_vm7, %v1735_v5, -inf }
 0x686   : > { %1737 = vmax.xlane.f32.xlu0 %v1736_v7  ;;  %v1898_v8 = vpop.f32.mrf.mxu1 }
 0x687   : > { %v1902_v9 = vmul.f32 0.35355338, %v1898_v8  ;;  %v2293_v8 = vld [vmem:[%s7450_s12 + $0x18] sm:$0xff] }
 0x688   : > { %v5845_v10 = vpop.f32.mrf.mxu1 }
 0x689   : > { %v1903_v11 = vsel %vm1566_vm7, %v1902_v9, -inf  ;;  %v2290_v10 = vld [vmem:[%s7450_s12] sm:$0xff] }
 0x68a   : > { %1904 = vmax.xlane.f32.xlu1 %v1903_v11  ;;  %v2065_v12 = vpop.f32.mrf.mxu1 }
 0x68b   : > { %v2069_v13 = vmul.f32 0.35355338, %v2065_v12 }
 0x68c   : > { %v5855_v14 = vpop.f32.mrf.mxu1 }
 0x68d   : > { %v2070_v15 = vsel %vm1566_vm7, %v2069_v13, -inf }
 0x68e   : > { %2071 = vmax.xlane.f32.xlu0 %v2070_v15  ;;  %v5498_v15 = vld [vmem:[%s6554_s30] ss:$0 sm:$0xff] }
 0x69b   : > { %1914 = vrot.lane.b32.xlu1 %v6810_v44, %s7391_s1  ;;  %s7394_s1 = smov 40  }
 0x70f   : > { %v1738_v16 = vpop.xlane.xlu0 %1737 }
 0x710   : > { %v1739_v17 = vsub.f32 %v1735_v5, %v1738_v16 }
 0x712   : > { %v1740_v18 = vmul.f32 1.442695, %v1739_v17  ;;  %v5499_v17 = vld [vmem:[%s7451_s6] ss:$0 sm:$0xff] }
 0x713   : > { %v1905_v19 = vpop.xlane.xlu1 %1904 }
 0x714   : > { %6254 = vpow2.f32 %v1740_v18  ;;  %v1906_v20 = vsub.f32 %v1902_v9, %v1905_v19  ;;  %v2291_v9 = vld [vmem:[%s7450_s12 + $0x8] sm:$0xff] }
 0x716   : > { %v1907_v22 = vmul.f32 1.442695, %v1906_v20 }
 0x717   : > { %v2072_v23 = vpop.xlane.xlu0 %2071  ;;  %v1915_v34 = vpop.permute.xlu1 %1914 }
 0x718   : > { %6256 = vpow2.f32 %v1907_v22  ;;  %v2073_v24 = vsub.f32 %v2069_v13, %v2072_v23 }
 0x71a   : > { %v2074_v25 = vmul.f32 1.442695, %v2073_v24 }
 0x71c   : > { %6258 = vpow2.f32 %v2074_v25 }
 0x721   : > { %v6255_v26 = vpop.eup %6254 }
 0x722   : > { %v1742_v27 = vsel %vm1566_vm7, %v6255_v26, 0.0 }
 0x723   : > { %1743 = vadd.xlane.f32.xlu0 %v1742_v27 }
 0x725   : > { %v6257_v28 = vpop.eup %6256 }
 0x726   : > { %v1909_v30 = vsel %vm1566_vm7, %v6257_v28, 0.0 }
 0x727   : > { %1910 = vadd.xlane.f32.xlu0 %v1909_v30 }
 0x729   : > { %v6259_v31 = vpop.eup %6258 }
 0x72a   : > { %v2076_v32 = vsel %vm1566_vm7, %v6259_v31, 0.0 }
 0x72b   : > { %2077 = vadd.xlane.f32.xlu1 %v2076_v32 }
 0x73c   : > { %2081 = vrot.lane.b32.xlu1 %v6810_v44, %s7394_s1  ;;  %s7400_s1 = smov 8  }
 0x73d   : > { %1747 = vrot.lane.b32.xlu0 %v6810_v44, %s7397_s22  ;;  %s7398_s22 = smov 24  }
 0x7ac   : > { %v1744_v33 = vpop.xlane.xlu0 %1743 }
 0x7ad   : > { %6260 = vrcp.f32 %v1744_v33 }
 0x7b0   : > { %v1911_v35 = vpop.xlane.xlu0 %1910 }
 0x7b1   : > { %6262 = vrcp.f32 %v1911_v35 }
 0x7b4   : > { %v2078_v36 = vpop.xlane.xlu1 %2077  ;;  %v1748_v37 = vpop.permute.xlu0 %1747 }
 0x7b5   : > { %6264 = vrcp.f32 %v2078_v36  ;;  %5837 = vmatpush3.msk.msra.mxu0 %vm1584_vm6, %v1748_v37 }
 0x7b6   : > { %5846 = vmatprep.subr.mxu0 %v6460_v29 }
 0x7b8   : > { %v2082_v42 = vpop.permute.xlu1 %2081 }
 0x7ba   : > { %v6261_v38 = vpop.eup %6260 }
 0x7bb   : > { %v1746_v39 = vmul.f32 %v6261_v38, %v6255_v26 }
 0x7bd   : > { %5839 = vmatmul.mubr.msk.f32.vlgmr.msra.gmra.mxu0 %vm1580_vm8, %v1746_v39 }
 0x7be   : > { %v6263_v40 = vpop.eup %6262  ;;  %5847 = vmatpush3.msk.msra.mxu0 %vm1584_vm6, %v1915_v34  ;;  %5848 = vmatprep.mubr.msk.f32.mxu0 %vm6461_vm4, %v6460_v29 }
 0x7bf   : > { %5856 = vmatprep.subr.mxu0 %v6460_v29  ;;  %v1913_v41 = vmul.f32 %v6263_v40, %v6257_v28 }
 0x7c1   : > { %5849 = vmatmul.mubr.msk.f32.vlgmr.msra.gmra.mxu0 %vm1580_vm8, %v1913_v41 }
 0x7c2   : > { %v6265_v43 = vpop.eup %6264  ;;  %5857 = vmatpush3.msk.msra.mxu0 %vm1584_vm6, %v2082_v42  ;;  %5858 = vmatprep.mubr.msk.f32.mxu0 %vm6461_vm4, %v6460_v29 }
 0x7c3   : > { %v2080_v44 = vmul.f32 %v6265_v43, %v6259_v31  ;;  %5872 = vmatprep.subr.mxu0 %v6460_v29 }
 0x7c5   : > { %5859 = vmatmul.mubr.msk.f32.vlgmr.msra.gmra.mxu0 %vm1580_vm8, %v2080_v44 }
 0x7c6   : > { %5880 = vmatprep.mubr.msk.f32.mxu0 %vm6461_vm4, %v6460_v29  ;;  %5873 = vmatpush3.msra.mxu0 %v2293_v8 }
 0x7c7   : > { %5874 = vmatprep.subr.mxu0 %v6460_v29 }
 0x87d   : > { %v1820_v49 = vpop.f32.mrf.mxu0 }
 0x87e   : > { %2159 = vrot.lane.b32.xlu1 %v1820_v49, %s7400_s1  ;;  %s7466_s1 = sld [smem:[#allocation25_spill]] }
 0x87f   : > { %v5840_v50 = vpop.f32.mrf.mxu0 }
 0x881   : > { %v1987_v51 = vpop.f32.mrf.mxu0 }
 0x882   : > { %2163 = vrot.lane.b32.xlu0 %v1987_v51, %s7399_s17  ;;  %s7465_s17 = sld [smem:[#allocation23_spill]] }
 0x883   : > { %v5850_v52 = vpop.f32.mrf.mxu0 }
 0x885   : > { %v2154_v53 = vpop.f32.mrf.mxu0 }
 0x886   : > { %2167 = vrot.lane.b32.xlu1 %v2154_v53, %s7398_s22  ;;  %s7464_s22 = sld [smem:[#allocation24_spill]] }
 0x887   : > { %v5860_v54 = vpop.f32.mrf.mxu0 }
 0x888   : > { %v5500_v38 = vld [vmem:[%s7465_s17] ss:$0 sm:$0xff] }
 0x88c   : > { %v2419_v20 = vld [vmem:[%s7464_s22 + $0x78] sm:$0xff]  ;;  %v2418_v22 = vld [vmem:[%s7464_s22 + $0x70] sm:$0xff]  ;;  %v2417_v23 = vld [vmem:[%s7464_s22 + $0x68] sm:$0xff] }
 0x88d   : > { %v2416_v24 = vld [vmem:[%s7464_s22 + $0x60] sm:$0xff]  ;;  %v2415_v25 = vld [vmem:[%s7464_s22 + $0x58] sm:$0xff]  ;;  %v2414_v26 = vld [vmem:[%s7464_s22 + $0x50] sm:$0xff] }
 0x88e   : > { %v2413_v27 = vld [vmem:[%s7464_s22 + $0x48] sm:$0xff]  ;;  %v2412_v28 = vld [vmem:[%s7464_s22 + $0x40] sm:$0xff]  ;;  %v2411_v30 = vld [vmem:[%s7464_s22 + $0x38] sm:$0xff] }
 0x88f   : > { %v2410_v31 = vld [vmem:[%s7464_s22 + $0x30] sm:$0xff]  ;;  %v2409_v32 = vld [vmem:[%s7464_s22 + $0x28] sm:$0xff]  ;;  %v2408_v33 = vld [vmem:[%s7464_s22 + $0x20] sm:$0xff] }
 0x890   : > { %v2407_v34 = vld [vmem:[%s7464_s22 + $0x18] sm:$0xff]  ;;  %v2406_v35 = vld [vmem:[%s7464_s22 + $0x10] sm:$0xff]  ;;  %v2405_v36 = vld [vmem:[%s7464_s22 + $0x8] sm:$0xff] }
 0x891   : > { %v2404_v37 = vld [vmem:[%s7464_s22] sm:$0xff] }
 0x8f0   : > { %v2160_v55 = vpop.permute.xlu1 %2159 }
 0x8f1   : > { %v2170_v57 = vsel %vm1490_vm5, %v6856_v2, %v2160_v55 }
 0x8f4   : > { %v2164_v56 = vpop.permute.xlu0 %2163 }
 0x8f5   : > { %v2172_v58 = vsel %vm2171_vm9, %v2170_v57, %v2164_v56 }
 0x8f8   : > { %v2168_v59 = vpop.permute.xlu1 %2167 }
 0x8f9   : > { %v2174_v60 = vsel %vm2173_vm10, %v2172_v58, %v2168_v59 }
 0x8fa   : > { %5870 = vmatmul.mubr.msk.f32.vlgmr.msra.gmra.mxu1 %vm1355_vm1, %v2174_v60 }
 0x8fb   : > { %5915 = vmatprep.mubr.msk.f32.mxu1 %vm6461_vm4, %v6460_v29  ;;  %5884 = vmatpush3.msra.mxu1 %v2419_v20  ;;  %v5508_v20 = vld [vmem:[%s7454_s8 + $0x20] sm:$0xff] }
 0x8fc   : > { %5885 = vmatprep.subr.mxu1 %v6460_v29 }
 0x8fd   : > { %5886 = vmatpush3.msra.mxu1 %v2418_v22 }
 0x8fe   : > { %5887 = vmatprep.subr.mxu1 %v6460_v29 }
 0x8ff   : > { %5888 = vmatpush3.msra.mxu1 %v2417_v23 }
 0x900   : > { %5889 = vmatprep.subr.mxu1 %v6460_v29 }
 0x901   : > { %5890 = vmatpush3.msra.mxu1 %v2416_v24 }
 0x902   : > { %5891 = vmatprep.subr.mxu1 %v6460_v29 }
 0x903   : > { %5892 = vmatpush3.msra.mxu1 %v2415_v25 }
 0x904   : > { %5893 = vmatprep.subr.mxu1 %v6460_v29 }
 0x905   : > { %5894 = vmatpush3.msra.mxu1 %v2414_v26  ;;  %v5506_v26 = vld [vmem:[%s7452_s29 + $0x1] ss:$0 sm:$0xff]  ;;  %s7476_s29 = smov 8  }
 0x906   : > { %5895 = vmatprep.subr.mxu1 %v6460_v29 }
 0x907   : > { %5896 = vmatpush3.msra.mxu1 %v2413_v27 }
 0x908   : > { %5897 = vmatprep.subr.mxu1 %v6460_v29 }
 0x909   : > { %5898 = vmatpush3.msra.mxu1 %v2412_v28  ;;  %v5507_v28 = vld [vmem:[%s7455_s3 + $0x1] ss:$0 sm:$0xff]  ;;  %s7469_s3 = smov 120  }
 0x90a   : > { %5899 = vmatprep.subr.mxu1 %v6460_v29 }
 0x90b   : > { %5900 = vmatpush3.msra.mxu1 %v2411_v30 }
 0x90c   : > { %5901 = vmatprep.subr.mxu1 %v6460_v29 }
 0x90d   : > { %5902 = vmatpush3.msra.mxu1 %v2410_v31 }
 0x90e   : > { %5903 = vmatprep.subr.mxu1 %v6460_v29 }
 0x90f   : > { %5904 = vmatpush3.msra.mxu1 %v2409_v32  ;;  %v5513_v32 = vld [vmem:[%s7453_s14 + $0x1] ss:$0 sm:$0xff]  ;;  %s7473_s14 = smov 104  }
 0x910   : > { %5905 = vmatprep.subr.mxu1 %v6460_v29 }
 0x911   : > { %5906 = vmatpush3.msra.mxu1 %v2408_v33 }
 0x912   : > { %5907 = vmatprep.subr.mxu1 %v6460_v29 }
 0x913   : > { %5908 = vmatpush3.msra.mxu1 %v2407_v34 }
 0x914   : > { %5909 = vmatprep.subr.mxu1 %v6460_v29 }
 0x915   : > { %5910 = vmatpush3.msra.mxu1 %v2406_v35 }
 0x916   : > { %5911 = vmatprep.subr.mxu1 %v6460_v29 }
 0x917   : > { %5912 = vmatpush3.msra.mxu1 %v2405_v36 }
 0x918   : > { %5913 = vmatprep.subr.mxu1 %v6460_v29 }
 0x919   : > { %5914 = vmatpush3.msra.mxu1 %v2404_v37 }
 0x91a   : > { %5959 = vmatprep.subr.mxu1 %v6460_v29 }
 0x9ba   : > { %v2248_v61 = vpop.f32.mrf.mxu1 }
 0x9bb   : > { %v2252_v63 = vadd.f32 %v2248_v61, %v6784_v21  ;;  %v2292_v21 = vld [vmem:[%s7450_s12 + $0x10] sm:$0xff] }
 0x9bc   : > { %v5871_v0 = vpop.f32.mrf.mxu1  ;;  %5875 = vmatpush3.msra.mxu0 %v2292_v21  ;;  %v5503_v21 = vld [vmem:[%s7466_s1] ss:$0 sm:$0xff] }
 0x9bd   : > { %v6905_v1 = vadd.f32 %v5497_v62, %v2252_v63  ;;  %5876 = vmatprep.subr.mxu0 %v6460_v29 }
 0x9be   : > { %5877 = vmatpush3.msra.mxu0 %v2291_v9 }
 0x9bf   : > { %v2263_v2 = vsel %vm1374_vm3, %v6905_v1, 0.0  ;;  %5878 = vmatprep.subr.mxu0 %v6460_v29 }
 0x9c0   : > { %2264 = vadd.xlane.f32.xlu0 %v2263_v2  ;;  %5879 = vmatpush3.msra.mxu0 %v2290_v10 }
 0x9c1   : > { %5918 = vmatprep.subr.mxu0 %v6460_v29 }
 0xa49   : > { %v2265_v3 = vpop.xlane.xlu0 %2264 }
 0xa4a   : > { %v2266_v4 = vmul.f32 0.03125, %v2265_v3 }
 0xa4c   : > { %v2267_v5 = vsub.f32 %v6905_v1, %v2266_v4 }
 0xa4e   : > { %v2268_v6 = vmul.f32 %v2267_v5, %v2267_v5 }
 0xa50   : > { %v2269_v7 = vsel %vm1374_vm3, %v2268_v6, 0.0 }
 0xa51   : > { %2270 = vadd.xlane.f32.xlu1 %v2269_v7 }
 0xada   : > { %v2271_v11 = vpop.xlane.xlu1 %2270 }
 0xadb   : > { %v2272_v12 = vmul.f32 0.03125, %v2271_v11 }
 0xadd   : > { %v2273_v13 = vadd.f32 1e-05, %v2272_v12 }
 0xadf   : > { %6266 = vrsqrt.f32 %v2273_v13 }
 0xaec   : > { %v6267_v14 = vpop.eup %6266 }
 0xaed   : > { %v2275_v16 = vmul.f32 %v6267_v14, %v2267_v5 }
 0xaef   : > { %v2282_v18 = vmul.f32 %v5498_v15, %v2275_v16 }
 0xaf1   : > { %v2289_v19 = vadd.f32 %v5499_v17, %v2282_v18  ;;  %v5511_v18 = vld [vmem:[%s7454_s8 + $0x38] sm:$0xff] }
 0xaf3   : > { %5881 = vmatmul.mubr.msk.f32.vlgmr.msra.gmra.mxu0 %vm1355_vm1, %v2289_v19  ;;  %v5509_v19 = vld [vmem:[%s7454_s8 + $0x28] sm:$0xff] }
 0xaf4   : > { %5926 = vmatprep.mubr.msk.f32.mxu0 %vm6461_vm4, %v6460_v29  ;;  %5919 = vmatpush3.msra.mxu0 %v5511_v18 }
 0xaf5   : > { %5920 = vmatprep.subr.mxu0 %v6460_v29 }
 0xbb3   : > { %v2370_v39 = vpop.f32.mrf.mxu0 }
 0xbb4   : > { %v2371_v40 = vadd.f32 %v5500_v38, %v2370_v39 }
 0xbb5   : > { %v5882_v41 = vpop.f32.mrf.mxu0 }
 0xbb6   : > { %v2375_v42 = vmul.f32 0.70710677, %v2371_v40  ;;  %v2374_v5 = vmul.f32 0.5, %v2371_v40 }
 0xbb8   : > { %v5502_v43 = vclamps-f32 %v2375_v42, 4.0 }
 0xbba   : > { %v2378_v44 = vmul.f32 %v5502_v43, %v5502_v43 }
 0xbbc   : > { %v2379_v45 = vmul.f32 -2.7261424e-10, %v2378_v44  ;;  %v2392_v46 = vmul.f32 -1.45660715e-05, %v2378_v44 }
 0xbbe   : > { %v2380_v47 = vadd.f32 2.7706815e-08, %v2379_v45  ;;  %v2393_v48 = vadd.f32 -0.00021337405, %v2392_v46 }
 0xbc0   : > { %v2381_v49 = vmul.f32 %v2380_v47, %v2378_v44  ;;  %v2394_v50 = vmul.f32 %v2393_v48, %v2378_v44 }
 0xbc2   : > { %v2382_v51 = vadd.f32 -2.101024e-06, %v2381_v49  ;;  %v2395_v52 = vadd.f32 -0.001682827, %v2394_v50 }
 0xbc4   : > { %v2383_v53 = vmul.f32 %v2382_v51, %v2378_v44  ;;  %v2396_v54 = vmul.f32 %v2395_v52, %v2378_v44 }
 0xbc6   : > { %v2384_v55 = vadd.f32 -5.6925062e-05, %v2383_v53  ;;  %v2397_v56 = vadd.f32 -0.0073733293, %v2396_v54 }
 0xbc8   : > { %v2385_v57 = vmul.f32 %v2384_v55, %v2378_v44  ;;  %v2398_v58 = vmul.f32 %v2397_v56, %v2378_v44 }
 0xbca   : > { %v2386_v59 = vadd.f32 -0.00073499064, %v2385_v57  ;;  %v2399_v60 = vadd.f32 -0.014264739, %v2398_v58 }
 0xbcc   : > { %v2387_v61 = vmul.f32 %v2386_v59, %v2378_v44  ;;  %6268 = vrcp.f32 %v2399_v60 }
 0xbce   : > { %v2388_v62 = vadd.f32 -0.0029546, %v2387_v61 }
 0xbd0   : > { %v2389_v63 = vmul.f32 %v2388_v62, %v2378_v44 }
 0xbd2   : > { %v2390_v0 = vadd.f32 -0.016096033, %v2389_v63 }
 0xbd4   : > { %v2391_v2 = vmul.f32 %v5502_v43, %v2390_v0 }
 0xbd9   : > { %v6269_v3 = vpop.eup %6268 }
 0xbda   : > { %v2401_v4 = vmul.f32 %v6269_v3, %v2391_v2 }
 0xbdc   : > { %v2402_v6 = vadd.f32 1.0, %v2401_v4 }
 0xbde   : > { %v2403_v7 = vmul.f32 %v2402_v6, %v2374_v5 }
 0xbe0   : > { %5916 = vmatmul.mubr.f32.vlgmr.msra.gmra.mxu1 %v2403_v7 }
 0xbe1   : > { %5961 = vmatprep.mubr.msk.f32.mxu1 %vm6461_vm4, %v6460_v29 }
 0xca0   : > { %v2486_v8 = vpop.f32.mrf.mxu1 }
 0xca1   : > { %v2490_v9 = vadd.f32 %v2486_v8, %v6905_v1  ;;  %v5510_v1 = vld [vmem:[%s7454_s8 + $0x30] sm:$0xff]  ;;  %s7470_s8 = smov 80  }
 0xca2   : > { %v5917_v10 = vpop.f32.mrf.mxu1  ;;  %5921 = vmatpush3.msra.mxu0 %v5510_v1 }
 0xca3   : > { %v6961_v11 = vadd.f32 %v5503_v21, %v2490_v9  ;;  %5922 = vmatprep.subr.mxu0 %v6460_v29 }
 0xca4   : > { %5923 = vmatpush3.msra.mxu0 %v5509_v19 }
 0xca5   : > { %v2503_v12 = vsel %vm1374_vm3, %v6961_v11, 0.0  ;;  %5924 = vmatprep.subr.mxu0 %v6460_v29 }
 0xca6   : > { %2504 = vadd.xlane.f32.xlu0 %v2503_v12  ;;  %5925 = vmatpush3.msra.mxu0 %v5508_v20 }
 0xca7   : > { %5929 = vmatprep.subr.mxu0 %v6460_v29 }
 0xd2f   : > { %v2505_v13 = vpop.xlane.xlu0 %2504 }
 0xd30   : > { %v2506_v14 = vmul.f32 0.03125, %v2505_v13 }
 0xd32   : > { %v2507_v15 = vsub.f32 %v6961_v11, %v2506_v14 }
 0xd34   : > { %v2508_v16 = vmul.f32 %v2507_v15, %v2507_v15 }
 0xd36   : > { %v2509_v17 = vsel %vm1374_vm3, %v2508_v16, 0.0 }
 0xd37   : > { %2510 = vadd.xlane.f32.xlu0 %v2509_v17 }
 0xdc0   : > { %v2511_v22 = vpop.xlane.xlu0 %2510 }
 0xdc1   : > { %v2512_v23 = vmul.f32 0.03125, %v2511_v22 }
 0xdc3   : > { %v2513_v24 = vadd.f32 1e-05, %v2512_v23 }
 0xdc5   : > { %6270 = vrsqrt.f32 %v2513_v24 }
 0xdd2   : > { %v6271_v25 = vpop.eup %6270 }
 0xdd3   : > { %v2515_v27 = vmul.f32 %v6271_v25, %v2507_v15 }
 0xdd5   : > { %v2522_v30 = vmul.f32 %v5506_v26, %v2515_v27 }
 0xdd7   : > { %v2529_v31 = vadd.f32 %v5507_v28, %v2522_v30 }
 0xdd9   : > { %5927 = vmatmul.mubr.msk.f32.vlgmr.msra.gmra.mxu0 %vm1355_vm1, %v2529_v31 }
 0xdda   : > { %5931 = vmatprep.mubr.msk.f32.mxu0 %vm6461_vm4, %v6460_v29 }
 0xe99   : > { %v2612_v33 = vpop.f32.mrf.mxu0 }
 0xe9a   : > { %v6981_v34 = vadd.f32 %v5513_v32, %v2612_v33 }
 0xe9b   : > { %v5928_v35 = vpop.f32.mrf.mxu0 }
 0xe9c   : > { %2617 = vrot.lane.b32.xlu0 %v6981_v34, %s7404_s26  ;;  %s7468_s26 = smov 64  }
 0xea0   : > { %2784 = vrot.lane.b32.xlu0 %v6981_v34, %s7467_s5 }
 0xf0e   : > { %v2618_v36 = vpop.permute.xlu0 %2617 }
 0xf0f   : > { %5930 = vmatpush3.xpose.msk.msra.mxu0 %vm1490_vm5, %v2618_v36 }
 0xf10   : > { %5934 = vmatprep.subr.mxu0 %v6460_v29 }
 0xf12   : > { %5932 = vmatmul.mubr.msk.f32.vlgmr.msra.gmra.mxu0 %vm1490_vm5, %v6981_v34  ;;  %v2785_v50 = vpop.permute.xlu0 %2784 }
 0xf13   : > { %5936 = vmatprep.mubr.msk.f32.mxu0 %vm6461_vm4, %v6460_v29 }
 0xfd2   : > { %v2689_v37 = vpop.f32.mrf.mxu0 }
 0xfd3   : > { %v2693_v38 = vmul.f32 0.35355338, %v2689_v37  ;;  %v5534_v37 = vld [vmem:[%s6544_s19 + $0x38] sm:$0xff] }
 0xfd4   : > { %v5933_v39 = vpop.f32.mrf.mxu0 }
 0xfd5   : > { %v2694_v40 = vsel %vm1566_vm7, %v2693_v38, -inf  ;;  %v5532_v39 = vld [vmem:[%s6544_s19 + $0x28] sm:$0xff] }
 0xfd6   : > { %2695 = vmax.xlane.f32.xlu1 %v2694_v40  ;;  %v5531_v40 = vld [vmem:[%s6544_s19 + $0x20] sm:$0xff] }
 0xfe7   : > { %2705 = vrot.lane.b32.xlu1 %v6981_v34, %s7468_s26  ;;  %s7472_s26 = smov 112  }
0x105f   : > { %v2696_v41 = vpop.xlane.xlu1 %2695 }
0x1060   : > { %v2697_v42 = vsub.f32 %v2693_v38, %v2696_v41  ;;  %v5533_v38 = vld [vmem:[%s6544_s19 + $0x30] sm:$0xff] }
0x1062   : > { %v2698_v43 = vmul.f32 1.442695, %v2697_v42 }
0x1063   : > { %v2706_v44 = vpop.permute.xlu1 %2705 }
0x1064   : > { %6272 = vpow2.f32 %v2698_v43  ;;  %5935 = vmatpush3.msk.msra.mxu0 %vm1584_vm6, %v2706_v44 }
0x1065   : > { %5939 = vmatprep.subr.mxu0 %v6460_v29 }
0x1071   : > { %v6273_v45 = vpop.eup %6272 }
0x1072   : > { %v2700_v46 = vsel %vm1566_vm7, %v6273_v45, 0.0 }
0x1073   : > { %2701 = vadd.xlane.f32.xlu1 %v2700_v46 }
0x1084   : > { %2782 = vrot.lane.b32.xlu1 %v6981_v34, %s7469_s3 }
0x1088   : > { %2951 = vrot.lane.b32.xlu1 %v6981_v34, %s7470_s8  ;;  %s7471_s8 = smov 56  }
0x10fc   : > { %v2702_v47 = vpop.xlane.xlu1 %2701 }
0x10fd   : > { %6274 = vrcp.f32 %v2702_v47 }
0x1100   : > { %v2783_v51 = vpop.permute.xlu1 %2782 }
0x1104   : > { %v2952_v0 = vpop.permute.xlu1 %2951 }
0x110a   : > { %v6275_v48 = vpop.eup %6274 }
0x110b   : > { %v2704_v49 = vmul.f32 %v6275_v48, %v6273_v45 }
0x110d   : > { %5937 = vmatmul.mubr.msk.f32.vlgmr.msra.gmra.mxu0 %vm1580_vm8, %v2704_v49 }
0x110e   : > { %5940 = vmatpush3.xpose.msk.msra.mxu0 %vm1490_vm5, %v2785_v50  ;;  %5941 = vmatprep.mubr.msk.f32.mxu0 %vm6461_vm4, %v6460_v29 }
0x110f   : > { %5944 = vmatprep.subr.mxu0 %v6460_v29 }
0x1111   : > { %5942 = vmatmul.mubr.msk.f32.vlgmr.msra.gmra.mxu0 %vm1490_vm5, %v2783_v51 }
0x1112   : > { %5946 = vmatprep.mubr.msk.f32.mxu0 %vm6461_vm4, %v6460_v29 }
0x11cd   : > { %v7011_v52 = vpop.f32.mrf.mxu0 }
0x11cf   : > { %v5938_v53 = vpop.f32.mrf.mxu0 }
0x11d0   : > { %v5537_v53 = vld [vmem:[%s6549_s24 + $0x1] ss:$0 sm:$0xff] }
0x11d1   : > { %v2856_v54 = vpop.f32.mrf.mxu0 }
0x11d2   : > { %v2860_v55 = vmul.f32 0.35355338, %v2856_v54 }
0x11d3   : > { %v5943_v56 = vpop.f32.mrf.mxu0 }
0x11d4   : > { %v2861_v57 = vsel %vm1566_vm7, %v2860_v55, -inf }
0x11d5   : > { %2862 = vmax.xlane.f32.xlu0 %v2861_v57 }
0x11eb   : > { %2872 = vrot.lane.b32.xlu0 %v6981_v34, %s7471_s8  ;;  %s7474_s8 = smov 72  }
0x11ef   : > { %2949 = vrot.lane.b32.xlu0 %v6981_v34, %s7472_s26 }
0x11f3   : > { %3116 = vrot.lane.b32.xlu0 %v6981_v34, %s7473_s14 }
0x125e   : > { %v2863_v58 = vpop.xlane.xlu0 %2862 }
0x125f   : > { %v2864_v59 = vsub.f32 %v2860_v55, %v2863_v58 }
0x1261   : > { %v2865_v60 = vmul.f32 1.442695, %v2864_v59 }
0x1262   : > { %v2873_v61 = vpop.permute.xlu0 %2872 }
0x1263   : > { %6276 = vpow2.f32 %v2865_v60  ;;  %5945 = vmatpush3.msk.msra.mxu0 %vm1584_vm6, %v2873_v61 }
0x1264   : > { %5949 = vmatprep.subr.mxu0 %v6460_v29 }
0x1266   : > { %v2950_v3 = vpop.permute.xlu0 %2949 }
0x126a   : > { %v3117_v5 = vpop.permute.xlu0 %3116 }
0x1270   : > { %v6277_v62 = vpop.eup %6276 }
0x1271   : > { %v2867_v63 = vsel %vm1566_vm7, %v6277_v62, 0.0 }
0x1272   : > { %2868 = vadd.xlane.f32.xlu1 %v2867_v63  ;;  %v5543_v63 = vld [vmem:[%s7450_s12 + $0x28] sm:$0xff] }
0x1283   : > { %3118 = vrot.lane.b32.xlu1 %v6981_v34, %s7474_s8  ;;  %s7475_s8 = smov 48  }
0x12fb   : > { %v2869_v2 = vpop.xlane.xlu1 %2868 }
0x12fc   : > { %6278 = vrcp.f32 %v2869_v2 }
0x12ff   : > { %v3119_v4 = vpop.permute.xlu1 %3118 }
0x1300   : > { %5960 = vmatpush3.xpose.msk.msra.mxu1 %vm1490_vm5, %v3119_v4 }
0x1301   : > { %5969 = vmatprep.subr.mxu1 %v6460_v29 }
0x1303   : > { %5962 = vmatmul.mubr.msk.f32.vlgmr.msra.gmra.mxu1 %vm1490_vm5, %v3117_v5 }
0x1304   : > { %5977 = vmatprep.mubr.msk.f32.mxu1 %vm6461_vm4, %v6460_v29  ;;  %5970 = vmatpush3.msra.mxu1 %v5534_v37 }
0x1305   : > { %5971 = vmatprep.subr.mxu1 %v6460_v29 }
0x1306   : > { %5972 = vmatpush3.msra.mxu1 %v5533_v38 }
0x1307   : > { %5973 = vmatprep.subr.mxu1 %v6460_v29 }
0x1308   : > { %5974 = vmatpush3.msra.mxu1 %v5532_v39 }
0x1309   : > { %v6279_v6 = vpop.eup %6278  ;;  %5975 = vmatprep.subr.mxu1 %v6460_v29 }
0x130a   : > { %v2871_v7 = vmul.f32 %v6279_v6, %v6277_v62  ;;  %5976 = vmatpush3.msra.mxu1 %v5531_v40  ;;  %v5545_v62 = vld [vmem:[%s7450_s12 + $0x38] sm:$0xff]  ;;  %v5540_v6 = vld [vmem:[%s6554_s30 + $0x1] ss:$0 sm:$0xff] }
0x130b   : > { %5991 = vmatprep.subr.mxu1 %v6460_v29 }
0x130c   : > { %5947 = vmatmul.mubr.msk.f32.vlgmr.msra.gmra.mxu0 %vm1580_vm8, %v2871_v7 }
0x130d   : > { %5950 = vmatpush3.xpose.msk.msra.mxu0 %vm1490_vm5, %v2952_v0  ;;  %5951 = vmatprep.mubr.msk.f32.mxu0 %vm6461_vm4, %v6460_v29  ;;  %v5542_v0 = vld [vmem:[%s7450_s12 + $0x20] sm:$0xff] }
0x130e   : > { %5954 = vmatprep.subr.mxu0 %v6460_v29 }
0x1310   : > { %5952 = vmatmul.mubr.msk.f32.vlgmr.msra.gmra.mxu0 %vm1490_vm5, %v2950_v3 }
0x1311   : > { %5956 = vmatprep.mubr.msk.f32.mxu0 %vm6461_vm4, %v6460_v29 }
0x13c3   : > { %v3190_v8 = vpop.f32.mrf.mxu1 }
0x13c4   : > { %v3194_v21 = vmul.f32 0.35355338, %v3190_v8  ;;  %v5541_v8 = vld [vmem:[%s7451_s6 + $0x1] ss:$0 sm:$0xff]  ;;  %s7482_s6 = sld [smem:[#allocation26_spill]] }
0x13c5   : > { %v5963_v9 = vpop.f32.mrf.mxu1 }
0x13c6   : > { %v3195_v10 = vsel %vm1566_vm7, %v3194_v21, -inf }
0x13c7   : > { %3196 = vmax.xlane.f32.xlu0 %v3195_v10  ;;  %v5565_v10 = vld [vmem:[%s7464_s22 + $0xf8] sm:$0xff] }
0x13cc   : > { %v2945_v12 = vpop.f32.mrf.mxu0 }
0x13ce   : > { %v5948_v13 = vpop.f32.mrf.mxu0 }
0x13cf   : > { %v5563_v13 = vld [vmem:[%s7464_s22 + $0xe8] sm:$0xff] }
0x13d0   : > { %v3023_v14 = vpop.f32.mrf.mxu0 }
0x13d1   : > { %v3027_v15 = vmul.f32 0.35355338, %v3023_v14  ;;  %v5562_v14 = vld [vmem:[%s7464_s22 + $0xe0] sm:$0xff] }
0x13d2   : > { %v5953_v16 = vpop.f32.mrf.mxu0 }
0x13d3   : > { %v3028_v17 = vsel %vm1566_vm7, %v3027_v15, -inf  ;;  %v5560_v16 = vld [vmem:[%s7464_s22 + $0xd0] sm:$0xff] }
0x13d4   : > { %3029 = vmax.xlane.f32.xlu1 %v3028_v17  ;;  %v5559_v17 = vld [vmem:[%s7464_s22 + $0xc8] sm:$0xff] }
0x13e5   : > { %3039 = vrot.lane.b32.xlu1 %v6981_v34, %s7475_s8  ;;  %s7477_s8 = smov 40  }
0x13e9   : > { %3284 = vrot.lane.b32.xlu1 %v2945_v12, %s7476_s29  ;;  %v5564_v12 = vld [vmem:[%s7464_s22 + $0xf0] sm:$0xff] }
0x1450   : > { %v3197_v18 = vpop.xlane.xlu0 %3196 }
0x1451   : > { %v3198_v1 = vsub.f32 %v3194_v21, %v3197_v18  ;;  %v5558_v18 = vld [vmem:[%s7464_s22 + $0xc0] sm:$0xff] }
0x1453   : > { %v3199_v19 = vmul.f32 1.442695, %v3198_v1  ;;  %v5557_v1 = vld [vmem:[%s7464_s22 + $0xb8] sm:$0xff] }
0x1455   : > { %6280 = vpow2.f32 %v3199_v19  ;;  %v5556_v19 = vld [vmem:[%s7464_s22 + $0xb0] sm:$0xff] }
0x145d   : > { %v3030_v20 = vpop.xlane.xlu1 %3029 }
0x145e   : > { %v3031_v22 = vsub.f32 %v3027_v15, %v3030_v20  ;;  %v5561_v15 = vld [vmem:[%s7464_s22 + $0xd8] sm:$0xff]  ;;  %v5555_v20 = vld [vmem:[%s7464_s22 + $0xa8] sm:$0xff] }
0x1460   : > { %v3032_v23 = vmul.f32 1.442695, %v3031_v22  ;;  %v5554_v22 = vld [vmem:[%s7464_s22 + $0xa0] sm:$0xff] }
0x1461   : > { %v3040_v24 = vpop.permute.xlu1 %3039 }
0x1462   : > { %v6281_v25 = vpop.eup %6280  ;;  %6282 = vpow2.f32 %v3032_v23  ;;  %5955 = vmatpush3.msk.msra.mxu0 %vm1584_vm6, %v3040_v24  ;;  %v5553_v23 = vld [vmem:[%s7464_s22 + $0x98] sm:$0xff]  ;;  %v5552_v24 = vld [vmem:[%s7464_s22 + $0x90] sm:$0xff] }
0x1463   : > { %v3201_v26 = vsel %vm1566_vm7, %v6281_v25, 0.0  ;;  %5964 = vmatprep.subr.mxu0 %v6460_v29 }
0x1464   : > { %3202 = vadd.xlane.f32.xlu0 %v3201_v26  ;;  %v5550_v26 = vld [vmem:[%s7464_s22 + $0x80] sm:$0xff] }
0x1465   : > { %v3285_v45 = vpop.permute.xlu1 %3284 }
0x1466   : > { %v3295_v47 = vsel %vm1490_vm5, %v7011_v52, %v3285_v45 }
0x146f   : > { %v6283_v27 = vpop.eup %6282 }
0x1470   : > { %v3034_v28 = vsel %vm1566_vm7, %v6283_v27, 0.0 }
0x1471   : > { %3035 = vadd.xlane.f32.xlu0 %v3034_v28 }
0x1487   : > { %3206 = vrot.lane.b32.xlu0 %v6981_v34, %s7477_s8  ;;  %s7478_s8 = smov 16  }
0x14ed   : > { %v3203_v30 = vpop.xlane.xlu0 %3202 }
0x14fa   : > { %v3036_v31 = vpop.xlane.xlu0 %3035 }
0x14fb   : > { %6284 = vrcp.f32 %v3036_v31 }
0x14fc   : > { %6286 = vrcp.f32 %v3203_v30 }
0x14fe   : > { %v3207_v36 = vpop.permute.xlu0 %3206 }
0x1508   : > { %v6285_v32 = vpop.eup %6284 }
0x1509   : > { %v3038_v33 = vmul.f32 %v6285_v32, %v6283_v27  ;;  %v6287_v35 = vpop.eup %6286  ;;  %v5547_v27 = vld [vmem:[%s7465_s17 + $0x1] ss:$0 sm:$0xff]  ;;  %s7485_s17 = sld [smem:[#allocation29_spill]] }
0x150a   : > { %v3205_v34 = vmul.f32 %v6287_v35, %v6281_v25  ;;  %v5551_v25 = vld [vmem:[%s7464_s22 + $0x88] sm:$0xff] }
0x150b   : > { %5957 = vmatmul.mubr.msk.f32.vlgmr.msra.gmra.mxu0 %vm1580_vm8, %v3038_v33 }
0x150c   : > { %5965 = vmatpush3.msk.msra.mxu0 %vm1584_vm6, %v3207_v36  ;;  %5966 = vmatprep.mubr.msk.f32.mxu0 %vm6461_vm4, %v6460_v29 }
0x150d   : > { %5980 = vmatprep.subr.mxu0 %v6460_v29 }
0x150f   : > { %5967 = vmatmul.mubr.msk.f32.vlgmr.msra.gmra.mxu0 %vm1580_vm8, %v3205_v34 }
0x1510   : > { %5988 = vmatprep.mubr.msk.f32.mxu0 %vm6461_vm4, %v6460_v29  ;;  %5981 = vmatpush3.msra.mxu0 %v5545_v62 }
0x1511   : > { %5982 = vmatprep.subr.mxu0 %v6460_v29 }
0x15cb   : > { %v3112_v41 = vpop.f32.mrf.mxu0 }
0x15cc   : > { %3288 = vrot.lane.b32.xlu1 %v3112_v41, %s7478_s8 }
0x15cd   : > { %v5958_v42 = vpop.f32.mrf.mxu0 }
0x15cf   : > { %v3279_v43 = vpop.f32.mrf.mxu0 }
0x15d0   : > { %3292 = vrot.lane.b32.xlu1 %v3279_v43, %s7479_s0  ;;  %s7480_s0 = sld [smem:[#allocation28_spill]] }
0x15d1   : > { %v5968_v44 = vpop.f32.mrf.mxu0 }
0x15d6   : > { %s7481_s8 = smov %s7480_s0 }
0x163e   : > { %v3289_v46 = vpop.permute.xlu1 %3288 }
0x163f   : > { %v3296_v48 = vsel %vm2171_vm9, %v3295_v47, %v3289_v46 }
0x1642   : > { %v3293_v49 = vpop.permute.xlu1 %3292 }
0x1643   : > { %v3297_v50 = vsel %vm2173_vm10, %v3296_v48, %v3293_v49 }
0x1644   : > { %5978 = vmatmul.mubr.msk.f32.vlgmr.msra.gmra.mxu1 %vm1355_vm1, %v3297_v50 }
0x1645   : > { %6023 = vmatprep.mubr.msk.f32.mxu1 %vm6461_vm4, %v6460_v29  ;;  %5992 = vmatpush3.msra.mxu1 %v5565_v10  ;;  %v3659_v10 = vld [vmem:[%s7481_s8] sm:$0xff] }
0x1646   : > { %5993 = vmatprep.subr.mxu1 %v6460_v29 }
0x1647   : > { %5994 = vmatpush3.msra.mxu1 %v5564_v12 }
0x1648   : > { %5995 = vmatprep.subr.mxu1 %v6460_v29 }
0x1649   : > { %5996 = vmatpush3.msra.mxu1 %v5563_v13 }
0x164a   : > { %5997 = vmatprep.subr.mxu1 %v6460_v29 }
0x164b   : > { %5998 = vmatpush3.msra.mxu1 %v5562_v14 }
0x164c   : > { %5999 = vmatprep.subr.mxu1 %v6460_v29 }
0x164d   : > { %6000 = vmatpush3.msra.mxu1 %v5561_v15 }
0x164e   : > { %6001 = vmatprep.subr.mxu1 %v6460_v29 }
0x164f   : > { %6002 = vmatpush3.msra.mxu1 %v5560_v16  ;;  %v5568_v16 = vld [vmem:[%s7482_s6] ss:$0 sm:$0xff]  ;;  %s7486_s6 = sld [smem:[#allocation31_spill]] }
0x1650   : > { %6003 = vmatprep.subr.mxu1 %v6460_v29 }
0x1651   : > { %6004 = vmatpush3.msra.mxu1 %v5559_v17 }
0x1652   : > { %6005 = vmatprep.subr.mxu1 %v6460_v29 }
0x1653   : > { %6006 = vmatpush3.msra.mxu1 %v5558_v18 }
0x1654   : > { %6007 = vmatprep.subr.mxu1 %v6460_v29 }
0x1655   : > { %6008 = vmatpush3.msra.mxu1 %v5557_v1 }
0x1656   : > { %6009 = vmatprep.subr.mxu1 %v6460_v29 }
0x1657   : > { %6010 = vmatpush3.msra.mxu1 %v5556_v19 }
0x1658   : > { %6011 = vmatprep.subr.mxu1 %v6460_v29 }
0x1659   : > { %6012 = vmatpush3.msra.mxu1 %v5555_v20 }
0x165a   : > { %6013 = vmatprep.subr.mxu1 %v6460_v29 }
0x165b   : > { %6014 = vmatpush3.msra.mxu1 %v5554_v22 }
0x165c   : > { %6015 = vmatprep.subr.mxu1 %v6460_v29 }
0x165d   : > { %6016 = vmatpush3.msra.mxu1 %v5553_v23 }
0x165e   : > { %6017 = vmatprep.subr.mxu1 %v6460_v29 }
0x165f   : > { %6018 = vmatpush3.msra.mxu1 %v5552_v24 }
0x1660   : > { %6019 = vmatprep.subr.mxu1 %v6460_v29 }
0x1661   : > { %6020 = vmatpush3.msra.mxu1 %v5551_v25 }
0x1662   : > { %6021 = vmatprep.subr.mxu1 %v6460_v29 }
0x1663   : > { %6022 = vmatpush3.msra.mxu1 %v5550_v26 }
0x1704   : > { %v3372_v51 = vpop.f32.mrf.mxu1 }
0x1705   : > { %v3376_v54 = vadd.f32 %v3372_v51, %v6961_v11  ;;  %v5544_v11 = vld [vmem:[%s7450_s12 + $0x30] sm:$0xff]  ;;  %s7484_s12 = sld [smem:[#allocation30_spill]] }
0x1706   : > { %v5979_v55 = vpop.f32.mrf.mxu1  ;;  %5983 = vmatpush3.msra.mxu0 %v5544_v11  ;;  %v5567_v11 = vld [vmem:[%s7466_s1 + $0x1] ss:$0 sm:$0xff]  ;;  %s7483_s1 = sld [smem:[#allocation27_spill]] }
0x1707   : > { %v7076_v56 = vadd.f32 %v5537_v53, %v3376_v54  ;;  %5984 = vmatprep.subr.mxu0 %v6460_v29 }
0x1708   : > { %5985 = vmatpush3.msra.mxu0 %v5543_v63 }
0x1709   : > { %v3390_v52 = vsel %vm1374_vm3, %v7076_v56, 0.0  ;;  %5986 = vmatprep.subr.mxu0 %v6460_v29 }
0x170a   : > { %3391 = vadd.xlane.f32.xlu0 %v3390_v52  ;;  %5987 = vmatpush3.msra.mxu0 %v5542_v0 }
0x170b   : > { %6026 = vmatprep.subr.mxu0 %v6460_v29  ;;  %v5572_v20 = vld [vmem:[%s7484_s12] ss:$0 sm:$0xff]  ;;  %s3759_s12 = scalar_lea.vmem [#allocation5], %s6772_s21  ;;  %s7488_s21 = sld [smem:[#allocation32_spill]] }
0x170c   : > { %v5569_v18 = vld [vmem:[%s7483_s1] ss:$0 sm:$0xff]  ;;  %3752 = vst.msk [vmem:[#allocation5] sm:$0xff] %vm2171_vm9, %v5572_v20  ;;  %3753 = vst.msk [vmem:[#allocation5 + $0x8] sm:$0xff] %vm2171_vm9, %v5572_v20  ;;  %s3755_s1 = scalar_lea.vmem [#allocation5], %s6769_s9  ;;  %s7487_s9 = sld [smem:[#allocation34_spill]] }
0x1793   : > { %v3392_v57 = vpop.xlane.xlu0 %3391 }
0x1794   : > { %v3393_v58 = vmul.f32 0.03125, %v3392_v57 }
0x1796   : > { %v3394_v59 = vsub.f32 %v7076_v56, %v3393_v58 }
0x1798   : > { %v3395_v60 = vmul.f32 %v3394_v59, %v3394_v59 }
0x179a   : > { %v3396_v61 = vsel %vm1374_vm3, %v3395_v60, 0.0 }
0x179b   : > { %3397 = vadd.xlane.f32.xlu1 %v3396_v61 }
0x1824   : > { %v3398_v2 = vpop.xlane.xlu1 %3397 }
0x1825   : > { %v3399_v3 = vmul.f32 0.03125, %v3398_v2 }
0x1827   : > { %v3400_v4 = vadd.f32 1e-05, %v3399_v3 }
0x1829   : > { %6288 = vrsqrt.f32 %v3400_v4 }
0x1836   : > { %v6289_v5 = vpop.eup %6288 }
0x1837   : > { %v3402_v7 = vmul.f32 %v6289_v5, %v3394_v59 }
0x1839   : > { %v3409_v21 = vmul.f32 %v5540_v6, %v3402_v7 }
0x183b   : > { %v3416_v9 = vadd.f32 %v5541_v8, %v3409_v21  ;;  %v3662_v21 = vld [vmem:[%s7480_s0 + $0x18] sm:$0xff]  ;;  %s3762_s0 = scalar_lea.vmem [#allocation5], %s6774_s15  ;;  %s7490_s15 = sld [smem:[#allocation35_spill]] }
0x183d   : > { %5989 = vmatmul.mubr.msk.f32.vlgmr.msra.gmra.mxu0 %vm1355_vm1, %v3416_v9  ;;  %v3661_v9 = vld [vmem:[%s7481_s8 + $0x10] sm:$0xff] }
0x183e   : > { %6034 = vmatprep.mubr.msk.f32.mxu0 %vm6461_vm4, %v6460_v29  ;;  %6027 = vmatpush3.msra.mxu0 %v3662_v21 }
0x183f   : > { %6028 = vmatprep.subr.mxu0 %v6460_v29 }
0x1840   : > { %6029 = vmatpush3.msra.mxu0 %v3661_v9 }
0x1841   : > { %6030 = vmatprep.subr.mxu0 %v6460_v29 }
0x18fd   : > { %v3499_v28 = vpop.f32.mrf.mxu0 }
0x18fe   : > { %v3500_v30 = vadd.f32 %v5547_v27, %v3499_v28 }
0x18ff   : > { %v5990_v31 = vpop.f32.mrf.mxu0 }
0x1900   : > { %v3504_v32 = vmul.f32 0.70710677, %v3500_v30  ;;  %v3503_v59 = vmul.f32 0.5, %v3500_v30  ;;  %v3770_v30 = vld [vmem:[%s7486_s6 + $0x8] sm:$0xff]  ;;  %v3769_v31 = vld [vmem:[%s7486_s6] sm:$0xff] }
0x1902   : > { %v5549_v33 = vclamps-f32 %v3504_v32, 4.0 }
0x1904   : > { %v3507_v35 = vmul.f32 %v5549_v33, %v5549_v33 }
0x1906   : > { %v3508_v36 = vmul.f32 -2.7261424e-10, %v3507_v35  ;;  %v3521_v34 = vmul.f32 -1.45660715e-05, %v3507_v35 }
0x1908   : > { %v3509_v37 = vadd.f32 2.7706815e-08, %v3508_v36  ;;  %v3522_v38 = vadd.f32 -0.00021337405, %v3521_v34 }
0x190a   : > { %v3510_v39 = vmul.f32 %v3509_v37, %v3507_v35  ;;  %v3523_v40 = vmul.f32 %v3522_v38, %v3507_v35 }
0x190c   : > { %v3511_v41 = vadd.f32 -2.101024e-06, %v3510_v39  ;;  %v3524_v42 = vadd.f32 -0.001682827, %v3523_v40 }
0x190e   : > { %v3512_v43 = vmul.f32 %v3511_v41, %v3507_v35  ;;  %v3525_v44 = vmul.f32 %v3524_v42, %v3507_v35 }
0x1910   : > { %v3513_v45 = vadd.f32 -5.6925062e-05, %v3512_v43  ;;  %v3526_v46 = vadd.f32 -0.0073733293, %v3525_v44 }
0x1912   : > { %v3514_v47 = vmul.f32 %v3513_v45, %v3507_v35  ;;  %v3527_v48 = vmul.f32 %v3526_v46, %v3507_v35 }
0x1914   : > { %v3515_v49 = vadd.f32 -0.00073499064, %v3514_v47  ;;  %v3528_v50 = vadd.f32 -0.014264739, %v3527_v48  ;;  %v3819_v48 = vld [vmem:[%s7487_s9 + $0x8] sm:$0xff] }
0x1916   : > { %v3516_v51 = vmul.f32 %v3515_v49, %v3507_v35  ;;  %6290 = vrcp.f32 %v3528_v50  ;;  %v3818_v49 = vld [vmem:[%s7487_s9] sm:$0xff] }
0x1918   : > { %v3517_v53 = vadd.f32 -0.0029546, %v3516_v51 }
0x191a   : > { %v3518_v54 = vmul.f32 %v3517_v53, %v3507_v35 }
0x191c   : > { %v3519_v55 = vadd.f32 -0.016096033, %v3518_v54 }
0x191e   : > { %v3520_v52 = vmul.f32 %v5549_v33, %v3519_v55 }
0x1923   : > { %v6291_v57 = vpop.eup %6290 }
0x1924   : > { %v3530_v58 = vmul.f32 %v6291_v57, %v3520_v52 }
0x1926   : > { %v3531_v60 = vadd.f32 1.0, %v3530_v58  ;;  %v5573_v58 = vld [vmem:[%s7488_s21] ss:$0 sm:$0xff]  ;;  %s7492_s21 = sld [smem:[#allocation36_spill]] }
0x1928   : > { %v3532_v61 = vmul.f32 %v3531_v60, %v3503_v59 }
0x192a   : > { %6024 = vmatmul.mubr.f32.vlgmr.msra.gmra.mxu1 %v3532_v61 }
0x19ea   : > { %v3616_v62 = vpop.f32.mrf.mxu1 }
0x19eb   : > { %v3620_v63 = vadd.f32 %v3616_v62, %v7076_v56  ;;  %v3660_v56 = vld [vmem:[%s7481_s8 + $0x8] sm:$0xff] }
0x19ec   : > { %v6025_v0 = vpop.f32.mrf.mxu1  ;;  %6031 = vmatpush3.msra.mxu0 %v3660_v56 }
0x19ed   : > { %v3629_v2 = vadd.f32 %v5567_v11, %v3620_v63  ;;  %6032 = vmatprep.subr.mxu0 %v6460_v29  ;;  %v5570_v29 = vld [vmem:[%s7485_s17] ss:$0 sm:$0xff]  ;;  %s3765_s17 = scalar_lea.vmem [#allocation5], %s6776_s25  ;;  %s7489_s25 = sld [smem:[#allocation33_spill]] }
0x19ee   : > { %6033 = vmatpush3.msra.mxu0 %v3659_v10 }
0x19ef   : > { %v3632_v3 = vsel %vm1374_vm3, %v3629_v2, 0.0  ;;  %6037 = vmatprep.subr.mxu0 %v3819_v48 }
0x19f0   : > { %3633 = vadd.xlane.f32.xlu0 %v3632_v3  ;;  %v5575_v3 = vld [vmem:[%s7490_s15] ss:$0 sm:$0xff]  ;;  %s7493_s15 = sld [smem:[#allocation37_spill]] }
0x19f3   : > { %v5574_v61 = vld [vmem:[%s7489_s25] ss:$0 sm:$0xff]  ;;  %s6483_s25 = smov 12  }
0x1a79   : > { %v3634_v4 = vpop.xlane.xlu0 %3633 }
0x1a7a   : > { %v3635_v5 = vmul.f32 0.03125, %v3634_v4 }
0x1a7c   : > { %v3636_v6 = vsub.f32 %v3629_v2, %v3635_v5 }
0x1a7e   : > { %v3637_v7 = vmul.f32 %v3636_v6, %v3636_v6 }
0x1a80   : > { %v3638_v8 = vsel %vm1374_vm3, %v3637_v7, 0.0 }
0x1a81   : > { %3639 = vadd.xlane.f32.xlu0 %v3638_v8 }
0x1b0a   : > { %v3640_v12 = vpop.xlane.xlu0 %3639 }
0x1b0b   : > { %v3641_v13 = vmul.f32 0.03125, %v3640_v12 }
0x1b0d   : > { %v3642_v14 = vadd.f32 1e-05, %v3641_v13 }
0x1b0f   : > { %6292 = vrsqrt.f32 %v3642_v14 }
0x1b1c   : > { %v6293_v15 = vpop.eup %6292 }
0x1b1d   : > { %v3644_v17 = vmul.f32 %v6293_v15, %v3636_v6 }
0x1b1f   : > { %v3651_v1 = vmul.f32 %v5568_v16, %v3644_v17 }
0x1b21   : > { %v3658_v19 = vadd.f32 %v5569_v18, %v3651_v1 }
0x1b23   : > { %6035 = vmatmul.mubr.msk.f32.vlgmr.msra.gmra.mxu0 %vm1355_vm1, %v3658_v19 }
0x1b24   : > { %6038 = vmatpush3.msra.mxu0 %v3819_v48 }
0x1b25   : > { %6039 = vmatprep.subr.mxu0 %v3818_v49 }
0x1b26   : > { %6040 = vmatpush3.msra.mxu0 %v3818_v49 }
0x1be3   : > { %v3739_v22 = vpop.f32.mrf.mxu0 }
0x1be4   : > { %v3740_v23 = vadd.f32 %v5570_v29, %v3739_v22 }
0x1be5   : > { %v6036_v24 = vpop.f32.mrf.mxu0 }
0x1be6   : > { %3744 = vst.msk [vmem:[#allocation4] sm:$0xf] %vm3743_vm11, %v3740_v23 }
0x1bed   : > { %v3754_v25 = vld [vmem:[#allocation4] sm:$0x1]  ;;  %v3758_v26 = vld [vmem:[#allocation4 + $0x1] sm:$0x1]  ;;  %v3761_v27 = vld [vmem:[#allocation4 + $0x2] sm:$0x1] }
0x1bee   : > { %3757 = vst.msk [vmem:[%s3755_s1] sm:$0x1] %vm3756_vm12, %v3754_v25  ;;  %v3764_v28 = vld [vmem:[#allocation4 + $0x3] sm:$0x1]  ;;  %s6476_s1 = smov 108  }
0x1bef   : > { %3760 = vst.msk [vmem:[%s3759_s12] sm:$0x1] %vm3756_vm12, %v3758_v26  ;;  %s6477_s12 = smov 124  }
0x1bf0   : > { %3763 = vst.msk [vmem:[%s3762_s0] sm:$0x1] %vm3756_vm12, %v3761_v27  ;;  %s6481_s0 = smov 84  }
0x1bf1   : > { %3766 = vst.msk [vmem:[%s3765_s17] sm:$0x1] %vm3756_vm12, %v3764_v28  ;;  %s6482_s17 = smov 4  }
0x1bf8   : > { %v3768_v32 = vld [vmem:[#allocation5 + $0x8] sm:$0xff]  ;;  %v3767_v33 = vld [vmem:[#allocation5] sm:$0xff] }
0x1bf9   : > { %v7151_v35 = vadd.f32 %v3770_v30, %v3768_v32  ;;  %v7153_v36 = vadd.f32 %v3769_v31, %v3767_v33 }
0x1bfb   : > { %v3778_v34 = vsel %vm2171_vm9, %v7151_v35, 0.0  ;;  %v3775_v37 = vsel %vm2171_vm9, %v7153_v36, 0.0 }
0x1bfc   : > { %3779 = vadd.xlane.f32.xlu1 %v3778_v34  ;;  %3776 = vadd.xlane.f32.xlu0 %v3775_v37 }
0x1c85   : > { %v3780_v38 = vpop.xlane.xlu1 %3779  ;;  %v3777_v39 = vpop.xlane.xlu0 %3776 }
0x1c86   : > { %v3783_v40 = vmul.f32 0.0625, %v3780_v38  ;;  %v3782_v41 = vmul.f32 0.0625, %v3777_v39 }
0x1c88   : > { %v3785_v42 = vsub.f32 %v7151_v35, %v3783_v40  ;;  %v3784_v43 = vsub.f32 %v7153_v36, %v3782_v41 }
0x1c8a   : > { %v3787_v44 = vmul.f32 %v3785_v42, %v3785_v42  ;;  %v3786_v45 = vmul.f32 %v3784_v43, %v3784_v43 }
0x1c8c   : > { %v3791_v46 = vsel %vm2171_vm9, %v3787_v44, 0.0  ;;  %v3788_v47 = vsel %vm2171_vm9, %v3786_v45, 0.0 }
0x1c8d   : > { %3792 = vadd.xlane.f32.xlu1 %v3791_v46  ;;  %3789 = vadd.xlane.f32.xlu0 %v3788_v47 }
0x1d16   : > { %v3793_v50 = vpop.xlane.xlu1 %3792  ;;  %v3790_v51 = vpop.xlane.xlu0 %3789 }
0x1d17   : > { %v3795_v53 = vmul.f32 0.0625, %v3793_v50  ;;  %v3794_v54 = vmul.f32 0.0625, %v3790_v51 }
0x1d19   : > { %v3797_v55 = vadd.f32 1e-05, %v3795_v53  ;;  %v3796_v52 = vadd.f32 1e-05, %v3794_v54 }
0x1d1b   : > { %6294 = vrsqrt.f32 %v3797_v55 }
0x1d1c   : > { %6296 = vrsqrt.f32 %v3796_v52 }
0x1d28   : > { %v6295_v57 = vpop.eup %6294 }
0x1d29   : > { %v6297_v59 = vpop.eup %6296  ;;  %v3801_v60 = vmul.f32 %v6295_v57, %v3785_v42 }
0x1d2a   : > { %v3800_v62 = vmul.f32 %v6297_v59, %v3784_v43 }
0x1d2b   : > { %v3809_v11 = vmul.f32 %v5573_v58, %v3801_v60 }
0x1d2c   : > { %v3808_v63 = vmul.f32 %v5573_v58, %v3800_v62 }
0x1d2d   : > { %v3817_v0 = vadd.f32 %v5574_v61, %v3809_v11 }
0x1d2e   : > { %v3816_v2 = vadd.f32 %v5574_v61, %v3808_v63 }
0x1d30   : > { %6041 = vmatprep.mubr.msk.f32.mxu0 %vm2171_vm9, %v3816_v2 }
0x1d31   : > { %6042 = vmatmul.mubr.msk.f32.vlgmr.msra.gmra.mxu0 %vm2171_vm9, %v3817_v0 }
0x1df1   : > { %v6043_v4 = vpop.f32.mrf.mxu0 }
0x1df2   : > { %v7170_v5 = vadd.f32 %v6043_v4, %v5575_v3 }
0x1df3   : > { %v3899_v6 = vpop.f32.mrf.mxu0 }
0x1df4   : > { %v7172_v7 = vadd.f32 %v5575_v3, %v3899_v6  ;;  %3912 = vrot.lane.b32.xlu0 %v7170_v5, %s7472_s26 }
0x1df6   : > { %3910 = vrot.lane.b32.xlu1 %v7172_v7, %s7472_s26  ;;  %6048 = vmatprep.mubr.msk.f32.mxu0 %vm1580_vm8, %v7172_v7  ;;  %s7491_s26 = smov 96  }
0x1e66   : > { %v3913_v8 = vpop.permute.xlu0 %3912 }
0x1e67   : > { %6044 = vmatprep.subr.msk.mxu0 %vm1580_vm8, %v3913_v8 }
0x1e68   : > { %6045 = vmatpush3.xpose.msk.msra.mxu0 %vm1580_vm8, %v3913_v8  ;;  %v3911_v21 = vpop.permute.xlu1 %3910 }
0x1e69   : > { %6046 = vmatprep.subr.msk.mxu0 %vm1580_vm8, %v3911_v21 }
0x1e6c   : > { %6047 = vmatpush3.xpose.msk.msra.mxu0 %vm1580_vm8, %v3911_v21 }
0x1e6f   : > { %6049 = vmatmul.mubr.msk.f32.vlgmr.msra.gmra.mxu0 %vm1580_vm8, %v7170_v5 }
0x1f2f   : > { %v6050_v9 = vpop.f32.mrf.mxu0 }
0x1f30   : > { %v3998_v56 = vmul.f32 0.5, %v6050_v9 }
0x1f31   : > { %v3988_v10 = vpop.f32.mrf.mxu0 }
0x1f32   : > { %v3997_v12 = vmul.f32 0.5, %v3988_v10  ;;  %v4002_v13 = vsel %vm2171_vm9, %v3998_v56, -inf }
0x1f33   : > { %4003 = vmax.xlane.f32.xlu0 %v4002_v13 }
0x1f34   : > { %v3999_v14 = vsel %vm2171_vm9, %v3997_v12, -inf }
0x1f35   : > { %4000 = vmax.xlane.f32.xlu1 %v3999_v14 }
0x1fbc   : > { %v4004_v15 = vpop.xlane.xlu0 %4003 }
0x1fbd   : > { %v4006_v16 = vsub.f32 %v3998_v56, %v4004_v15 }
0x1fbe   : > { %v4001_v17 = vpop.xlane.xlu1 %4000 }
0x1fbf   : > { %v4009_v18 = vmul.f32 1.442695, %v4006_v16  ;;  %v4005_v1 = vsub.f32 %v3997_v12, %v4001_v17 }
0x1fc1   : > { %6298 = vpow2.f32 %v4009_v18  ;;  %v4007_v19 = vmul.f32 1.442695, %v4005_v1 }
0x1fc3   : > { %6300 = vpow2.f32 %v4007_v19 }
0x1fce   : > { %v6299_v20 = vpop.eup %6298 }
0x1fcf   : > { %v4014_v29 = vsel %vm2171_vm9, %v6299_v20, 0.0 }
0x1fd0   : > { %v6301_v22 = vpop.eup %6300  ;;  %4015 = vadd.xlane.f32.xlu1 %v4014_v29 }
0x1fd1   : > { %v4011_v23 = vsel %vm2171_vm9, %v6301_v22, 0.0 }
0x1fd2   : > { %4012 = vadd.xlane.f32.xlu0 %v4011_v23 }
0x1fe1   : > { %4021 = vrot.lane.b32.xlu1 %v7172_v7, %s7491_s26 }
0x1fe5   : > { %4114 = vrot.lane.b32.xlu1 %v7170_v5, %s6476_s1 }
0x1fe8   : > { %4023 = vrot.lane.b32.xlu0 %v7170_v5, %s7491_s26  ;;  %s7494_s26 = sld [smem:[#allocation40_spill]] }
0x1fe9   : > { %4112 = vrot.lane.b32.xlu1 %v7172_v7, %s6476_s1  ;;  %s7495_s1 = sld [smem:[#allocation38_spill]] }
0x1fec   : > { %4108 = vrot.lane.b32.xlu0 %v7172_v7, %s6477_s12 }
0x1fed   : > { %4316 = vrot.lane.b32.xlu1 %v7170_v5, %s7473_s14 }
0x1ff0   : > { %4110 = vrot.lane.b32.xlu0 %v7170_v5, %s6477_s12  ;;  %s7496_s12 = sld [smem:[#allocation39_spill]] }
0x1ff1   : > { %4314 = vrot.lane.b32.xlu1 %v7172_v7, %s7473_s14  ;;  %s6479_s14 = smov 100  }
0x1ff4   : > { %4310 = vrot.lane.b32.xlu0 %v7172_v7, %s7469_s3 }
0x1ff5   : > { %4312 = vrot.lane.b32.xlu1 %v7170_v5, %s7469_s3  ;;  %s6478_s3 = smov 92  }
0x2059   : > { %v4016_v24 = vpop.xlane.xlu1 %4015 }
0x205a   : > { %6302 = vrcp.f32 %v4016_v24 }
0x205b   : > { %v4013_v25 = vpop.xlane.xlu0 %4012 }
0x205c   : > { %6304 = vrcp.f32 %v4013_v25 }
0x205d   : > { %v4022_v26 = vpop.permute.xlu1 %4021 }
0x205f   : > { %v4024_v27 = vpop.permute.xlu0 %4023 }
0x2060   : > { %6051 = vmatprep.subr.mxu0 %v4024_v27 }
0x2061   : > { %6052 = vmatpush3.msra.mxu0 %v4024_v27  ;;  %v4115_v28 = vpop.permute.xlu1 %4114 }
0x2062   : > { %6053 = vmatprep.subr.mxu0 %v4022_v26 }
0x2063   : > { %6054 = vmatpush3.msra.mxu0 %v4022_v26  ;;  %v4109_v32 = vpop.permute.xlu0 %4108 }
0x2064   : > { %6058 = vmatprep.subr.msk.mxu0 %vm1580_vm8, %v4115_v28 }
0x2065   : > { %v4113_v33 = vpop.permute.xlu1 %4112 }
0x2067   : > { %v6303_v30 = vpop.eup %6302  ;;  %v4111_v38 = vpop.permute.xlu0 %4110 }
0x2068   : > { %v4020_v37 = vmul.f32 %v6303_v30, %v6299_v20 }
0x2069   : > { %v6305_v31 = vpop.eup %6304  ;;  %v4317_v39 = vpop.permute.xlu1 %4316 }
0x206a   : > { %v4018_v34 = vmul.f32 %v6305_v31, %v6301_v22 }
0x206b   : > { %v4311_v40 = vpop.permute.xlu0 %4310 }
0x206c   : > { %6055 = vmatprep.mubr.msk.f32.mxu0 %vm2171_vm9, %v4018_v34 }
0x206d   : > { %6056 = vmatmul.mubr.msk.f32.vlgmr.msra.gmra.mxu0 %vm2171_vm9, %v4020_v37  ;;  %v4315_v41 = vpop.permute.xlu1 %4314 }
0x206e   : > { %6059 = vmatpush3.xpose.msk.msra.mxu0 %vm1580_vm8, %v4115_v28  ;;  %6062 = vmatprep.mubr.msk.f32.mxu0 %vm1580_vm8, %v4109_v32 }
0x206f   : > { %6060 = vmatprep.subr.msk.mxu0 %vm1580_vm8, %v4113_v33 }
0x2071   : > { %v4313_v42 = vpop.permute.xlu1 %4312 }
0x2072   : > { %6061 = vmatpush3.xpose.msk.msra.mxu0 %vm1580_vm8, %v4113_v33 }
0x2073   : > { %6072 = vmatprep.subr.msk.mxu0 %vm1580_vm8, %v4317_v39 }
0x2075   : > { %6063 = vmatmul.mubr.msk.f32.vlgmr.msra.gmra.mxu0 %vm1580_vm8, %v4111_v38 }
0x2076   : > { %6073 = vmatpush3.xpose.msk.msra.mxu0 %vm1580_vm8, %v4317_v39  ;;  %6076 = vmatprep.mubr.msk.f32.mxu0 %vm1580_vm8, %v4311_v40 }
0x2077   : > { %6074 = vmatprep.subr.msk.mxu0 %vm1580_vm8, %v4315_v41 }
0x207a   : > { %6075 = vmatpush3.xpose.msk.msra.mxu0 %vm1580_vm8, %v4315_v41 }
0x207d   : > { %6077 = vmatmul.mubr.msk.f32.vlgmr.msra.gmra.mxu0 %vm1580_vm8, %v4313_v42 }
0x212d   : > { %v7220_v43 = vpop.f32.mrf.mxu0 }
0x212f   : > { %v7222_v44 = vpop.f32.mrf.mxu0 }
0x2135   : > { %v6064_v45 = vpop.f32.mrf.mxu0 }
0x2136   : > { %v4200_v46 = vmul.f32 0.5, %v6064_v45 }
0x2137   : > { %v4190_v47 = vpop.f32.mrf.mxu0 }
0x2138   : > { %v4199_v48 = vmul.f32 0.5, %v4190_v47  ;;  %v4204_v49 = vsel %vm2171_vm9, %v4200_v46, -inf }
0x2139   : > { %4205 = vmax.xlane.f32.xlu1 %v4204_v49 }
0x213a   : > { %v4201_v50 = vsel %vm2171_vm9, %v4199_v48, -inf }
0x213b   : > { %4202 = vmax.xlane.f32.xlu0 %v4201_v50 }
0x213d   : > { %v6078_v51 = vpop.f32.mrf.mxu0 }
0x213e   : > { %v4402_v55 = vmul.f32 0.5, %v6078_v51 }
0x213f   : > { %v4392_v53 = vpop.f32.mrf.mxu0 }
0x2140   : > { %v4401_v54 = vmul.f32 0.5, %v4392_v53  ;;  %v4406_v57 = vsel %vm2171_vm9, %v4402_v55, -inf }
0x2142   : > { %v4403_v52 = vsel %vm2171_vm9, %v4401_v54, -inf }
0x2143   : > { %4404 = vmax.xlane.f32.xlu0 %v4403_v52 }
0x2147   : > { %4407 = vmax.xlane.f32.xlu0 %v4406_v57 }
0x214a   : > { %4223 = vrot.lane.b32.xlu1 %v7172_v7, %s6478_s3 }
0x214e   : > { %4427 = vrot.lane.b32.xlu1 %v7170_v5, %s7467_s5 }
0x2152   : > { %4425 = vrot.lane.b32.xlu1 %v7172_v7, %s7467_s5  ;;  %s6480_s5 = smov 116  }
0x215d   : > { %4225 = vrot.lane.b32.xlu0 %v7170_v5, %s6478_s3  ;;  %s7497_s3 = sld [smem:[#allocation42_spill]] }
0x21c2   : > { %v4206_v58 = vpop.xlane.xlu1 %4205 }
0x21c3   : > { %v4208_v59 = vsub.f32 %v4200_v46, %v4206_v58 }
0x21c4   : > { %v4203_v60 = vpop.xlane.xlu0 %4202 }
0x21c5   : > { %v4211_v61 = vmul.f32 1.442695, %v4208_v59  ;;  %v4207_v62 = vsub.f32 %v4199_v48, %v4203_v60 }
0x21c6   : > { %v4224_v6 = vpop.permute.xlu1 %4223 }
0x21c7   : > { %6306 = vpow2.f32 %v4211_v61  ;;  %v4209_v11 = vmul.f32 1.442695, %v4207_v62 }
0x21c9   : > { %6308 = vpow2.f32 %v4209_v11 }
0x21ca   : > { %v4428_v13 = vpop.permute.xlu1 %4427 }
0x21cc   : > { %v4405_v63 = vpop.xlane.xlu0 %4404 }
0x21cd   : > { %v4409_v0 = vsub.f32 %v4401_v54, %v4405_v63 }
0x21ce   : > { %v4426_v18 = vpop.permute.xlu1 %4425 }
0x21cf   : > { %v4411_v2 = vmul.f32 1.442695, %v4409_v0 }
0x21d0   : > { %v4408_v3 = vpop.xlane.xlu0 %4407 }
0x21d1   : > { %6310 = vpow2.f32 %v4411_v2  ;;  %v4410_v4 = vsub.f32 %v4402_v55, %v4408_v3  ;;  %v4745_v3 = vld [vmem:[%s7492_s21] sm:$0xff] }
0x21d3   : > { %v4413_v8 = vmul.f32 1.442695, %v4410_v4 }
0x21d4   : > { %v6307_v21 = vpop.eup %6306  ;;  %v4226_v9 = vpop.permute.xlu0 %4225 }
0x21d5   : > { %6312 = vpow2.f32 %v4413_v8  ;;  %6065 = vmatprep.subr.mxu1 %v4226_v9  ;;  %v4216_v56 = vsel %vm2171_vm9, %v6307_v21, 0.0 }
0x21d6   : > { %v6309_v10 = vpop.eup %6308  ;;  %6066 = vmatpush3.msra.mxu1 %v4226_v9  ;;  %4217 = vadd.xlane.f32.xlu1 %v4216_v56 }
0x21d7   : > { %6067 = vmatprep.subr.mxu1 %v4224_v6  ;;  %v4213_v12 = vsel %vm2171_vm9, %v6309_v10, 0.0 }
0x21d8   : > { %4214 = vadd.xlane.f32.xlu0 %v4213_v12  ;;  %6068 = vmatpush3.msra.mxu1 %v4224_v6 }
0x21d9   : > { %6079 = vmatprep.subr.mxu1 %v4428_v13 }
0x21de   : > { %v6311_v14 = vpop.eup %6310 }
0x21df   : > { %v4415_v15 = vsel %vm2171_vm9, %v6311_v14, 0.0 }
0x21e0   : > { %4416 = vadd.xlane.f32.xlu0 %v4415_v15 }
0x21e2   : > { %v6313_v16 = vpop.eup %6312 }
0x21e3   : > { %v4418_v17 = vsel %vm2171_vm9, %v6313_v16, 0.0 }
0x21e4   : > { %4419 = vadd.xlane.f32.xlu1 %v4418_v17 }
0x21f5   : > { %4516 = vrot.lane.b32.xlu1 %v7172_v7, %s6479_s14 }
0x21f6   : > { %4518 = vrot.lane.b32.xlu0 %v7170_v5, %s6479_s14  ;;  %s7498_s14 = sld [smem:[#allocation41_spill]] }
0x21f9   : > { %4514 = vrot.lane.b32.xlu1 %v7170_v5, %s6480_s5 }
0x21fa   : > { %4512 = vrot.lane.b32.xlu0 %v7172_v7, %s6480_s5  ;;  %s7499_s5 = sld [smem:[#allocation43_spill]] }
0x225f   : > { %v4218_v1 = vpop.xlane.xlu1 %4217 }
0x2260   : > { %6314 = vrcp.f32 %v4218_v1 }
0x2261   : > { %v4215_v19 = vpop.xlane.xlu0 %4214 }
0x2262   : > { %6316 = vrcp.f32 %v4215_v19  ;;  %v5604_v19 = vld [vmem:[%s7493_s15] ss:$0 sm:$0xff]  ;;  %s1225_s15 = sand.u32 1, %s6408_s11  }
0x2269   : > { %v4417_v20 = vpop.xlane.xlu0 %4416 }
0x226a   : > { %6318 = vrcp.f32 %v4417_v20 }
0x226d   : > { %v4420_v29 = vpop.xlane.xlu1 %4419  ;;  %v6315_v22 = vpop.eup %6314 }
0x226e   : > { %6320 = vrcp.f32 %v4420_v29  ;;  %v4222_v25 = vmul.f32 %v6315_v22, %v6307_v21  ;;  %v4519_v26 = vpop.permute.xlu0 %4518 }
0x226f   : > { %v6317_v23 = vpop.eup %6316 }
0x2270   : > { %v4220_v24 = vmul.f32 %v6317_v23, %v6309_v10 }
0x2271   : > { %v4517_v33 = vpop.permute.xlu1 %4516 }
0x2272   : > { %6069 = vmatprep.mubr.msk.f32.mxu1 %vm2171_vm9, %v4220_v24  ;;  %v4513_v32 = vpop.permute.xlu0 %4512 }
0x2273   : > { %6070 = vmatmul.mubr.msk.f32.vlgmr.msra.gmra.mxu1 %vm2171_vm9, %v4222_v25 }
0x2274   : > { %6080 = vmatpush3.msra.mxu1 %v4428_v13 }
0x2275   : > { %6081 = vmatprep.subr.mxu1 %v4426_v18  ;;  %v4515_v34 = vpop.permute.xlu1 %4514 }
0x2276   : > { %6082 = vmatpush3.msra.mxu1 %v4426_v18 }
0x2277   : > { %v6319_v27 = vpop.eup %6318  ;;  %6086 = vmatprep.subr.msk.mxu1 %vm1580_vm8, %v4519_v26 }
0x2278   : > { %v4422_v28 = vmul.f32 %v6319_v27, %v6311_v14 }
0x227a   : > { %6083 = vmatprep.mubr.msk.f32.mxu1 %vm2171_vm9, %v4422_v28 }
0x227b   : > { %v6321_v30 = vpop.eup %6320 }
0x227c   : > { %v4424_v31 = vmul.f32 %v6321_v30, %v6313_v16 }
0x227e   : > { %6084 = vmatmul.mubr.msk.f32.vlgmr.msra.gmra.mxu1 %vm2171_vm9, %v4424_v31 }
0x227f   : > { %6087 = vmatpush3.xpose.msk.msra.mxu1 %vm1580_vm8, %v4519_v26  ;;  %6090 = vmatprep.mubr.msk.f32.mxu1 %vm1580_vm8, %v4513_v32 }
0x2280   : > { %6088 = vmatprep.subr.msk.mxu1 %vm1580_vm8, %v4517_v33 }
0x2283   : > { %6089 = vmatpush3.xpose.msk.msra.mxu1 %vm1580_vm8, %v4517_v33 }
0x2286   : > { %6091 = vmatmul.mubr.msk.f32.vlgmr.msra.gmra.mxu1 %vm1580_vm8, %v4515_v34  ;;  %v4884_v34 = vld [vmem:[%s7494_s26 + $0x8] sm:$0xff] }
0x2287   : > { %6107 = vmatprep.subr.mxu1 %v4884_v34 }
0x2288   : > { %6108 = vmatpush3.msra.mxu1 %v4884_v34 }
0x2333   : > { %v6071_v37 = vpop.f32.mrf.mxu1 }
0x2335   : > { %v4301_v38 = vpop.f32.mrf.mxu1 }
0x233e   : > { %v6085_v39 = vpop.f32.mrf.mxu1 }
0x2340   : > { %v4503_v40 = vpop.f32.mrf.mxu1 }
0x2346   : > { %v6092_v41 = vpop.f32.mrf.mxu1 }
0x2347   : > { %v4604_v42 = vmul.f32 0.5, %v6092_v41 }
0x2348   : > { %v4594_v45 = vpop.f32.mrf.mxu1 }
0x2349   : > { %v4603_v46 = vmul.f32 0.5, %v4594_v45  ;;  %v4608_v47 = vsel %vm2171_vm9, %v4604_v42, -inf }
0x234a   : > { %4609 = vmax.xlane.f32.xlu1 %v4608_v47  ;;  %v5605_v47 = vld [vmem:[%s7495_s1] ss:$0 sm:$0xff]  ;;  %s7503_s1 = sshll.u32 %s6755_s7, 4 }
0x234b   : > { %v4605_v48 = vsel %vm2171_vm9, %v4603_v46, -inf }
0x234c   : > { %4606 = vmax.xlane.f32.xlu0 %v4605_v48 }
0x235b   : > { %4627 = vrot.lane.b32.xlu1 %v7172_v7, %s6481_s0 }
0x235f   : > { %4716 = vrot.lane.b32.xlu1 %v4301_v38, %s6482_s17 }
0x2363   : > { %4718 = vrot.lane.b32.xlu1 %v6071_v37, %s6482_s17  ;;  %v4883_v37 = vld [vmem:[%s7494_s26] sm:$0xff]  ;;  %s7501_s17 = sld [smem:[#allocation45_spill]] }
0x2364   : > { %6109 = vmatprep.subr.mxu1 %v4883_v37 }
0x2365   : > { %6110 = vmatpush3.msra.mxu1 %v4883_v37 }
0x2367   : > { %4726 = vrot.lane.b32.xlu1 %v6085_v39, %s7476_s29 }
0x23d3   : > { %v4610_v49 = vpop.xlane.xlu1 %4609 }
0x23d4   : > { %v4612_v50 = vsub.f32 %v4604_v42, %v4610_v49  ;;  %v5606_v49 = vld [vmem:[%s7496_s12] ss:$0 sm:$0xff] }
0x23d5   : > { %v4607_v51 = vpop.xlane.xlu0 %4606 }
0x23d6   : > { %v4615_v53 = vmul.f32 1.442695, %v4612_v50  ;;  %v4611_v54 = vsub.f32 %v4603_v46, %v4607_v51 }
0x23d7   : > { %v4628_v62 = vpop.permute.xlu1 %4627 }
0x23d8   : > { %6322 = vpow2.f32 %v4615_v53  ;;  %v4613_v55 = vmul.f32 1.442695, %v4611_v54 }
0x23da   : > { %6324 = vpow2.f32 %v4613_v55 }
0x23db   : > { %v4717_v8 = vpop.permute.xlu1 %4716 }
0x23dc   : > { %v4738_v10 = vsel %vm1580_vm8, %v7222_v44, %v4717_v8 }
0x23df   : > { %v4719_v21 = vpop.permute.xlu1 %4718 }
0x23e0   : > { %v4739_v13 = vsel %vm1580_vm8, %v7220_v43, %v4719_v21 }
0x23e3   : > { %v4727_v9 = vpop.permute.xlu1 %4726 }
0x23e4   : > { %v4741_v16 = vsel %vm1490_vm5, %v4739_v13, %v4727_v9 }
0x23e5   : > { %v6323_v52 = vpop.eup %6322 }
0x23e6   : > { %v4620_v57 = vsel %vm2171_vm9, %v6323_v52, 0.0 }
0x23e7   : > { %v6325_v58 = vpop.eup %6324  ;;  %4621 = vadd.xlane.f32.xlu0 %v4620_v57  ;;  %v5040_v57 = vld [vmem:[%s7497_s3 + $0x38] sm:$0xff] }
0x23e8   : > { %v4617_v7 = vsel %vm2171_vm9, %v6325_v58, 0.0 }
0x23eb   : > { %4618 = vadd.xlane.f32.xlu0 %v4617_v7  ;;  %v5038_v7 = vld [vmem:[%s7497_s3 + $0x28] sm:$0xff] }
0x2401   : > { %4629 = vrot.lane.b32.xlu0 %v7170_v5, %s6481_s0  ;;  %v4746_v5 = vld [vmem:[%s7492_s21 + $0x8] sm:$0xff]  ;;  %s7500_s0 = sld [smem:[#allocation44_spill]] }
0x2405   : > { %4724 = vrot.lane.b32.xlu0 %v4503_v40, %s7476_s29 }
0x2470   : > { %v4622_v59 = vpop.xlane.xlu0 %4621 }
0x2471   : > { %6326 = vrcp.f32 %v4622_v59  ;;  %v5037_v59 = vld [vmem:[%s7497_s3 + $0x20] sm:$0xff] }
0x2474   : > { %v4619_v60 = vpop.xlane.xlu0 %4618 }
0x2475   : > { %6328 = vrcp.f32 %v4619_v60  ;;  %v5036_v60 = vld [vmem:[%s7497_s3 + $0x18] sm:$0xff] }
0x2478   : > { %v4630_v61 = vpop.permute.xlu0 %4629 }
0x2479   : > { %6093 = vmatprep.subr.mxu0 %v4630_v61 }
0x247a   : > { %6094 = vmatpush3.msra.mxu0 %v4630_v61  ;;  %v5035_v61 = vld [vmem:[%s7497_s3 + $0x10] sm:$0xff] }
0x247b   : > { %6095 = vmatprep.subr.mxu0 %v4628_v62 }
0x247c   : > { %6096 = vmatpush3.msra.mxu0 %v4628_v62  ;;  %v4725_v56 = vpop.permute.xlu0 %4724  ;;  %v5034_v62 = vld [vmem:[%s7497_s3 + $0x8] sm:$0xff] }
0x247d   : > { %6100 = vmatprep.subr.mxu0 %v4746_v5  ;;  %v4740_v14 = vsel %vm1490_vm5, %v4738_v10, %v4725_v56 }
0x247e   : > { %v6327_v11 = vpop.eup %6326 }
0x247f   : > { %v4626_v2 = vmul.f32 %v6327_v11, %v6323_v52  ;;  %v5033_v11 = vld [vmem:[%s7497_s3] sm:$0xff] }
0x2482   : > { %v6329_v63 = vpop.eup %6328 }
0x2483   : > { %v4624_v0 = vmul.f32 %v6329_v63, %v6325_v58  ;;  %v5039_v58 = vld [vmem:[%s7497_s3 + $0x30] sm:$0xff]  ;;  %v5607_v63 = vld [vmem:[%s7498_s14] ss:$0 sm:$0xff]  ;;  %s5467_s14 = sshll.u32 %s1225_s15, 4 }
0x2485   : > { %6097 = vmatprep.mubr.msk.f32.mxu0 %vm2171_vm9, %v4624_v0 }
0x2486   : > { %6098 = vmatmul.mubr.msk.f32.vlgmr.msra.gmra.mxu0 %vm2171_vm9, %v4626_v2 }
0x2487   : > { %6101 = vmatpush3.msra.mxu0 %v4746_v5 }
0x2488   : > { %6102 = vmatprep.subr.mxu0 %v4745_v3 }
0x2489   : > { %6103 = vmatpush3.msra.mxu0 %v4745_v3 }
0x248a   : > { %6114 = vmatprep.subr.mxu0 %v5040_v57 }
0x2546   : > { %v6099_v4 = vpop.f32.mrf.mxu0 }
0x2547   : > { %4734 = vrot.lane.b32.xlu1 %v6099_v4, %s6483_s25 }
0x2548   : > { %v4705_v6 = vpop.f32.mrf.mxu0 }
0x2549   : > { %4732 = vrot.lane.b32.xlu0 %v4705_v6, %s6483_s25  ;;  %s7502_s25 = sld [smem:[#allocation13_spill]] }
0x254f   : > { %s1242_s12 = scalar_lea.vmem %s7502_s25, %s7503_s1  ;;  %s7334_s1 = scalar_lea.sflag [#allocation9], %s1225_s15 }
0x25b9   : > { %v4735_v12 = vpop.permute.xlu1 %4734 }
0x25ba   : > { %v4744_v18 = vsel %vm4742_vm13, %v4741_v16, %v4735_v12 }
0x25bb   : > { %v4733_v15 = vpop.permute.xlu0 %4732 }
0x25bc   : > { %v4743_v17 = vsel %vm4742_vm13, %v4740_v14, %v4733_v15 }
0x25bd   : > { %6104 = vmatprep.mubr.msk.f32.mxu0 %vm2171_vm9, %v4743_v17 }
0x25be   : > { %6105 = vmatmul.mubr.msk.f32.vlgmr.msra.gmra.mxu0 %vm2171_vm9, %v4744_v18 }
0x25bf   : > { %6115 = vmatpush3.msra.mxu0 %v5040_v57 }
0x25c0   : > { %6116 = vmatprep.subr.mxu0 %v5039_v58 }
0x25c1   : > { %6117 = vmatpush3.msra.mxu0 %v5039_v58 }
0x25c2   : > { %6118 = vmatprep.subr.mxu0 %v5038_v7 }
0x25c3   : > { %6119 = vmatpush3.msra.mxu0 %v5038_v7 }
0x25c4   : > { %6120 = vmatprep.subr.mxu0 %v5037_v59 }
0x25c5   : > { %6121 = vmatpush3.msra.mxu0 %v5037_v59 }
0x25c6   : > { %6122 = vmatprep.subr.mxu0 %v5036_v60 }
0x25c7   : > { %6123 = vmatpush3.msra.mxu0 %v5036_v60 }
0x25c8   : > { %6124 = vmatprep.subr.mxu0 %v5035_v61 }
0x25c9   : > { %6125 = vmatpush3.msra.mxu0 %v5035_v61 }
0x25ca   : > { %6126 = vmatprep.subr.mxu0 %v5034_v62 }
0x25cb   : > { %6127 = vmatpush3.msra.mxu0 %v5034_v62 }
0x25cc   : > { %6128 = vmatprep.subr.mxu0 %v5033_v11 }
0x25cd   : > { %6129 = vmatpush3.msra.mxu0 %v5033_v11 }
0x267e   : > { %v6106_v1 = vpop.f32.mrf.mxu0 }
0x267f   : > { %v4829_v44 = vadd.f32 %v6106_v1, %v7151_v35 }
0x2680   : > { %v4819_v20 = vpop.f32.mrf.mxu0 }
0x2681   : > { %v7274_v29 = vadd.f32 %v5604_v19, %v4829_v44  ;;  %v4828_v43 = vadd.f32 %v4819_v20, %v7153_v36 }
0x2683   : > { %v7277_v22 = vadd.f32 %v5604_v19, %v4828_v43  ;;  %v4844_v23 = vsel %vm2171_vm9, %v7274_v29, 0.0 }
0x2684   : > { %4845 = vadd.xlane.f32.xlu1 %v4844_v23 }
0x2685   : > { %v4841_v24 = vsel %vm2171_vm9, %v7277_v22, 0.0 }
0x2686   : > { %4842 = vadd.xlane.f32.xlu0 %v4841_v24 }
0x270d   : > { %v4846_v25 = vpop.xlane.xlu1 %4845 }
0x270e   : > { %v4848_v26 = vmul.f32 0.0625, %v4846_v25 }
0x270f   : > { %v4843_v35 = vpop.xlane.xlu0 %4842 }
0x2710   : > { %v4847_v27 = vmul.f32 0.0625, %v4843_v35  ;;  %v4850_v28 = vsub.f32 %v7274_v29, %v4848_v26 }
0x2712   : > { %v4849_v36 = vsub.f32 %v7277_v22, %v4847_v27  ;;  %v4852_v32 = vmul.f32 %v4850_v28, %v4850_v28 }
0x2714   : > { %v4851_v30 = vmul.f32 %v4849_v36, %v4849_v36  ;;  %v4856_v33 = vsel %vm2171_vm9, %v4852_v32, 0.0 }
0x2716   : > { %v4853_v31 = vsel %vm2171_vm9, %v4851_v30, 0.0 }
0x2717   : > { %4854 = vadd.xlane.f32.xlu0 %v4853_v31 }
0x271b   : > { %4857 = vadd.xlane.f32.xlu0 %v4856_v33 }
0x27a0   : > { %v4855_v38 = vpop.xlane.xlu0 %4854 }
0x27a1   : > { %v4859_v39 = vmul.f32 0.0625, %v4855_v38 }
0x27a3   : > { %v4861_v40 = vadd.f32 1e-05, %v4859_v39 }
0x27a4   : > { %v4858_v41 = vpop.xlane.xlu0 %4857 }
0x27a5   : > { %6330 = vrsqrt.f32 %v4861_v40  ;;  %v4860_v42 = vmul.f32 0.0625, %v4858_v41 }
0x27a7   : > { %v4862_v45 = vadd.f32 1e-05, %v4860_v42 }
0x27a9   : > { %6332 = vrsqrt.f32 %v4862_v45 }
0x27b2   : > { %v6331_v46 = vpop.eup %6330 }
0x27b3   : > { %v4865_v48 = vmul.f32 %v6331_v46, %v4849_v36 }
0x27b5   : > { %v4873_v50 = vmul.f32 %v5605_v47, %v4865_v48 }
0x27b6   : > { %v6333_v51 = vpop.eup %6332 }
0x27b7   : > { %v4866_v53 = vmul.f32 %v6333_v51, %v4850_v28  ;;  %v4881_v54 = vadd.f32 %v5606_v49, %v4873_v50 }
0x27b9   : > { %v4874_v55 = vmul.f32 %v5605_v47, %v4866_v53  ;;  %6111 = vmatprep.mubr.msk.f32.mxu1 %vm2171_vm9, %v4881_v54 }
0x27bb   : > { %v4882_v52 = vadd.f32 %v5606_v49, %v4874_v55 }
0x27bd   : > { %6112 = vmatmul.mubr.msk.f32.vlgmr.msra.gmra.mxu1 %vm2171_vm9, %v4882_v52 }
0x287d   : > { %v6113_v0 = vpop.f32.mrf.mxu1 }
0x287e   : > { %v4970_v2 = vadd.f32 %v6113_v0, %v5607_v63 }
0x287f   : > { %v4964_v5 = vpop.f32.mrf.mxu1 }
0x2880   : > { %v4976_v3 = vmul.f32 0.70710677, %v4970_v2  ;;  %v4965_v4 = vadd.f32 %v5607_v63, %v4964_v5  ;;  %v4974_v62 = vmul.f32 0.5, %v4970_v2  ;;  %v5614_v5 = vld [vmem:[%s7499_s5] ss:$0 sm:$0xff]  ;;  %s1227_s5 = scalar_lea.vmem [#allocation8], %s5467_s14 }
0x2881   : > { %s6484_s14 = smov [#allocation8]  }
0x2882   : > { %v5611_v6 = vclamps-f32 %v4976_v3, 4.0  ;;  %v4975_v8 = vmul.f32 0.70710677, %v4965_v4  ;;  %v4973_v60 = vmul.f32 0.5, %v4965_v4  ;;  %s6358_s3 = sshll.u32 %s6484_s14, 4  ;;  %s6359_s3 = int_to_ptr.vmem [resolvable:$false] %s6358_s3 }
0x2884   : > { %v4982_v21 = vmul.f32 %v5611_v6, %v5611_v6  ;;  %v5610_v9 = vclamps-f32 %v4975_v8, 4.0 }
0x2886   : > { %v4984_v56 = vmul.f32 -2.7261424e-10, %v4982_v21  ;;  %v5010_v10 = vmul.f32 -1.45660715e-05, %v4982_v21  ;;  %v4981_v12 = vmul.f32 %v5610_v9, %v5610_v9 }
0x2888   : > { %v4986_v13 = vadd.f32 2.7706815e-08, %v4984_v56  ;;  %v5012_v14 = vadd.f32 -0.00021337405, %v5010_v10  ;;  %v4983_v15 = vmul.f32 -2.7261424e-10, %v4981_v12 }
0x2889   : > { %v5009_v16 = vmul.f32 -1.45660715e-05, %v4981_v12 }
0x288a   : > { %v4988_v17 = vmul.f32 %v4986_v13, %v4982_v21  ;;  %v5014_v18 = vmul.f32 %v5012_v14, %v4982_v21  ;;  %v4985_v1 = vadd.f32 2.7706815e-08, %v4983_v15 }
0x288b   : > { %v5011_v19 = vadd.f32 -0.00021337405, %v5009_v16 }
0x288c   : > { %v4990_v44 = vadd.f32 -2.101024e-06, %v4988_v17  ;;  %v5016_v20 = vadd.f32 -0.001682827, %v5014_v18  ;;  %v4987_v43 = vmul.f32 %v4985_v1, %v4981_v12  ;;  %v5179_v18 = vld [vmem:[%s6684_s16 + $0x8] sm:$0xff]  ;;  %v5178_v1 = vld [vmem:[%s6684_s16] sm:$0xff] }
0x288d   : > { %v5013_v23 = vmul.f32 %v5011_v19, %v4981_v12  ;;  %6133 = vmatprep.subr.mxu1 %v5179_v18 }
0x288e   : > { %v4992_v24 = vmul.f32 %v4990_v44, %v4982_v21  ;;  %v5018_v25 = vmul.f32 %v5016_v20, %v4982_v21  ;;  %v4989_v26 = vadd.f32 -2.101024e-06, %v4987_v43  ;;  %6134 = vmatpush3.msra.mxu1 %v5179_v18 }
0x288f   : > { %v5015_v35 = vadd.f32 -0.001682827, %v5013_v23  ;;  %6135 = vmatprep.subr.mxu1 %v5178_v1 }
0x2890   : > { %v4994_v27 = vadd.f32 -5.6925062e-05, %v4992_v24  ;;  %v5020_v28 = vadd.f32 -0.0073733293, %v5018_v25  ;;  %v4991_v36 = vmul.f32 %v4989_v26, %v4981_v12  ;;  %6136 = vmatpush3.msra.mxu1 %v5178_v1  ;;  %v5615_v26 = vld [vmem:[%s7500_s0] ss:$0 sm:$0xff] }
0x2891   : > { %v5017_v30 = vmul.f32 %v5015_v35, %v4981_v12  ;;  %s5318_s0 = sshll.u32 %s1227_s5, 4  ;;  %s7326_s0 = int_to_ptr.vmem [resolvable:$true] %s5318_s0 }
0x2892   : > { %v4996_v31 = vmul.f32 %v4994_v27, %v4982_v21  ;;  %v5022_v32 = vmul.f32 %v5020_v28, %v4982_v21  ;;  %v4993_v33 = vadd.f32 -5.6925062e-05, %v4991_v36  ;;  %p6361_p5 = scmp.lt.s32.totalorder %s7326_s0, %s6359_s3 }
0x2893   : > { %v5019_v34 = vadd.f32 -0.0073733293, %v5017_v30  ;;  %v5616_v30 = vld [vmem:[%s7501_s17] ss:$0 sm:$0xff]  ;;  %s5627_s17 = sshll.u32 %s6723_s20, 8 }
0x2894   : > { %v4998_v37 = vadd.f32 -0.00073499064, %v4996_v31  ;;  %v5024_v38 = vadd.f32 -0.014264739, %v5022_v32  ;;  %v4995_v39 = vmul.f32 %v4993_v33, %v4981_v12  ;;  %s7330_s25 = scalar_lea.hbm %s6695_s28, %s5627_s17 }
0x2895   : > { %v5021_v40 = vmul.f32 %v5019_v34, %v4981_v12  ;;  %v5617_v34 = vld [vmem:[%s6689_s23] ss:$0 sm:$0xff] }
0x2896   : > { %v5000_v41 = vmul.f32 %v4998_v37, %v4982_v21  ;;  %6334 = vrcp.f32 %v5024_v38  ;;  %v4997_v42 = vadd.f32 -0.00073499064, %v4995_v39  ;;  %v5271_v38 = vld [vmem:[%s1242_s12 + $0x8] sm:$0xff] }
0x2897   : > { %v5023_v45 = vadd.f32 -0.014264739, %v5021_v40 }
0x2898   : > { %v5002_v46 = vadd.f32 -0.0029546, %v5000_v41  ;;  %v4999_v47 = vmul.f32 %v4997_v42, %v4981_v12  ;;  %v5270_v41 = vld [vmem:[%s1242_s12] sm:$0xff]  ;;  %s6354_s12 = scalar_lea.vmem %s7326_s0, 256 }
0x2899   : > { %6336 = vrcp.f32 %v5023_v45  ;;  %p6355_p2 = scmp.ne.s32.totalorder %s7326_s0, %s6354_s12 }
0x289a   : > { %v5004_v48 = vmul.f32 %v5002_v46, %v4982_v21  ;;  %v5001_v49 = vadd.f32 -0.0029546, %v4999_v47 }
0x289b   : > { %p6356_p3 = pnand %p6355_p2, %p6740_p10 }
0x289c   : > { %v5003_v50 = vmul.f32 %v5001_v49, %v4981_v12  ;;  %v5006_v51 = vadd.f32 -0.016096033, %v5004_v48 }
0x289d   : > { %p6357_p4 = pneg %p6356_p3 }
0x289e   : > { %v5005_v53 = vadd.f32 -0.016096033, %v5003_v50  ;;  %v5008_v54 = vmul.f32 %v5611_v6, %v5006_v51 }
0x28a0   : > { %v5007_v57 = vmul.f32 %v5610_v9, %v5005_v53 }
0x28a3   : > { %v6335_v55 = vpop.eup %6334 }
0x28a4   : > { %v5028_v52 = vmul.f32 %v6335_v55, %v5008_v54 }
0x28a6   : > { %v6337_v58 = vpop.eup %6336  ;;  %v5030_v59 = vadd.f32 1.0, %v5028_v52 }
0x28a7   : > { %v5026_v7 = vmul.f32 %v6337_v58, %v5007_v57 }
0x28a8   : > { %v5032_v63 = vmul.f32 %v5030_v59, %v4974_v62 }
0x28a9   : > { %v5029_v61 = vadd.f32 1.0, %v5026_v7 }
0x28ab   : > { %v5031_v11 = vmul.f32 %v5029_v61, %v4973_v60 }
0x28ad   : > { %6130 = vmatprep.mubr.msk.f32.mxu0 %vm5041_vm14, %v5031_v11 }
0x28ae   : > { %6131 = vmatmul.mubr.msk.f32.vlgmr.msra.gmra.mxu0 %vm5041_vm14, %v5032_v63 }
0x296e   : > { %v6132_v0 = vpop.f32.mrf.mxu0 }
0x296f   : > { %v5124_v3 = vadd.f32 %v6132_v0, %v7274_v29 }
0x2970   : > { %v5114_v6 = vpop.f32.mrf.mxu0 }
0x2971   : > { %v5133_v8 = vadd.f32 %v5614_v5, %v5124_v3  ;;  %v5123_v21 = vadd.f32 %v5114_v6, %v7277_v22 }
0x2973   : > { %v5132_v9 = vadd.f32 %v5614_v5, %v5123_v21  ;;  %v5139_v56 = vsel %vm2171_vm9, %v5133_v8, 0.0 }
0x2974   : > { %5140 = vadd.xlane.f32.xlu1 %v5139_v56 }
0x2975   : > { %v5136_v2 = vsel %vm2171_vm9, %v5132_v9, 0.0 }
0x2976   : > { %5137 = vadd.xlane.f32.xlu0 %v5136_v2 }
0x29fd   : > { %v5141_v4 = vpop.xlane.xlu1 %5140 }
0x29fe   : > { %v5143_v10 = vmul.f32 0.0625, %v5141_v4 }
0x29ff   : > { %v5138_v12 = vpop.xlane.xlu0 %5137 }
0x2a00   : > { %v5145_v13 = vsub.f32 %v5133_v8, %v5143_v10  ;;  %v5142_v14 = vmul.f32 0.0625, %v5138_v12 }
0x2a02   : > { %v5144_v15 = vsub.f32 %v5132_v9, %v5142_v14  ;;  %v5147_v29 = vmul.f32 %v5145_v13, %v5145_v13 }
0x2a04   : > { %v5151_v16 = vsel %vm2171_vm9, %v5147_v29, 0.0  ;;  %v5146_v17 = vmul.f32 %v5144_v15, %v5144_v15 }
0x2a05   : > { %5152 = vadd.xlane.f32.xlu1 %v5151_v16 }
0x2a06   : > { %v5148_v22 = vsel %vm2171_vm9, %v5146_v17, 0.0 }
0x2a07   : > { %5149 = vadd.xlane.f32.xlu0 %v5148_v22 }
0x2a8e   : > { %v5153_v19 = vpop.xlane.xlu1 %5152 }
0x2a8f   : > { %v5155_v44 = vmul.f32 0.0625, %v5153_v19 }
0x2a90   : > { %v5150_v20 = vpop.xlane.xlu0 %5149 }
0x2a91   : > { %v5157_v43 = vadd.f32 1e-05, %v5155_v44  ;;  %v5154_v23 = vmul.f32 0.0625, %v5150_v20 }
0x2a93   : > { %6338 = vrsqrt.f32 %v5157_v43  ;;  %v5156_v24 = vadd.f32 1e-05, %v5154_v23 }
0x2a95   : > { %6340 = vrsqrt.f32 %v5156_v24 }
0x2aa0   : > { %v6339_v25 = vpop.eup %6338 }
0x2aa1   : > { %v5161_v35 = vmul.f32 %v6339_v25, %v5145_v13 }
0x2aa2   : > { %v6341_v27 = vpop.eup %6340 }
0x2aa3   : > { %v5160_v28 = vmul.f32 %v6341_v27, %v5144_v15  ;;  %v5169_v36 = vmul.f32 %v5615_v26, %v5161_v35 }
0x2aa5   : > { %v5168_v31 = vmul.f32 %v5615_v26, %v5160_v28  ;;  %v5177_v33 = vadd.f32 %v5616_v30, %v5169_v36 }
0x2aa7   : > { %v5176_v32 = vadd.f32 %v5616_v30, %v5168_v31 }
0x2aa9   : > { %6137 = vmatprep.mubr.msk.f32.mxu1 %vm2171_vm9, %v5176_v32 }
0x2aaa   : > { %6138 = vmatmul.mubr.msk.f32.vlgmr.msra.gmra.mxu1 %vm2171_vm9, %v5177_v33 }
0x2b6a   : > { %v6139_v37 = vpop.f32.mrf.mxu1 }
0x2b6b   : > { %v5265_v39 = vadd.f32 %v6139_v37, %v5617_v34 }
0x2b6c   : > { %v5259_v40 = vpop.f32.mrf.mxu1 }
0x2b6d   : > { %5269 = vst.msk [vmem:[%s1227_s5 + $0x8] sm:$0xff] %vm1269_vm0, %v5265_v39  ;;  %v5273_v42 = vsub.f32 %v5265_v39, %v5271_v38  ;;  %v5260_v45 = vadd.f32 %v5617_v34, %v5259_v40 }
0x2b6f   : > { %v5275_v46 = vmul.f32 %v5273_v42, %v5273_v42  ;;  %5268 = vst.msk [vmem:[%s1227_s5] sm:$0xff] %vm1269_vm0, %v5260_v45  ;;  %v5272_v47 = vsub.f32 %v5260_v45, %v5270_v41  ;;  %s6360_s5 = scalar_lea.vmem %s6359_s3, 512 }
0x2b70   : > { %p6362_p6 = scmp.lt.s32.totalorder %s6360_s5, %s6354_s12 }
0x2b71   : > { %v5274_v48 = vmul.f32 %v5272_v47, %v5272_v47  ;;  %v5279_v49 = vsel %vm1269_vm0, %v5275_v46, 0.0 }
0x2b72   : > { %5280 = vadd.xlane.f32.xlu1 %v5279_v49  ;;  %p6363_p7 = por %p6362_p6, %p6361_p5 }
0x2b73   : > { %v5276_v50 = vsel %vm1269_vm0, %v5274_v48, 0.0 }
0x2b74   : > { %5277 = vadd.xlane.f32.xlu0 %v5276_v50  ;;  %p6364_p8 = pnand %p6363_p7, %p6357_p4 }
0x2bfb   : > { %v5281_v51 = vpop.xlane.xlu1 %5280 }
0x2bfc   : > { %v5284_v53 = vmul.f32 0.020833334, %v5281_v51 }
0x2bfd   : > { %v5278_v54 = vpop.xlane.xlu0 %5277 }
0x2bfe   : > { %v5283_v55 = vmul.f32 0.020833334, %v5278_v54  ;;  %v5287_v52 = vsel %vm5285_vm15, %v5284_v53, 0.0 }
0x2c00   : > { %v5286_v57 = vsel %vm5285_vm15, %v5283_v55, 0.0 }
0x2c01   : > { %v5288_v58 = vadd.f32 %v5287_v52, %v5286_v57 }
0x2c03   : > { %5289 = vadd.xlane.f32.xlu0 %v5288_v58 }
0x2c04   : > { %6367 = shalt.err (!%p6364_p8)
}
0x2c05   : > { %s6368_s20 = scalar_lea.hbm %s7330_s25, 256  ;;  %s6372_s15 = scalar_lea.hbm %s6695_s28, 512 }
0x2c06   : > { %p6369_p9 = scmp.ne.s32.totalorder %s7330_s25, %s6368_s20  ;;  %p6373_p0 = scmp.lt.s32.totalorder %s7330_s25, %s6695_s28 }
0x2c07   : > { %p6374_p1 = scmp.lt.s32.totalorder %s6372_s15, %s6368_s20 }
0x2c08   : > { %p6370_p12 = pnand %p6369_p9, %p6740_p10 }
0x2c09   : > { %p6375_p2 = por %p6374_p1, %p6373_p0 }
0x2c0a   : > { %p6371_p13 = pneg %p6370_p12 }
0x2c0c   : > { %p6376_p3 = pnand %p6375_p2, %p6371_p13 }
0x2c0e   : > { %6379 = shalt.err (!%p6376_p3)
}
0x2c0f   : > { %s6485_s3 = smov 128   ;;  %s1245_s17 = scalar_lea.vmem %s6700_s13, %s6755_s7  ;;  %vm5299_vm0 = vcmask 0  }
0x2c10   : > { %6142 = dma.vmem_to_hbm [thread:$0]  (%p6740_p10), %s7326_s0, 256, %s7330_s25, %s7334_s1, %s6485_s3, %s6485_s3, %s7476_s29  }
0x2c8c   : > { %v5290_v7 = vpop.xlane.xlu0 %5289 }
0x2c8d   : > { %v5291_v59 = vrot.slane %v5290_v7, 4 }
0x2c8f   : > { %v5292_v60 = vadd.f32 %v5291_v59, %v5290_v7 }
0x2c91   : > { %v5293_v61 = vrot.slane %v5292_v60, 2 }
0x2c93   : > { %v5294_v62 = vadd.f32 %v5293_v61, %v5292_v60 }
0x2c95   : > { %v5295_v11 = vrot.slane %v5294_v62, 1 }
0x2c97   : > { %v5296_v63 = vadd.f32 %v5295_v11, %v5294_v62 }
0x2c99   : > { %6140 = vpush %v5296_v63 }
0x2cca   : > { %s6141_s12 = spop %6140 }
0x2ccb   : > { %v5298_v0 = vstv %s6141_s12 }
0x2ccc   : > { %5300 = vst.msk [vmem:[%s1245_s17] sm:$0x1] %vm5299_vm0, %v5298_v0 }
0x2ccd PF: > { %p6148_p4 = scmp.ge.s32.totalorder %s6416_s10, 2  ;;  %s5336_s4 = sand.u32 1, %s6404_s27  }
0x2cce   : > { %s5337_s29 = scalar_lea.sflag [#allocation9], %s5336_s4 }
0x2ccf   : > { %p6145_p10 = pnand %p6148_p4, %p6744_p11 }
0x2cd1   : > { %p6146_p5 = pneg %p6145_p10 }
0x2cd3   : > { %6399 = dma.done.wait (%p6146_p5), %s5337_s29, 256  }
0x2cd4   : > { %6401 = vsyncadd (%p6146_p5), %s5337_s29, 4294967040  ;;  %s7504_s0 = sld [smem:[#allocation46_spill]]  ;;  %p100_p6 = scmp.ge.s32.totalorder %s6727_s18, 4  }
0x2cd5   : > { %s7505_s7 = sld [smem:[#allocation47_spill]]  ;;  %s7506_s27 = smov %s6408_s11 }
0x2cd6   : > { %s7509_s10 = smov %s6727_s18 }
0x2cd7   :  { %102 = sbr.rel (!%p100_p6) target bundleno = 90 (0x5a), region = 287 }
0x2cda   : > { %s7507_s11 = smov %s7504_s0 }
0x2cdb   : > { %s7508_s0 = smov %s7505_s7 }
0x2cdc   :  { %5348 = vsyncpa [#allocation9], 1 }
0x2cdd   :  { %5350 = vsyncpa [#allocation9 + $0x1], 1 }

</bundles_post_ra>
